<compile_context>
chip_gen: v5e
topology: v5e:2x2
jax: 0.10.0
libtpu: 0.0.40
codegen_flags: <defaults>
</compile_context>

<pallas_src>
import functools

import jax
import jax.numpy as jnp
from jax.experimental import pallas as pl
from jax.experimental.pallas import tpu as pltpu

LEAKY_SLOPE = 0.01
BN_EPS = 1e-5
LANE = 128
# <= physical VMEM on every generation (v5e/v6e 128 MiB, v7x 64 MiB); raises the
# 16/32 MiB default scoped limit so bigger tiles stay double-buffered.
VMEM_LIMIT_BYTES = 64 * 1024 * 1024


def _round_up(x, m):
    return (x + m - 1) // m * m


def _pick_tile_h(h, w, cpad, cin, budget_bytes=8 * 2**20):
    """Largest divisor of H whose double-buffered in/out tiles fit `budget_bytes`."""
    per_row = (w * cpad + (w + 2) * cin) * 4          # f32 upper bound per output row
    max_th = max(1, budget_bytes // (2 * per_row))
    th = 1
    for d in range(1, h + 1):
        if h % d == 0 and d <= max_th:
            th = d
    return th


def _accumulate_conv(body_ref, halo0_ref, halo1_ref, w_ref, xs_ref, acc_ref):
    """Shared conv inner loop: acc (TILE_H*W, Cout_pad) f32 = sum over 9 taps."""
    th = xs_ref.shape[0] - 2
    w = xs_ref.shape[1] - 2
    cin = xs_ref.shape[2]

    # Assemble the halo'd tile (TILE_H+2, W+2, Cin) in VMEM from the 3 input views.
    xs_ref[0:th, :, :] = body_ref[0]
    xs_ref[th:th + 1, :, :] = halo0_ref[0]
    xs_ref[th + 1:th + 2, :, :] = halo1_ref[0]

    acc_ref[...] = jnp.zeros_like(acc_ref)
    for kh in range(3):
        for kw in range(3):
            xv = xs_ref[kh:kh + th, kw:kw + w, :].reshape(th * w, cin)
            acc_ref[...] += jnp.dot(xv, w_ref[kh * 3 + kw],
                                    preferred_element_type=jnp.float32)


def conv_stats_kernel(body_ref, halo0_ref, halo1_ref, w_ref, stats_ref,
                      xs_ref, acc_ref):
    """Pass 1: conv tile + accumulate per-channel sum and sum-of-squares."""
    @pl.when((pl.program_id(0) == 0) & (pl.program_id(1) == 0))
    def _():
        stats_ref[...] = jnp.zeros_like(stats_ref)

    _accumulate_conv(body_ref, halo0_ref, halo1_ref, w_ref, xs_ref, acc_ref)

    acc = acc_ref[...]
    stats_ref[0:1, :] += jnp.sum(acc, axis=0, keepdims=True)
    stats_ref[1:2, :] += jnp.sum(acc * acc, axis=0, keepdims=True)


def conv_norm_kernel(body_ref, halo0_ref, halo1_ref, w_ref, scale_ref, shift_ref,
                     o_ref, xs_ref, acc_ref):
    """Pass 2: conv tile + fused BN affine + LeakyReLU, lane-dense NHWC store."""
    _accumulate_conv(body_ref, halo0_ref, halo1_ref, w_ref, xs_ref, acc_ref)

    th, wd, cpad = o_ref.shape[1], o_ref.shape[2], o_ref.shape[3]
    y = acc_ref[...] * scale_ref[...] + shift_ref[...]
    y = jnp.where(y > 0, y, LEAKY_SLOPE * y)
    o_ref[0] = y.reshape(th, wd, cpad).astype(o_ref.dtype)


@functools.partial(jax.jit, static_argnames=("compute_dtype",))
def conv_block_forward(x_nchw, weight, bias, gamma, beta, *,
                       compute_dtype=jnp.bfloat16):
    """Matches torch ConvBlock.forward on NCHW float32 input."""
    # Train-mode BatchNorm subtracts the batch mean, which cancels the conv bias
    # exactly, so the bias is (correctly) ignored.
    del bias
    n, cin, h, w = x_nchw.shape
    cout = weight.shape[0]
    cpad = _round_up(cout, LANE)

    th = _pick_tile_h(h, w, cpad, cin)
    t = h // th
    grid = (n, t)

    # Single NHWC transpose + 1-pixel zero pad (no 9x im2col materialized in HBM).
    x_nhwc = jnp.transpose(x_nchw, (0, 2, 3, 1))
    x_pad = jnp.pad(x_nhwc, ((0, 0), (1, 1), (1, 1), (0, 0))).astype(compute_dtype)

    # weight (Cout, Cin, 3, 3) -> (9, Cin, Cout_pad), zero-padded output lanes.
    w_taps = jnp.transpose(weight, (2, 3, 1, 0)).reshape(9, cin, cout)
    w_taps = jnp.pad(w_taps, ((0, 0), (0, 0), (0, cpad - cout))).astype(compute_dtype)

    # Three views of the same padded input: TILE_H-row body + two 1-row halos.
    x_body_spec = pl.BlockSpec((1, th, w + 2, cin), lambda i, j: (i, j, 0, 0))
    x_halo0_spec = pl.BlockSpec((1, 1, w + 2, cin),
                                lambda i, j: (i, j * th + th, 0, 0))
    x_halo1_spec = pl.BlockSpec((1, 1, w + 2, cin),
                                lambda i, j: (i, j * th + th + 1, 0, 0))
    w_spec = pl.BlockSpec((9, cin, cpad), lambda i, j: (0, 0, 0))

    scratch = [pltpu.VMEM((th + 2, w + 2, cin), compute_dtype),
               pltpu.VMEM((th * w, cpad), jnp.float32)]

    flops_per_pass = 2 * n * h * w * 9 * cin * cpad
    x_bytes = x_pad.size * x_pad.dtype.itemsize
    w_bytes = w_taps.size * w_taps.dtype.itemsize

    # ---- pass 1: conv + batch statistics (sum, sum of squares) ----
    stats = pl.pallas_call(
        conv_stats_kernel,
        out_shape=jax.ShapeDtypeStruct((2, cpad), jnp.float32),
        grid_spec=pltpu.PrefetchScalarGridSpec(
            num_scalar_prefetch=0,
            grid=grid,
            in_specs=[x_body_spec, x_halo0_spec, x_halo1_spec, w_spec],
            out_specs=pl.BlockSpec((2, cpad), lambda i, j: (0, 0)),
            scratch_shapes=scratch),
        compiler_params=pltpu.CompilerParams(
            dimension_semantics=("arbitrary", "arbitrary"),   # stats accumulate
            vmem_limit_bytes=VMEM_LIMIT_BYTES),
        cost_estimate=pl.CostEstimate(
            flops=flops_per_pass, transcendentals=0,
            bytes_accessed=x_bytes + w_bytes + 2 * cpad * 4),
    )(x_pad, x_pad, x_pad, w_taps)

    # Fused BN affine: y_hat*gamma + beta == y*scale + shift.
    m = n * h * w
    mean = stats[0] / m
    var = jnp.maximum(stats[1] / m - mean * mean, 0.0)
    gamma_p = jnp.pad(gamma, (0, cpad - cout))
    beta_p = jnp.pad(beta, (0, cpad - cout))
    s = gamma_p * jax.lax.rsqrt(var + BN_EPS)
    scale = s.astype(jnp.float32).reshape(1, cpad)
    shift = (beta_p - mean * s).astype(jnp.float32).reshape(1, cpad)

    # ---- pass 2: conv recompute + normalize + LeakyReLU ----
    out_pad = pl.pallas_call(
        conv_norm_kernel,
        out_shape=jax.ShapeDtypeStruct((n, h, w, cpad), x_nchw.dtype),
        grid_spec=pltpu.PrefetchScalarGridSpec(
            num_scalar_prefetch=0,
            grid=grid,
            in_specs=[x_body_spec, x_halo0_spec, x_halo1_spec, w_spec,
                      pl.BlockSpec((1, cpad), lambda i, j: (0, 0)),
                      pl.BlockSpec((1, cpad), lambda i, j: (0, 0))],
            out_specs=pl.BlockSpec((1, th, w, cpad), lambda i, j: (i, j, 0, 0)),
            scratch_shapes=scratch),
        compiler_params=pltpu.CompilerParams(
            dimension_semantics=("parallel", "parallel"),     # independent tiles (v7x 2 TCs)
            vmem_limit_bytes=VMEM_LIMIT_BYTES),
        cost_estimate=pl.CostEstimate(
            flops=flops_per_pass, transcendentals=0,
            bytes_accessed=x_bytes + w_bytes + n * h * w * cpad * 4),
    )(x_pad, x_pad, x_pad, w_taps, scale, shift)

    out = out_pad[:, :, :, :cout]          # drop padded channels
    return jnp.transpose(out, (0, 3, 1, 2))  # back to NCHW (module contract)


def init_params(key, cin, cout, k=3):
    """Deterministic ConvBlock params: orthogonal conv weight, zero bias,
    BatchNorm gamma=1, beta=0 (PyTorch defaults)."""
    a = jax.random.normal(key, (cin * k * k, cout), dtype=jnp.float32)
    q, r = jnp.linalg.qr(a)
    q = q * jnp.sign(jnp.diag(r))[None, :]
    weight = q.T.reshape(cout, cin, k, k).astype(jnp.float32)
    bias = jnp.zeros((cout,), jnp.float32)
    gamma = jnp.ones((cout,), jnp.float32)
    beta = jnp.zeros((cout,), jnp.float32)
    return weight, bias, gamma, beta


def _reference(x, weight, bias, gamma, beta):
    """Pure-JAX (XLA) reference of the same forward."""
    y = jax.lax.conv_general_dilated(
        x, weight, window_strides=(1, 1), padding=((1, 1), (1, 1)),
        dimension_numbers=("NCHW", "OIHW", "NCHW"))
    y = y + bias[None, :, None, None]
    mean = jnp.mean(y, axis=(0, 2, 3), keepdims=True)
    var = jnp.mean((y - mean) ** 2, axis=(0, 2, 3), keepdims=True)
    y = (y - mean) * jax.lax.rsqrt(var + BN_EPS)
    y = gamma[None, :, None, None] * y + beta[None, :, None, None]
    return jnp.where(y > 0, y, LEAKY_SLOPE * y)


if __name__ == "__main__":
    key = jax.random.PRNGKey(0)
    k_x, k_w = jax.random.split(key)

    N, CIN, COUT, H, W = 2, 4, 8, 16, 16
    x = jax.random.normal(k_x, (N, CIN, H, W), dtype=jnp.float32)
    weight, bias, gamma, beta = init_params(k_w, CIN, COUT)

    ref = jax.block_until_ready(_reference(x, weight, bias, gamma, beta))

    # f32 compute path: tight tolerance against the XLA reference.
    out_f32 = jax.block_until_ready(
        conv_block_forward(x, weight, bias, gamma, beta, compute_dtype=jnp.float32))
    assert out_f32.shape == (N, COUT, H, W)
    assert jnp.allclose(out_f32, ref, atol=1e-3, rtol=1e-3), "f32 mismatch vs reference"

    # bf16 MXU path (default): looser tolerance from bf16 input rounding.
    out_bf16 = jax.block_until_ready(
        conv_block_forward(x, weight, bias, gamma, beta, compute_dtype=jnp.bfloat16))
    assert out_bf16.shape == (N, COUT, H, W)
    assert jnp.allclose(out_bf16, ref, atol=5e-2, rtol=5e-2), "bf16 mismatch vs reference"

    print("KERNEL_OK")
</pallas_src>

<mosaic_0001>
module attributes {stable_mosaic.version = 11 : i64} {
  func.func @conv_stats_kernel(%arg0: i32, %arg1: i32, %arg2: memref<1x16x18x4xf32, #tpu.memory_space<vmem>>, %arg3: memref<1x1x18x4xf32, #tpu.memory_space<vmem>>, %arg4: memref<1x1x18x4xf32, #tpu.memory_space<vmem>>, %arg5: memref<9x4x128xf32, #tpu.memory_space<vmem>>, %arg6: memref<2x128xf32, #tpu.memory_space<vmem>>, %arg7: memref<18x18x4xf32, #tpu.memory_space<vmem>>, %arg8: memref<256x128xf32, #tpu.memory_space<vmem>>) attributes {dimension_semantics = [#tpu.dimension_semantics<arbitrary>, #tpu.dimension_semantics<arbitrary>], iteration_bounds = array<i64: 2, 1>, scalar_prefetch = 0 : i64, scratch_operands = 2 : i64, tpu.core_type = #tpu.core_type<tc>, window_params = [{transform_indices = @transform_0, window_bounds = array<i64: 1, 16, 18, 4>}, {transform_indices = @transform_1, window_bounds = array<i64: 1, 1, 18, 4>}, {transform_indices = @transform_2, window_bounds = array<i64: 1, 1, 18, 4>}, {pipeline_mode = #tpu.pipeline_mode<synchronous>, transform_indices = @transform_3, window_bounds = array<i64: 9, 4, 128>}, {pipeline_mode = #tpu.pipeline_mode<synchronous>, transform_indices = @transform_4, window_bounds = array<i64: 2, 128>}]} {
    %c0_i32 = arith.constant 0 : i32
    %0 = arith.cmpi eq, %arg0, %c0_i32 : i32
    %c0_i32_0 = arith.constant 0 : i32
    %1 = arith.cmpi eq, %arg1, %c0_i32_0 : i32
    %2 = arith.andi %0, %1 : i1
    %3 = arith.extui %2 : i1 to i32
    %c0_i32_1 = arith.constant 0 : i32
    %4 = arith.cmpi ne, %3, %c0_i32_1 : i32
    scf.if %4 {
      %cst_125 = arith.constant 0.000000e+00 : f32
      %100 = vector.broadcast %cst_125 : f32 to vector<2x128xf32>
      %c0_126 = arith.constant 0 : index
      %c0_127 = arith.constant 0 : index
      %101 = vector.load %arg6[%c0_126, %c0_127] : memref<2x128xf32, #tpu.memory_space<vmem>>, vector<2x128xf32>
      tpu.vector_store %arg6[%c0_126, %c0_127], %100 {strides = array<i32>} : memref<2x128xf32, #tpu.memory_space<vmem>>, vector<2x128xf32>,
    } else {
    }
    %c0 = arith.constant 0 : index
    %c0_2 = arith.constant 0 : index
    %c0_3 = arith.constant 0 : index
    %c0_4 = arith.constant 0 : index
    %5 = vector.load %arg2[%c0, %c0_2, %c0_3, %c0_4] : memref<1x16x18x4xf32, #tpu.memory_space<vmem>>, vector<1x16x18x4xf32>
    %6 = vector.shape_cast %5 : vector<1x16x18x4xf32> to vector<16x18x4xf32>
    %c0_5 = arith.constant 0 : index
    %c0_6 = arith.constant 0 : index
    %c0_7 = arith.constant 0 : index
    %7 = vector.load %arg7[%c0_5, %c0_6, %c0_7] : memref<18x18x4xf32, #tpu.memory_space<vmem>>, vector<16x18x4xf32>
    tpu.vector_store %arg7[%c0_5, %c0_6, %c0_7], %6 {strides = array<i32>} : memref<18x18x4xf32, #tpu.memory_space<vmem>>, vector<16x18x4xf32>,
    %c0_8 = arith.constant 0 : index
    %c0_9 = arith.constant 0 : index
    %c0_10 = arith.constant 0 : index
    %c0_11 = arith.constant 0 : index
    %8 = vector.load %arg3[%c0_8, %c0_9, %c0_10, %c0_11] : memref<1x1x18x4xf32, #tpu.memory_space<vmem>>, vector<1x1x18x4xf32>
    %9 = vector.shape_cast %8 : vector<1x1x18x4xf32> to vector<1x18x4xf32>
    %c16 = arith.constant 16 : index
    %c0_12 = arith.constant 0 : index
    %c0_13 = arith.constant 0 : index
    %10 = vector.load %arg7[%c16, %c0_12, %c0_13] : memref<18x18x4xf32, #tpu.memory_space<vmem>>, vector<1x18x4xf32>
    tpu.vector_store %arg7[%c16, %c0_12, %c0_13], %9 {strides = array<i32>} : memref<18x18x4xf32, #tpu.memory_space<vmem>>, vector<1x18x4xf32>,
    %c0_14 = arith.constant 0 : index
    %c0_15 = arith.constant 0 : index
    %c0_16 = arith.constant 0 : index
    %c0_17 = arith.constant 0 : index
    %11 = vector.load %arg4[%c0_14, %c0_15, %c0_16, %c0_17] : memref<1x1x18x4xf32, #tpu.memory_space<vmem>>, vector<1x1x18x4xf32>
    %12 = vector.shape_cast %11 : vector<1x1x18x4xf32> to vector<1x18x4xf32>
    %c17 = arith.constant 17 : index
    %c0_18 = arith.constant 0 : index
    %c0_19 = arith.constant 0 : index
    %13 = vector.load %arg7[%c17, %c0_18, %c0_19] : memref<18x18x4xf32, #tpu.memory_space<vmem>>, vector<1x18x4xf32>
    tpu.vector_store %arg7[%c17, %c0_18, %c0_19], %12 {strides = array<i32>} : memref<18x18x4xf32, #tpu.memory_space<vmem>>, vector<1x18x4xf32>,
    %cst = arith.constant 0.000000e+00 : f32
    %14 = vector.broadcast %cst : f32 to vector<256x128xf32>
    %c0_20 = arith.constant 0 : index
    %c0_21 = arith.constant 0 : index
    %15 = vector.load %arg8[%c0_20, %c0_21] : memref<256x128xf32, #tpu.memory_space<vmem>>, vector<256x128xf32>
    tpu.vector_store %arg8[%c0_20, %c0_21], %14 {strides = array<i32>} : memref<256x128xf32, #tpu.memory_space<vmem>>, vector<256x128xf32>,
    %c0_22 = arith.constant 0 : index
    %c0_23 = arith.constant 0 : index
    %c0_24 = arith.constant 0 : index
    %16 = vector.load %arg7[%c0_22, %c0_23, %c0_24] : memref<18x18x4xf32, #tpu.memory_space<vmem>>, vector<16x16x4xf32>
    %17 = vector.shape_cast %16 : vector<16x16x4xf32> to vector<256x4xf32>
    %c0_25 = arith.constant 0 : index
    %c0_26 = arith.constant 0 : index
    %18 = vector.load %arg8[%c0_25, %c0_26] : memref<256x128xf32, #tpu.memory_space<vmem>>, vector<256x128xf32>
    %c0_27 = arith.constant 0 : index
    %c0_28 = arith.constant 0 : index
    %c0_29 = arith.constant 0 : index
    %19 = vector.load %arg5[%c0_27, %c0_28, %c0_29] : memref<9x4x128xf32, #tpu.memory_space<vmem>>, vector<1x4x128xf32>
    %20 = vector.shape_cast %19 : vector<1x4x128xf32> to vector<4x128xf32>
    %cst_30 = arith.constant dense<0.000000e+00> : vector<256x128xf32>
    %21 = tpu.matmul %17, %20, %cst_30 {dimension_numbers = #tpu.dot_dimension_numbers<[1], [0], [0], [1], [0, 0, 1, 1], [], []>} : vector<256x4xf32>, vector<4x128xf32>, vector<256x128xf32> -> vector<256x128xf32>
    %22 = arith.addf %18, %21 : vector<256x128xf32>
    %c0_31 = arith.constant 0 : index
    %c0_32 = arith.constant 0 : index
    %23 = vector.load %arg8[%c0_31, %c0_32] : memref<256x128xf32, #tpu.memory_space<vmem>>, vector<256x128xf32>
    tpu.vector_store %arg8[%c0_31, %c0_32], %22 {strides = array<i32>} : memref<256x128xf32, #tpu.memory_space<vmem>>, vector<256x128xf32>,
    %c0_33 = arith.constant 0 : index
    %c1 = arith.constant 1 : index
    %c0_34 = arith.constant 0 : index
    %24 = vector.load %arg7[%c0_33, %c1, %c0_34] : memref<18x18x4xf32, #tpu.memory_space<vmem>>, vector<16x16x4xf32>
    %25 = vector.shape_cast %24 : vector<16x16x4xf32> to vector<256x4xf32>
    %c0_35 = arith.constant 0 : index
    %c0_36 = arith.constant 0 : index
    %26 = vector.load %arg8[%c0_35, %c0_36] : memref<256x128xf32, #tpu.memory_space<vmem>>, vector<256x128xf32>
    %c1_37 = arith.constant 1 : index
    %c0_38 = arith.constant 0 : index
    %c0_39 = arith.constant 0 : index
    %27 = vector.load %arg5[%c1_37, %c0_38, %c0_39] : memref<9x4x128xf32, #tpu.memory_space<vmem>>, vector<1x4x128xf32>
    %28 = vector.shape_cast %27 : vector<1x4x128xf32> to vector<4x128xf32>
    %cst_40 = arith.constant dense<0.000000e+00> : vector<256x128xf32>
    %29 = tpu.matmul %25, %28, %cst_40 {dimension_numbers = #tpu.dot_dimension_numbers<[1], [0], [0], [1], [0, 0, 1, 1], [], []>} : vector<256x4xf32>, vector<4x128xf32>, vector<256x128xf32> -> vector<256x128xf32>
    %30 = arith.addf %26, %29 : vector<256x128xf32>
    %c0_41 = arith.constant 0 : index
    %c0_42 = arith.constant 0 : index
    %31 = vector.load %arg8[%c0_41, %c0_42] : memref<256x128xf32, #tpu.memory_space<vmem>>, vector<256x128xf32>
    tpu.vector_store %arg8[%c0_41, %c0_42], %30 {strides = array<i32>} : memref<256x128xf32, #tpu.memory_space<vmem>>, vector<256x128xf32>,
    %c0_43 = arith.constant 0 : index
    %c2 = arith.constant 2 : index
    %c0_44 = arith.constant 0 : index
    %32 = vector.load %arg7[%c0_43, %c2, %c0_44] : memref<18x18x4xf32, #tpu.memory_space<vmem>>, vector<16x16x4xf32>
    %33 = vector.shape_cast %32 : vector<16x16x4xf32> to vector<256x4xf32>
    %c0_45 = arith.constant 0 : index
    %c0_46 = arith.constant 0 : index
    %34 = vector.load %arg8[%c0_45, %c0_46] : memref<256x128xf32, #tpu.memory_space<vmem>>, vector<256x128xf32>
    %c2_47 = arith.constant 2 : index
    %c0_48 = arith.constant 0 : index
    %c0_49 = arith.constant 0 : index
    %35 = vector.load %arg5[%c2_47, %c0_48, %c0_49] : memref<9x4x128xf32, #tpu.memory_space<vmem>>, vector<1x4x128xf32>
    %36 = vector.shape_cast %35 : vector<1x4x128xf32> to vector<4x128xf32>
    %cst_50 = arith.constant dense<0.000000e+00> : vector<256x128xf32>
    %37 = tpu.matmul %33, %36, %cst_50 {dimension_numbers = #tpu.dot_dimension_numbers<[1], [0], [0], [1], [0, 0, 1, 1], [], []>} : vector<256x4xf32>, vector<4x128xf32>, vector<256x128xf32> -> vector<256x128xf32>
    %38 = arith.addf %34, %37 : vector<256x128xf32>
    %c0_51 = arith.constant 0 : index
    %c0_52 = arith.constant 0 : index
    %39 = vector.load %arg8[%c0_51, %c0_52] : memref<256x128xf32, #tpu.memory_space<vmem>>, vector<256x128xf32>
    tpu.vector_store %arg8[%c0_51, %c0_52], %38 {strides = array<i32>} : memref<256x128xf32, #tpu.memory_space<vmem>>, vector<256x128xf32>,
    %c1_53 = arith.constant 1 : index
    %c0_54 = arith.constant 0 : index
    %c0_55 = arith.constant 0 : index
    %40 = vector.load %arg7[%c1_53, %c0_54, %c0_55] : memref<18x18x4xf32, #tpu.memory_space<vmem>>, vector<16x16x4xf32>
    %41 = vector.shape_cast %40 : vector<16x16x4xf32> to vector<256x4xf32>
    %c0_56 = arith.constant 0 : index
    %c0_57 = arith.constant 0 : index
    %42 = vector.load %arg8[%c0_56, %c0_57] : memref<256x128xf32, #tpu.memory_space<vmem>>, vector<256x128xf32>
    %c3 = arith.constant 3 : index
    %c0_58 = arith.constant 0 : index
    %c0_59 = arith.constant 0 : index
    %43 = vector.load %arg5[%c3, %c0_58, %c0_59] : memref<9x4x128xf32, #tpu.memory_space<vmem>>, vector<1x4x128xf32>
    %44 = vector.shape_cast %43 : vector<1x4x128xf32> to vector<4x128xf32>
    %cst_60 = arith.constant dense<0.000000e+00> : vector<256x128xf32>
    %45 = tpu.matmul %41, %44, %cst_60 {dimension_numbers = #tpu.dot_dimension_numbers<[1], [0], [0], [1], [0, 0, 1, 1], [], []>} : vector<256x4xf32>, vector<4x128xf32>, vector<256x128xf32> -> vector<256x128xf32>
    %46 = arith.addf %42, %45 : vector<256x128xf32>
    %c0_61 = arith.constant 0 : index
    %c0_62 = arith.constant 0 : index
    %47 = vector.load %arg8[%c0_61, %c0_62] : memref<256x128xf32, #tpu.memory_space<vmem>>, vector<256x128xf32>
    tpu.vector_store %arg8[%c0_61, %c0_62], %46 {strides = array<i32>} : memref<256x128xf32, #tpu.memory_space<vmem>>, vector<256x128xf32>,
    %c1_63 = arith.constant 1 : index
    %c1_64 = arith.constant 1 : index
    %c0_65 = arith.constant 0 : index
    %48 = vector.load %arg7[%c1_63, %c1_64, %c0_65] : memref<18x18x4xf32, #tpu.memory_space<vmem>>, vector<16x16x4xf32>
    %49 = vector.shape_cast %48 : vector<16x16x4xf32> to vector<256x4xf32>
    %c0_66 = arith.constant 0 : index
    %c0_67 = arith.constant 0 : index
    %50 = vector.load %arg8[%c0_66, %c0_67] : memref<256x128xf32, #tpu.memory_space<vmem>>, vector<256x128xf32>
    %c4 = arith.constant 4 : index
    %c0_68 = arith.constant 0 : index
    %c0_69 = arith.constant 0 : index
    %51 = vector.load %arg5[%c4, %c0_68, %c0_69] : memref<9x4x128xf32, #tpu.memory_space<vmem>>, vector<1x4x128xf32>
    %52 = vector.shape_cast %51 : vector<1x4x128xf32> to vector<4x128xf32>
    %cst_70 = arith.constant dense<0.000000e+00> : vector<256x128xf32>
    %53 = tpu.matmul %49, %52, %cst_70 {dimension_numbers = #tpu.dot_dimension_numbers<[1], [0], [0], [1], [0, 0, 1, 1], [], []>} : vector<256x4xf32>, vector<4x128xf32>, vector<256x128xf32> -> vector<256x128xf32>
    %54 = arith.addf %50, %53 : vector<256x128xf32>
    %c0_71 = arith.constant 0 : index
    %c0_72 = arith.constant 0 : index
    %55 = vector.load %arg8[%c0_71, %c0_72] : memref<256x128xf32, #tpu.memory_space<vmem>>, vector<256x128xf32>
    tpu.vector_store %arg8[%c0_71, %c0_72], %54 {strides = array<i32>} : memref<256x128xf32, #tpu.memory_space<vmem>>, vector<256x128xf32>,
    %c1_73 = arith.constant 1 : index
    %c2_74 = arith.constant 2 : index
    %c0_75 = arith.constant 0 : index
    %56 = vector.load %arg7[%c1_73, %c2_74, %c0_75] : memref<18x18x4xf32, #tpu.memory_space<vmem>>, vector<16x16x4xf32>
    %57 = vector.shape_cast %56 : vector<16x16x4xf32> to vector<256x4xf32>
    %c0_76 = arith.constant 0 : index
    %c0_77 = arith.constant 0 : index
    %58 = vector.load %arg8[%c0_76, %c0_77] : memref<256x128xf32, #tpu.memory_space<vmem>>, vector<256x128xf32>
    %c5 = arith.constant 5 : index
    %c0_78 = arith.constant 0 : index
    %c0_79 = arith.constant 0 : index
    %59 = vector.load %arg5[%c5, %c0_78, %c0_79] : memref<9x4x128xf32, #tpu.memory_space<vmem>>, vector<1x4x128xf32>
    %60 = vector.shape_cast %59 : vector<1x4x128xf32> to vector<4x128xf32>
    %cst_80 = arith.constant dense<0.000000e+00> : vector<256x128xf32>
    %61 = tpu.matmul %57, %60, %cst_80 {dimension_numbers = #tpu.dot_dimension_numbers<[1], [0], [0], [1], [0, 0, 1, 1], [], []>} : vector<256x4xf32>, vector<4x128xf32>, vector<256x128xf32> -> vector<256x128xf32>
    %62 = arith.addf %58, %61 : vector<256x128xf32>
    %c0_81 = arith.constant 0 : index
    %c0_82 = arith.constant 0 : index
    %63 = vector.load %arg8[%c0_81, %c0_82] : memref<256x128xf32, #tpu.memory_space<vmem>>, vector<256x128xf32>
    tpu.vector_store %arg8[%c0_81, %c0_82], %62 {strides = array<i32>} : memref<256x128xf32, #tpu.memory_space<vmem>>, vector<256x128xf32>,
    %c2_83 = arith.constant 2 : index
    %c0_84 = arith.constant 0 : index
    %c0_85 = arith.constant 0 : index
    %64 = vector.load %arg7[%c2_83, %c0_84, %c0_85] : memref<18x18x4xf32, #tpu.memory_space<vmem>>, vector<16x16x4xf32>
    %65 = vector.shape_cast %64 : vector<16x16x4xf32> to vector<256x4xf32>
    %c0_86 = arith.constant 0 : index
    %c0_87 = arith.constant 0 : index
    %66 = vector.load %arg8[%c0_86, %c0_87] : memref<256x128xf32, #tpu.memory_space<vmem>>, vector<256x128xf32>
    %c6 = arith.constant 6 : index
    %c0_88 = arith.constant 0 : index
    %c0_89 = arith.constant 0 : index
    %67 = vector.load %arg5[%c6, %c0_88, %c0_89] : memref<9x4x128xf32, #tpu.memory_space<vmem>>, vector<1x4x128xf32>
    %68 = vector.shape_cast %67 : vector<1x4x128xf32> to vector<4x128xf32>
    %cst_90 = arith.constant dense<0.000000e+00> : vector<256x128xf32>
    %69 = tpu.matmul %65, %68, %cst_90 {dimension_numbers = #tpu.dot_dimension_numbers<[1], [0], [0], [1], [0, 0, 1, 1], [], []>} : vector<256x4xf32>, vector<4x128xf32>, vector<256x128xf32> -> vector<256x128xf32>
    %70 = arith.addf %66, %69 : vector<256x128xf32>
    %c0_91 = arith.constant 0 : index
    %c0_92 = arith.constant 0 : index
    %71 = vector.load %arg8[%c0_91, %c0_92] : memref<256x128xf32, #tpu.memory_space<vmem>>, vector<256x128xf32>
    tpu.vector_store %arg8[%c0_91, %c0_92], %70 {strides = array<i32>} : memref<256x128xf32, #tpu.memory_space<vmem>>, vector<256x128xf32>,
    %c2_93 = arith.constant 2 : index
    %c1_94 = arith.constant 1 : index
    %c0_95 = arith.constant 0 : index
    %72 = vector.load %arg7[%c2_93, %c1_94, %c0_95] : memref<18x18x4xf32, #tpu.memory_space<vmem>>, vector<16x16x4xf32>
    %73 = vector.shape_cast %72 : vector<16x16x4xf32> to vector<256x4xf32>
    %c0_96 = arith.constant 0 : index
    %c0_97 = arith.constant 0 : index
    %74 = vector.load %arg8[%c0_96, %c0_97] : memref<256x128xf32, #tpu.memory_space<vmem>>, vector<256x128xf32>
    %c7 = arith.constant 7 : index
    %c0_98 = arith.constant 0 : index
    %c0_99 = arith.constant 0 : index
    %75 = vector.load %arg5[%c7, %c0_98, %c0_99] : memref<9x4x128xf32, #tpu.memory_space<vmem>>, vector<1x4x128xf32>
    %76 = vector.shape_cast %75 : vector<1x4x128xf32> to vector<4x128xf32>
    %cst_100 = arith.constant dense<0.000000e+00> : vector<256x128xf32>
    %77 = tpu.matmul %73, %76, %cst_100 {dimension_numbers = #tpu.dot_dimension_numbers<[1], [0], [0], [1], [0, 0, 1, 1], [], []>} : vector<256x4xf32>, vector<4x128xf32>, vector<256x128xf32> -> vector<256x128xf32>
    %78 = arith.addf %74, %77 : vector<256x128xf32>
    %c0_101 = arith.constant 0 : index
    %c0_102 = arith.constant 0 : index
    %79 = vector.load %arg8[%c0_101, %c0_102] : memref<256x128xf32, #tpu.memory_space<vmem>>, vector<256x128xf32>
    tpu.vector_store %arg8[%c0_101, %c0_102], %78 {strides = array<i32>} : memref<256x128xf32, #tpu.memory_space<vmem>>, vector<256x128xf32>,
    %c2_103 = arith.constant 2 : index
    %c2_104 = arith.constant 2 : index
    %c0_105 = arith.constant 0 : index
    %80 = vector.load %arg7[%c2_103, %c2_104, %c0_105] : memref<18x18x4xf32, #tpu.memory_space<vmem>>, vector<16x16x4xf32>
    %81 = vector.shape_cast %80 : vector<16x16x4xf32> to vector<256x4xf32>
    %c0_106 = arith.constant 0 : index
    %c0_107 = arith.constant 0 : index
    %82 = vector.load %arg8[%c0_106, %c0_107] : memref<256x128xf32, #tpu.memory_space<vmem>>, vector<256x128xf32>
    %c8 = arith.constant 8 : index
    %c0_108 = arith.constant 0 : index
    %c0_109 = arith.constant 0 : index
    %83 = vector.load %arg5[%c8, %c0_108, %c0_109] : memref<9x4x128xf32, #tpu.memory_space<vmem>>, vector<1x4x128xf32>
    %84 = vector.shape_cast %83 : vector<1x4x128xf32> to vector<4x128xf32>
    %cst_110 = arith.constant dense<0.000000e+00> : vector<256x128xf32>
    %85 = tpu.matmul %81, %84, %cst_110 {dimension_numbers = #tpu.dot_dimension_numbers<[1], [0], [0], [1], [0, 0, 1, 1], [], []>} : vector<256x4xf32>, vector<4x128xf32>, vector<256x128xf32> -> vector<256x128xf32>
    %86 = arith.addf %82, %85 : vector<256x128xf32>
    %c0_111 = arith.constant 0 : index
    %c0_112 = arith.constant 0 : index
    %87 = vector.load %arg8[%c0_111, %c0_112] : memref<256x128xf32, #tpu.memory_space<vmem>>, vector<256x128xf32>
    tpu.vector_store %arg8[%c0_111, %c0_112], %86 {strides = array<i32>} : memref<256x128xf32, #tpu.memory_space<vmem>>, vector<256x128xf32>,
    %c0_113 = arith.constant 0 : index
    %c0_114 = arith.constant 0 : index
    %88 = vector.load %arg8[%c0_113, %c0_114] : memref<256x128xf32, #tpu.memory_space<vmem>>, vector<256x128xf32>
    %c0_115 = arith.constant 0 : index
    %c0_116 = arith.constant 0 : index
    %89 = vector.load %arg6[%c0_115, %c0_116] : memref<2x128xf32, #tpu.memory_space<vmem>>, vector<1x128xf32>
    %cst_117 = arith.constant dense<0.000000e+00> : vector<128xf32>
    %90 = vector.multi_reduction <add>, %88, %cst_117 [0] : vector<256x128xf32> to vector<128xf32>
    %91 = vector.shape_cast %90 : vector<128xf32> to vector<1x128xf32>
    %92 = arith.addf %89, %91 : vector<1x128xf32>
    %c0_118 = arith.constant 0 : index
    %c0_119 = arith.constant 0 : index
    %93 = vector.load %arg6[%c0_118, %c0_119] : memref<2x128xf32, #tpu.memory_space<vmem>>, vector<1x128xf32>
    tpu.vector_store %arg6[%c0_118, %c0_119], %92 {strides = array<i32>} : memref<2x128xf32, #tpu.memory_space<vmem>>, vector<1x128xf32>,
    %c1_120 = arith.constant 1 : index
    %c0_121 = arith.constant 0 : index
    %94 = vector.load %arg6[%c1_120, %c0_121] : memref<2x128xf32, #tpu.memory_space<vmem>>, vector<1x128xf32>
    %95 = arith.mulf %88, %88 : vector<256x128xf32>
    %cst_122 = arith.constant dense<0.000000e+00> : vector<128xf32>
    %96 = vector.multi_reduction <add>, %95, %cst_122 [0] : vector<256x128xf32> to vector<128xf32>
    %97 = vector.shape_cast %96 : vector<128xf32> to vector<1x128xf32>
    %98 = arith.addf %94, %97 : vector<1x128xf32>
    %c1_123 = arith.constant 1 : index
    %c0_124 = arith.constant 0 : index
    %99 = vector.load %arg6[%c1_123, %c0_124] : memref<2x128xf32, #tpu.memory_space<vmem>>, vector<1x128xf32>
    tpu.vector_store %arg6[%c1_123, %c0_124], %98 {strides = array<i32>} : memref<2x128xf32, #tpu.memory_space<vmem>>, vector<1x128xf32>,
    return
  }
  func.func @transform_0(%arg0: i32, %arg1: i32) -> (i32, i32, i32, i32) {
    %c0_i32 = arith.constant 0 : i32
    %c0_i32_0 = arith.constant 0 : i32
    %c0_i32_1 = arith.constant 0 : i32
    return %arg0, %arg1, %c0_i32, %c0_i32_0 : i32, i32, i32, i32
  }
  func.func @transform_1(%arg0: i32, %arg1: i32) -> (i32, i32, i32, i32) {
    %c16_i32 = arith.constant 16 : i32
    %0 = arith.muli %arg1, %c16_i32 : i32
    %c16_i32_0 = arith.constant 16 : i32
    %1 = arith.addi %0, %c16_i32_0 : i32
    %c0_i32 = arith.constant 0 : i32
    %c0_i32_1 = arith.constant 0 : i32
    %c0_i32_2 = arith.constant 0 : i32
    return %arg0, %1, %c0_i32, %c0_i32_1 : i32, i32, i32, i32
  }
  func.func @transform_2(%arg0: i32, %arg1: i32) -> (i32, i32, i32, i32) {
    %c16_i32 = arith.constant 16 : i32
    %0 = arith.muli %arg1, %c16_i32 : i32
    %c16_i32_0 = arith.constant 16 : i32
    %1 = arith.addi %0, %c16_i32_0 : i32
    %c1_i32 = arith.constant 1 : i32
    %2 = arith.addi %1, %c1_i32 : i32
    %c0_i32 = arith.constant 0 : i32
    %c0_i32_1 = arith.constant 0 : i32
    %c0_i32_2 = arith.constant 0 : i32
    return %arg0, %2, %c0_i32, %c0_i32_1 : i32, i32, i32, i32
  }
  func.func @transform_3(%arg0: i32, %arg1: i32) -> (i32, i32, i32) {
    %c0_i32 = arith.constant 0 : i32
    %c0_i32_0 = arith.constant 0 : i32
    %c0_i32_1 = arith.constant 0 : i32
    %c0_i32_2 = arith.constant 0 : i32
    return %c0_i32, %c0_i32_0, %c0_i32_1 : i32, i32, i32
  }
  func.func @transform_4(%arg0: i32, %arg1: i32) -> (i32, i32) {
    %c0_i32 = arith.constant 0 : i32
    %c0_i32_0 = arith.constant 0 : i32
    %c0_i32_1 = arith.constant 0 : i32
    return %c0_i32, %c0_i32_0 : i32, i32
  }
}

module attributes {stable_mosaic.version = 11 : i64} {
  func.func @conv_norm_kernel(%arg0: i32, %arg1: i32, %arg2: memref<1x16x18x4xf32, #tpu.memory_space<vmem>>, %arg3: memref<1x1x18x4xf32, #tpu.memory_space<vmem>>, %arg4: memref<1x1x18x4xf32, #tpu.memory_space<vmem>>, %arg5: memref<9x4x128xf32, #tpu.memory_space<vmem>>, %arg6: memref<1x128xf32, #tpu.memory_space<vmem>>, %arg7: memref<1x128xf32, #tpu.memory_space<vmem>>, %arg8: memref<1x16x16x128xf32, #tpu.memory_space<vmem>>, %arg9: memref<18x18x4xf32, #tpu.memory_space<vmem>>, %arg10: memref<256x128xf32, #tpu.memory_space<vmem>>) attributes {dimension_semantics = [#tpu.dimension_semantics<parallel>, #tpu.dimension_semantics<parallel>], iteration_bounds = array<i64: 2, 1>, scalar_prefetch = 0 : i64, scratch_operands = 2 : i64, tpu.core_type = #tpu.core_type<tc>, window_params = [{transform_indices = @transform_0, window_bounds = array<i64: 1, 16, 18, 4>}, {transform_indices = @transform_1, window_bounds = array<i64: 1, 1, 18, 4>}, {transform_indices = @transform_2, window_bounds = array<i64: 1, 1, 18, 4>}, {pipeline_mode = #tpu.pipeline_mode<synchronous>, transform_indices = @transform_3, window_bounds = array<i64: 9, 4, 128>}, {pipeline_mode = #tpu.pipeline_mode<synchronous>, transform_indices = @transform_4, window_bounds = array<i64: 1, 128>}, {pipeline_mode = #tpu.pipeline_mode<synchronous>, transform_indices = @transform_5, window_bounds = array<i64: 1, 128>}, {transform_indices = @transform_6, window_bounds = array<i64: 1, 16, 16, 128>}]} {
    %c0 = arith.constant 0 : index
    %c0_0 = arith.constant 0 : index
    %c0_1 = arith.constant 0 : index
    %c0_2 = arith.constant 0 : index
    %0 = vector.load %arg2[%c0, %c0_0, %c0_1, %c0_2] : memref<1x16x18x4xf32, #tpu.memory_space<vmem>>, vector<1x16x18x4xf32>
    %1 = vector.shape_cast %0 : vector<1x16x18x4xf32> to vector<16x18x4xf32>
    %c0_3 = arith.constant 0 : index
    %c0_4 = arith.constant 0 : index
    %c0_5 = arith.constant 0 : index
    %2 = vector.load %arg9[%c0_3, %c0_4, %c0_5] : memref<18x18x4xf32, #tpu.memory_space<vmem>>, vector<16x18x4xf32>
    tpu.vector_store %arg9[%c0_3, %c0_4, %c0_5], %1 {strides = array<i32>} : memref<18x18x4xf32, #tpu.memory_space<vmem>>, vector<16x18x4xf32>,
    %c0_6 = arith.constant 0 : index
    %c0_7 = arith.constant 0 : index
    %c0_8 = arith.constant 0 : index
    %c0_9 = arith.constant 0 : index
    %3 = vector.load %arg3[%c0_6, %c0_7, %c0_8, %c0_9] : memref<1x1x18x4xf32, #tpu.memory_space<vmem>>, vector<1x1x18x4xf32>
    %4 = vector.shape_cast %3 : vector<1x1x18x4xf32> to vector<1x18x4xf32>
    %c16 = arith.constant 16 : index
    %c0_10 = arith.constant 0 : index
    %c0_11 = arith.constant 0 : index
    %5 = vector.load %arg9[%c16, %c0_10, %c0_11] : memref<18x18x4xf32, #tpu.memory_space<vmem>>, vector<1x18x4xf32>
    tpu.vector_store %arg9[%c16, %c0_10, %c0_11], %4 {strides = array<i32>} : memref<18x18x4xf32, #tpu.memory_space<vmem>>, vector<1x18x4xf32>,
    %c0_12 = arith.constant 0 : index
    %c0_13 = arith.constant 0 : index
    %c0_14 = arith.constant 0 : index
    %c0_15 = arith.constant 0 : index
    %6 = vector.load %arg4[%c0_12, %c0_13, %c0_14, %c0_15] : memref<1x1x18x4xf32, #tpu.memory_space<vmem>>, vector<1x1x18x4xf32>
    %7 = vector.shape_cast %6 : vector<1x1x18x4xf32> to vector<1x18x4xf32>
    %c17 = arith.constant 17 : index
    %c0_16 = arith.constant 0 : index
    %c0_17 = arith.constant 0 : index
    %8 = vector.load %arg9[%c17, %c0_16, %c0_17] : memref<18x18x4xf32, #tpu.memory_space<vmem>>, vector<1x18x4xf32>
    tpu.vector_store %arg9[%c17, %c0_16, %c0_17], %7 {strides = array<i32>} : memref<18x18x4xf32, #tpu.memory_space<vmem>>, vector<1x18x4xf32>,
    %cst = arith.constant 0.000000e+00 : f32
    %9 = vector.broadcast %cst : f32 to vector<256x128xf32>
    %c0_18 = arith.constant 0 : index
    %c0_19 = arith.constant 0 : index
    %10 = vector.load %arg10[%c0_18, %c0_19] : memref<256x128xf32, #tpu.memory_space<vmem>>, vector<256x128xf32>
    tpu.vector_store %arg10[%c0_18, %c0_19], %9 {strides = array<i32>} : memref<256x128xf32, #tpu.memory_space<vmem>>, vector<256x128xf32>,
    %c0_20 = arith.constant 0 : index
    %c0_21 = arith.constant 0 : index
    %c0_22 = arith.constant 0 : index
    %11 = vector.load %arg9[%c0_20, %c0_21, %c0_22] : memref<18x18x4xf32, #tpu.memory_space<vmem>>, vector<16x16x4xf32>
    %12 = vector.shape_cast %11 : vector<16x16x4xf32> to vector<256x4xf32>
    %c0_23 = arith.constant 0 : index
    %c0_24 = arith.constant 0 : index
    %13 = vector.load %arg10[%c0_23, %c0_24] : memref<256x128xf32, #tpu.memory_space<vmem>>, vector<256x128xf32>
    %c0_25 = arith.constant 0 : index
    %c0_26 = arith.constant 0 : index
    %c0_27 = arith.constant 0 : index
    %14 = vector.load %arg5[%c0_25, %c0_26, %c0_27] : memref<9x4x128xf32, #tpu.memory_space<vmem>>, vector<1x4x128xf32>
    %15 = vector.shape_cast %14 : vector<1x4x128xf32> to vector<4x128xf32>
    %cst_28 = arith.constant dense<0.000000e+00> : vector<256x128xf32>
    %16 = tpu.matmul %12, %15, %cst_28 {dimension_numbers = #tpu.dot_dimension_numbers<[1], [0], [0], [1], [0, 0, 1, 1], [], []>} : vector<256x4xf32>, vector<4x128xf32>, vector<256x128xf32> -> vector<256x128xf32>
    %17 = arith.addf %13, %16 : vector<256x128xf32>
    %c0_29 = arith.constant 0 : index
    %c0_30 = arith.constant 0 : index
    %18 = vector.load %arg10[%c0_29, %c0_30] : memref<256x128xf32, #tpu.memory_space<vmem>>, vector<256x128xf32>
    tpu.vector_store %arg10[%c0_29, %c0_30], %17 {strides = array<i32>} : memref<256x128xf32, #tpu.memory_space<vmem>>, vector<256x128xf32>,
    %c0_31 = arith.constant 0 : index
    %c1 = arith.constant 1 : index
    %c0_32 = arith.constant 0 : index
    %19 = vector.load %arg9[%c0_31, %c1, %c0_32] : memref<18x18x4xf32, #tpu.memory_space<vmem>>, vector<16x16x4xf32>
    %20 = vector.shape_cast %19 : vector<16x16x4xf32> to vector<256x4xf32>
    %c0_33 = arith.constant 0 : index
    %c0_34 = arith.constant 0 : index
    %21 = vector.load %arg10[%c0_33, %c0_34] : memref<256x128xf32, #tpu.memory_space<vmem>>, vector<256x128xf32>
    %c1_35 = arith.constant 1 : index
    %c0_36 = arith.constant 0 : index
    %c0_37 = arith.constant 0 : index
    %22 = vector.load %arg5[%c1_35, %c0_36, %c0_37] : memref<9x4x128xf32, #tpu.memory_space<vmem>>, vector<1x4x128xf32>
    %23 = vector.shape_cast %22 : vector<1x4x128xf32> to vector<4x128xf32>
    %cst_38 = arith.constant dense<0.000000e+00> : vector<256x128xf32>
    %24 = tpu.matmul %20, %23, %cst_38 {dimension_numbers = #tpu.dot_dimension_numbers<[1], [0], [0], [1], [0, 0, 1, 1], [], []>} : vector<256x4xf32>, vector<4x128xf32>, vector<256x128xf32> -> vector<256x128xf32>
    %25 = arith.addf %21, %24 : vector<256x128xf32>
    %c0_39 = arith.constant 0 : index
    %c0_40 = arith.constant 0 : index
    %26 = vector.load %arg10[%c0_39, %c0_40] : memref<256x128xf32, #tpu.memory_space<vmem>>, vector<256x128xf32>
    tpu.vector_store %arg10[%c0_39, %c0_40], %25 {strides = array<i32>} : memref<256x128xf32, #tpu.memory_space<vmem>>, vector<256x128xf32>,
    %c0_41 = arith.constant 0 : index
    %c2 = arith.constant 2 : index
    %c0_42 = arith.constant 0 : index
    %27 = vector.load %arg9[%c0_41, %c2, %c0_42] : memref<18x18x4xf32, #tpu.memory_space<vmem>>, vector<16x16x4xf32>
    %28 = vector.shape_cast %27 : vector<16x16x4xf32> to vector<256x4xf32>
    %c0_43 = arith.constant 0 : index
    %c0_44 = arith.constant 0 : index
    %29 = vector.load %arg10[%c0_43, %c0_44] : memref<256x128xf32, #tpu.memory_space<vmem>>, vector<256x128xf32>
    %c2_45 = arith.constant 2 : index
    %c0_46 = arith.constant 0 : index
    %c0_47 = arith.constant 0 : index
    %30 = vector.load %arg5[%c2_45, %c0_46, %c0_47] : memref<9x4x128xf32, #tpu.memory_space<vmem>>, vector<1x4x128xf32>
    %31 = vector.shape_cast %30 : vector<1x4x128xf32> to vector<4x128xf32>
    %cst_48 = arith.constant dense<0.000000e+00> : vector<256x128xf32>
    %32 = tpu.matmul %28, %31, %cst_48 {dimension_numbers = #tpu.dot_dimension_numbers<[1], [0], [0], [1], [0, 0, 1, 1], [], []>} : vector<256x4xf32>, vector<4x128xf32>, vector<256x128xf32> -> vector<256x128xf32>
    %33 = arith.addf %29, %32 : vector<256x128xf32>
    %c0_49 = arith.constant 0 : index
    %c0_50 = arith.constant 0 : index
    %34 = vector.load %arg10[%c0_49, %c0_50] : memref<256x128xf32, #tpu.memory_space<vmem>>, vector<256x128xf32>
    tpu.vector_store %arg10[%c0_49, %c0_50], %33 {strides = array<i32>} : memref<256x128xf32, #tpu.memory_space<vmem>>, vector<256x128xf32>,
    %c1_51 = arith.constant 1 : index
    %c0_52 = arith.constant 0 : index
    %c0_53 = arith.constant 0 : index
    %35 = vector.load %arg9[%c1_51, %c0_52, %c0_53] : memref<18x18x4xf32, #tpu.memory_space<vmem>>, vector<16x16x4xf32>
    %36 = vector.shape_cast %35 : vector<16x16x4xf32> to vector<256x4xf32>
    %c0_54 = arith.constant 0 : index
    %c0_55 = arith.constant 0 : index
    %37 = vector.load %arg10[%c0_54, %c0_55] : memref<256x128xf32, #tpu.memory_space<vmem>>, vector<256x128xf32>
    %c3 = arith.constant 3 : index
    %c0_56 = arith.constant 0 : index
    %c0_57 = arith.constant 0 : index
    %38 = vector.load %arg5[%c3, %c0_56, %c0_57] : memref<9x4x128xf32, #tpu.memory_space<vmem>>, vector<1x4x128xf32>
    %39 = vector.shape_cast %38 : vector<1x4x128xf32> to vector<4x128xf32>
    %cst_58 = arith.constant dense<0.000000e+00> : vector<256x128xf32>
    %40 = tpu.matmul %36, %39, %cst_58 {dimension_numbers = #tpu.dot_dimension_numbers<[1], [0], [0], [1], [0, 0, 1, 1], [], []>} : vector<256x4xf32>, vector<4x128xf32>, vector<256x128xf32> -> vector<256x128xf32>
    %41 = arith.addf %37, %40 : vector<256x128xf32>
    %c0_59 = arith.constant 0 : index
    %c0_60 = arith.constant 0 : index
    %42 = vector.load %arg10[%c0_59, %c0_60] : memref<256x128xf32, #tpu.memory_space<vmem>>, vector<256x128xf32>
    tpu.vector_store %arg10[%c0_59, %c0_60], %41 {strides = array<i32>} : memref<256x128xf32, #tpu.memory_space<vmem>>, vector<256x128xf32>,
    %c1_61 = arith.constant 1 : index
    %c1_62 = arith.constant 1 : index
    %c0_63 = arith.constant 0 : index
    %43 = vector.load %arg9[%c1_61, %c1_62, %c0_63] : memref<18x18x4xf32, #tpu.memory_space<vmem>>, vector<16x16x4xf32>
    %44 = vector.shape_cast %43 : vector<16x16x4xf32> to vector<256x4xf32>
    %c0_64 = arith.constant 0 : index
    %c0_65 = arith.constant 0 : index
    %45 = vector.load %arg10[%c0_64, %c0_65] : memref<256x128xf32, #tpu.memory_space<vmem>>, vector<256x128xf32>
    %c4 = arith.constant 4 : index
    %c0_66 = arith.constant 0 : index
    %c0_67 = arith.constant 0 : index
    %46 = vector.load %arg5[%c4, %c0_66, %c0_67] : memref<9x4x128xf32, #tpu.memory_space<vmem>>, vector<1x4x128xf32>
    %47 = vector.shape_cast %46 : vector<1x4x128xf32> to vector<4x128xf32>
    %cst_68 = arith.constant dense<0.000000e+00> : vector<256x128xf32>
    %48 = tpu.matmul %44, %47, %cst_68 {dimension_numbers = #tpu.dot_dimension_numbers<[1], [0], [0], [1], [0, 0, 1, 1], [], []>} : vector<256x4xf32>, vector<4x128xf32>, vector<256x128xf32> -> vector<256x128xf32>
    %49 = arith.addf %45, %48 : vector<256x128xf32>
    %c0_69 = arith.constant 0 : index
    %c0_70 = arith.constant 0 : index
    %50 = vector.load %arg10[%c0_69, %c0_70] : memref<256x128xf32, #tpu.memory_space<vmem>>, vector<256x128xf32>
    tpu.vector_store %arg10[%c0_69, %c0_70], %49 {strides = array<i32>} : memref<256x128xf32, #tpu.memory_space<vmem>>, vector<256x128xf32>,
    %c1_71 = arith.constant 1 : index
    %c2_72 = arith.constant 2 : index
    %c0_73 = arith.constant 0 : index
    %51 = vector.load %arg9[%c1_71, %c2_72, %c0_73] : memref<18x18x4xf32, #tpu.memory_space<vmem>>, vector<16x16x4xf32>
    %52 = vector.shape_cast %51 : vector<16x16x4xf32> to vector<256x4xf32>
    %c0_74 = arith.constant 0 : index
    %c0_75 = arith.constant 0 : index
    %53 = vector.load %arg10[%c0_74, %c0_75] : memref<256x128xf32, #tpu.memory_space<vmem>>, vector<256x128xf32>
    %c5 = arith.constant 5 : index
    %c0_76 = arith.constant 0 : index
    %c0_77 = arith.constant 0 : index
    %54 = vector.load %arg5[%c5, %c0_76, %c0_77] : memref<9x4x128xf32, #tpu.memory_space<vmem>>, vector<1x4x128xf32>
    %55 = vector.shape_cast %54 : vector<1x4x128xf32> to vector<4x128xf32>
    %cst_78 = arith.constant dense<0.000000e+00> : vector<256x128xf32>
    %56 = tpu.matmul %52, %55, %cst_78 {dimension_numbers = #tpu.dot_dimension_numbers<[1], [0], [0], [1], [0, 0, 1, 1], [], []>} : vector<256x4xf32>, vector<4x128xf32>, vector<256x128xf32> -> vector<256x128xf32>
    %57 = arith.addf %53, %56 : vector<256x128xf32>
    %c0_79 = arith.constant 0 : index
    %c0_80 = arith.constant 0 : index
    %58 = vector.load %arg10[%c0_79, %c0_80] : memref<256x128xf32, #tpu.memory_space<vmem>>, vector<256x128xf32>
    tpu.vector_store %arg10[%c0_79, %c0_80], %57 {strides = array<i32>} : memref<256x128xf32, #tpu.memory_space<vmem>>, vector<256x128xf32>,
    %c2_81 = arith.constant 2 : index
    %c0_82 = arith.constant 0 : index
    %c0_83 = arith.constant 0 : index
    %59 = vector.load %arg9[%c2_81, %c0_82, %c0_83] : memref<18x18x4xf32, #tpu.memory_space<vmem>>, vector<16x16x4xf32>
    %60 = vector.shape_cast %59 : vector<16x16x4xf32> to vector<256x4xf32>
    %c0_84 = arith.constant 0 : index
    %c0_85 = arith.constant 0 : index
    %61 = vector.load %arg10[%c0_84, %c0_85] : memref<256x128xf32, #tpu.memory_space<vmem>>, vector<256x128xf32>
    %c6 = arith.constant 6 : index
    %c0_86 = arith.constant 0 : index
    %c0_87 = arith.constant 0 : index
    %62 = vector.load %arg5[%c6, %c0_86, %c0_87] : memref<9x4x128xf32, #tpu.memory_space<vmem>>, vector<1x4x128xf32>
    %63 = vector.shape_cast %62 : vector<1x4x128xf32> to vector<4x128xf32>
    %cst_88 = arith.constant dense<0.000000e+00> : vector<256x128xf32>
    %64 = tpu.matmul %60, %63, %cst_88 {dimension_numbers = #tpu.dot_dimension_numbers<[1], [0], [0], [1], [0, 0, 1, 1], [], []>} : vector<256x4xf32>, vector<4x128xf32>, vector<256x128xf32> -> vector<256x128xf32>
    %65 = arith.addf %61, %64 : vector<256x128xf32>
    %c0_89 = arith.constant 0 : index
    %c0_90 = arith.constant 0 : index
    %66 = vector.load %arg10[%c0_89, %c0_90] : memref<256x128xf32, #tpu.memory_space<vmem>>, vector<256x128xf32>
    tpu.vector_store %arg10[%c0_89, %c0_90], %65 {strides = array<i32>} : memref<256x128xf32, #tpu.memory_space<vmem>>, vector<256x128xf32>,
    %c2_91 = arith.constant 2 : index
    %c1_92 = arith.constant 1 : index
    %c0_93 = arith.constant 0 : index
    %67 = vector.load %arg9[%c2_91, %c1_92, %c0_93] : memref<18x18x4xf32, #tpu.memory_space<vmem>>, vector<16x16x4xf32>
    %68 = vector.shape_cast %67 : vector<16x16x4xf32> to vector<256x4xf32>
    %c0_94 = arith.constant 0 : index
    %c0_95 = arith.constant 0 : index
    %69 = vector.load %arg10[%c0_94, %c0_95] : memref<256x128xf32, #tpu.memory_space<vmem>>, vector<256x128xf32>
    %c7 = arith.constant 7 : index
    %c0_96 = arith.constant 0 : index
    %c0_97 = arith.constant 0 : index
    %70 = vector.load %arg5[%c7, %c0_96, %c0_97] : memref<9x4x128xf32, #tpu.memory_space<vmem>>, vector<1x4x128xf32>
    %71 = vector.shape_cast %70 : vector<1x4x128xf32> to vector<4x128xf32>
    %cst_98 = arith.constant dense<0.000000e+00> : vector<256x128xf32>
    %72 = tpu.matmul %68, %71, %cst_98 {dimension_numbers = #tpu.dot_dimension_numbers<[1], [0], [0], [1], [0, 0, 1, 1], [], []>} : vector<256x4xf32>, vector<4x128xf32>, vector<256x128xf32> -> vector<256x128xf32>
    %73 = arith.addf %69, %72 : vector<256x128xf32>
    %c0_99 = arith.constant 0 : index
    %c0_100 = arith.constant 0 : index
    %74 = vector.load %arg10[%c0_99, %c0_100] : memref<256x128xf32, #tpu.memory_space<vmem>>, vector<256x128xf32>
    tpu.vector_store %arg10[%c0_99, %c0_100], %73 {strides = array<i32>} : memref<256x128xf32, #tpu.memory_space<vmem>>, vector<256x128xf32>,
    %c2_101 = arith.constant 2 : index
    %c2_102 = arith.constant 2 : index
    %c0_103 = arith.constant 0 : index
    %75 = vector.load %arg9[%c2_101, %c2_102, %c0_103] : memref<18x18x4xf32, #tpu.memory_space<vmem>>, vector<16x16x4xf32>
    %76 = vector.shape_cast %75 : vector<16x16x4xf32> to vector<256x4xf32>
    %c0_104 = arith.constant 0 : index
    %c0_105 = arith.constant 0 : index
    %77 = vector.load %arg10[%c0_104, %c0_105] : memref<256x128xf32, #tpu.memory_space<vmem>>, vector<256x128xf32>
    %c8 = arith.constant 8 : index
    %c0_106 = arith.constant 0 : index
    %c0_107 = arith.constant 0 : index
    %78 = vector.load %arg5[%c8, %c0_106, %c0_107] : memref<9x4x128xf32, #tpu.memory_space<vmem>>, vector<1x4x128xf32>
    %79 = vector.shape_cast %78 : vector<1x4x128xf32> to vector<4x128xf32>
    %cst_108 = arith.constant dense<0.000000e+00> : vector<256x128xf32>
    %80 = tpu.matmul %76, %79, %cst_108 {dimension_numbers = #tpu.dot_dimension_numbers<[1], [0], [0], [1], [0, 0, 1, 1], [], []>} : vector<256x4xf32>, vector<4x128xf32>, vector<256x128xf32> -> vector<256x128xf32>
    %81 = arith.addf %77, %80 : vector<256x128xf32>
    %c0_109 = arith.constant 0 : index
    %c0_110 = arith.constant 0 : index
    %82 = vector.load %arg10[%c0_109, %c0_110] : memref<256x128xf32, #tpu.memory_space<vmem>>, vector<256x128xf32>
    tpu.vector_store %arg10[%c0_109, %c0_110], %81 {strides = array<i32>} : memref<256x128xf32, #tpu.memory_space<vmem>>, vector<256x128xf32>,
    %c0_111 = arith.constant 0 : index
    %c0_112 = arith.constant 0 : index
    %83 = vector.load %arg10[%c0_111, %c0_112] : memref<256x128xf32, #tpu.memory_space<vmem>>, vector<256x128xf32>
    %c0_113 = arith.constant 0 : index
    %c0_114 = arith.constant 0 : index
    %84 = vector.load %arg6[%c0_113, %c0_114] : memref<1x128xf32, #tpu.memory_space<vmem>>, vector<1x128xf32>
    %85 = vector.broadcast %84 : vector<1x128xf32> to vector<256x128xf32>
    %86 = arith.mulf %83, %85 : vector<256x128xf32>
    %c0_115 = arith.constant 0 : index
    %c0_116 = arith.constant 0 : index
    %87 = vector.load %arg7[%c0_115, %c0_116] : memref<1x128xf32, #tpu.memory_space<vmem>>, vector<1x128xf32>
    %88 = vector.broadcast %87 : vector<1x128xf32> to vector<256x128xf32>
    %89 = arith.addf %86, %88 : vector<256x128xf32>
    %cst_117 = arith.constant 0.000000e+00 : f32
    %90 = vector.broadcast %cst_117 : f32 to vector<256x128xf32>
    %91 = arith.cmpf ogt, %89, %90 : vector<256x128xf32>
    %cst_118 = arith.constant 0.00999999977 : f32
    %92 = vector.broadcast %cst_118 : f32 to vector<256x128xf32>
    %93 = arith.mulf %92, %89 : vector<256x128xf32>
    %94 = arith.select %91, %89, %93 : vector<256x128xi1>, vector<256x128xf32>
    %95 = vector.shape_cast %94 : vector<256x128xf32> to vector<16x16x128xf32>
    %c0_119 = arith.constant 0 : index
    %c0_120 = arith.constant 0 : index
    %c0_121 = arith.constant 0 : index
    %c0_122 = arith.constant 0 : index
    %96 = vector.load %arg8[%c0_119, %c0_120, %c0_121, %c0_122] : memref<1x16x16x128xf32, #tpu.memory_space<vmem>>, vector<1x16x16x128xf32>
    %97 = vector.shape_cast %96 : vector<1x16x16x128xf32> to vector<16x16x128xf32>
    %98 = vector.shape_cast %95 : vector<16x16x128xf32> to vector<1x16x16x128xf32>
    tpu.vector_store %arg8[%c0_119, %c0_120, %c0_121, %c0_122], %98 {strides = array<i32>} : memref<1x16x16x128xf32, #tpu.memory_space<vmem>>, vector<1x16x16x128xf32>,
    return
  }
  func.func @transform_0(%arg0: i32, %arg1: i32) -> (i32, i32, i32, i32) {
    %c0_i32 = arith.constant 0 : i32
    %c0_i32_0 = arith.constant 0 : i32
    %c0_i32_1 = arith.constant 0 : i32
    return %arg0, %arg1, %c0_i32, %c0_i32_0 : i32, i32, i32, i32
  }
  func.func @transform_1(%arg0: i32, %arg1: i32) -> (i32, i32, i32, i32) {
    %c16_i32 = arith.constant 16 : i32
    %0 = arith.muli %arg1, %c16_i32 : i32
    %c16_i32_0 = arith.constant 16 : i32
    %1 = arith.addi %0, %c16_i32_0 : i32
    %c0_i32 = arith.constant 0 : i32
    %c0_i32_1 = arith.constant 0 : i32
    %c0_i32_2 = arith.constant 0 : i32
    return %arg0, %1, %c0_i32, %c0_i32_1 : i32, i32, i32, i32
  }
  func.func @transform_2(%arg0: i32, %arg1: i32) -> (i32, i32, i32, i32) {
    %c16_i32 = arith.constant 16 : i32
    %0 = arith.muli %arg1, %c16_i32 : i32
    %c16_i32_0 = arith.constant 16 : i32
    %1 = arith.addi %0, %c16_i32_0 : i32
    %c1_i32 = arith.constant 1 : i32
    %2 = arith.addi %1, %c1_i32 : i32
    %c0_i32 = arith.constant 0 : i32
    %c0_i32_1 = arith.constant 0 : i32
    %c0_i32_2 = arith.constant 0 : i32
    return %arg0, %2, %c0_i32, %c0_i32_1 : i32, i32, i32, i32
  }
  func.func @transform_3(%arg0: i32, %arg1: i32) -> (i32, i32, i32) {
    %c0_i32 = arith.constant 0 : i32
    %c0_i32_0 = arith.constant 0 : i32
    %c0_i32_1 = arith.constant 0 : i32
    %c0_i32_2 = arith.constant 0 : i32
    return %c0_i32, %c0_i32_0, %c0_i32_1 : i32, i32, i32
  }
  func.func @transform_4(%arg0: i32, %arg1: i32) -> (i32, i32) {
    %c0_i32 = arith.constant 0 : i32
    %c0_i32_0 = arith.constant 0 : i32
    %c0_i32_1 = arith.constant 0 : i32
    return %c0_i32, %c0_i32_0 : i32, i32
  }
  func.func @transform_5(%arg0: i32, %arg1: i32) -> (i32, i32) {
    %c0_i32 = arith.constant 0 : i32
    %c0_i32_0 = arith.constant 0 : i32
    %c0_i32_1 = arith.constant 0 : i32
    return %c0_i32, %c0_i32_0 : i32, i32
  }
  func.func @transform_6(%arg0: i32, %arg1: i32) -> (i32, i32, i32, i32) {
    %c0_i32 = arith.constant 0 : i32
    %c0_i32_0 = arith.constant 0 : i32
    %c0_i32_1 = arith.constant 0 : i32
    return %arg0, %arg1, %c0_i32, %c0_i32_0 : i32, i32, i32, i32
  }
}

</mosaic_0001>

<bundles_post_ra>
// kernel: conv_block_forward.2
= control target key start
LH: loop header
LB: loop body
LE: loop exit
PB: predicated region body
PF: predicated region fallthrough
CT: control target
= control target key end

     0   :  { %s4198_s15 = smov 0   ;;  %s4200_s16 = smov 0   ;;  %s5293_s0 = inlined_call_operand.vmem [shape: f32[2,18,18,4], index: 0, kind: input, shape index: {}, may-alias: {0,1,2}]   ;;  %s5294_s1 = inlined_call_operand.vmem [shape: f32[2,18,18,4], index: 1, kind: input, shape index: {}, may-alias: {0,1,2}]   ;;  %s5295_s2 = inlined_call_operand.vmem [shape: f32[2,18,18,4], index: 2, kind: input, shape index: {}, may-alias: {0,1,2}]   ;;  %s5296_s3 = inlined_call_operand.vmem [shape: f32[9,4,128], index: 3, kind: input, shape index: {}]   ;;  %s5297_s4 = inlined_call_operand.vmem [shape: f32[2,128], index: 4, kind: output, shape index: {}]  }
   0x1   :  { %s4202_s17 = smov 0  }
   0x2 LB: > { %s26_s18 = sadd.s32 1, %s4166_s16  ;;  %p3800_p0 = scmp.ge.s32.totalorder %s4170_s17, 1  ;;  %s4170_s17 = sphi %s4202_s17, %s14_s17   ;;  %s4166_s16 = sphi %s4200_s16, %s5411_s16   ;;  %s4162_s15 = sphi %s4198_s15, %s5410_s15  }
   0x3   : > { %p28_p1 = scmp.ge.s32.totalorder %s26_s18, 2  ;;  %p235_p2 = scmp.lt.s32.totalorder %s4170_s17, 3 }
   0x5   : > { %s5413_s18 = smov (%p28_p1, %s26_s18), 0  ;;  %p236_p3 = pnand %p3800_p0, %p235_p2 }
   0x7   : > { %239 = sbr.rel (%p236_p3) target bundleno = 757 (0x2f5), region = 36 }
   0xc   : > { %p294_p4 = scmp.lt.s32.totalorder %s4162_s15, 1  ;;  %p335_p5 = scmp.eq.s32.totalorder %s4162_s15, 0 }
   0xd   : > { %v4172_v0 = vmov (%p335_p5), 0.0  }
   0xe   : > { %s5415_s15 = smov (!%p294_p4, %s4162_s15), 1  ;;  %341 = vst [vmem:[%s5297_s4] sm:$0x3] (%p335_p5), %v4172_v0 }
   0xf   : > { %s4120_s19 = smul.u32 432, %s5415_s15 }
  0x10   : > { %340 = sbr.rel (!%p335_p5) target bundleno = 21 (0x15), region = 40 }
  0x11   : > { %s4219_s22 = scalar_lea.vmem %s5293_s0, %s4120_s19  ;;  %s4113_s23 = sadd.s32 384, %s4120_s19 }
  0x12   : > { %s4224_s26 = scalar_lea.vmem %s5294_s1, %s4113_s23  ;;  %s4115_s27 = sadd.s32 408, %s4120_s19 }
  0x13   : > { %s4229_s30 = scalar_lea.vmem %s5295_s2, %s4115_s27 }
  0x15 PF: > { %v550_v1 = vld [vmem:[%s5296_s3] sm:$0xf]  ;;  %vm647_vm0 = vcmask 1043456   ;;  %vm390_vm1 = vcmask 31744   ;;  %v3872_v4 = vld [vmem:[%s5296_s3 + $0x8] sm:$0xf] }
  0x16   : > { %v354_v2 = vld [vmem:[%s4219_s22 + $0x60] sm:$0xff]  ;;  %4117 = vmatpush.msk.msra.mxu1 %vm647_vm0, %v550_v1  ;;  %4118 = vmatpush.msk.msra.mxu2 %vm647_vm0, %v550_v1  ;;  %v3906_v6 = vld [vmem:[%s5296_s3 + $0xc] sm:$0xf]  ;;  %v3940_v11 = vld [vmem:[%s5296_s3 + $0x10] sm:$0xf]  ;;  %vm393_vm2 = vcmask 25600  }
  0x17   : > { %v366_v3 = vld [vmem:[%s4219_s22 + $0xc0] sm:$0xff]  ;;  %404 = vst.msk [vmem:[#allocation2 + $0x60] sm:$0xff] %vm390_vm1, %v354_v2  ;;  %4119 = vmatpush.msk.msra.mxu3 %vm647_vm0, %v550_v1  ;;  %v355_v8 = vld [vmem:[%s4219_s22 + $0x68] sm:$0xff]  ;;  %3805 = vmatpush.msk.msra.mxu0 %vm647_vm0, %v550_v1  ;;  %v357_v13 = vld [vmem:[%s4219_s22 + $0x78] sm:$0xff] }
  0x18   : > { %v378_v5 = vld [vmem:[%s4219_s22 + $0x120] sm:$0xff]  ;;  %416 = vst.msk [vmem:[#allocation2 + $0xc0] sm:$0xff] %vm390_vm1, %v366_v3  ;;  %3873 = vmatpush.msk.msrb.mxu2 %vm647_vm0, %v3872_v4  ;;  %v367_v9 = vld [vmem:[%s4219_s22 + $0xc8] sm:$0xff]  ;;  %v369_v14 = vld [vmem:[%s4219_s22 + $0xd8] sm:$0xff] }
  0x19   : > { %v3838_v7 = vld [vmem:[%s5296_s3 + $0x4] sm:$0xf]  ;;  %428 = vst.msk [vmem:[#allocation2 + $0x120] sm:$0xff] %vm390_vm1, %v378_v5  ;;  %3907 = vmatpush.msk.msrb.mxu3 %vm647_vm0, %v3906_v6  ;;  %v379_v12 = vld [vmem:[%s4219_s22 + $0x128] sm:$0xff]  ;;  %3941 = vmatpush.msk.msrb.mxu0 %vm647_vm0, %v3940_v11  ;;  %v381_v17 = vld [vmem:[%s4219_s22 + $0x138] sm:$0xff] }
  0x1a   : > { %3839 = vmatpush.msk.msrb.mxu1 %vm647_vm0, %v3838_v7  ;;  %v342_v10 = vld [vmem:[%s4219_s22] sm:$0xff]  ;;  %405 = vst.msk [vmem:[#allocation2 + $0x68] sm:$0xff] %vm390_vm1, %v355_v8  ;;  %v343_v15 = vld [vmem:[%s4219_s22 + $0x8] sm:$0xff]  ;;  %v345_v22 = vld [vmem:[%s4219_s22 + $0x18] sm:$0xff] }
  0x1b   : > { %417 = vst.msk [vmem:[#allocation2 + $0xc8] sm:$0xff] %vm390_vm1, %v367_v9  ;;  %v358_v19 = vld [vmem:[%s4219_s22 + $0x80] sm:$0xff]  ;;  %v360_v25 = vld [vmem:[%s4219_s22 + $0x90] sm:$0xff]  ;;  %v361_v32 = vld [vmem:[%s4219_s22 + $0x98] sm:$0xff] }
  0x1c   : > { %391 = vst.msk [vmem:[#allocation2] sm:$0xff] %vm390_vm1, %v342_v10  ;;  %v370_v21 = vld [vmem:[%s4219_s22 + $0xe0] sm:$0xff]  ;;  %v372_v27 = vld [vmem:[%s4219_s22 + $0xf0] sm:$0xff]  ;;  %v373_v33 = vld [vmem:[%s4219_s22 + $0xf8] sm:$0xff] }
  0x1d   : > { %429 = vst.msk [vmem:[#allocation2 + $0x128] sm:$0xff] %vm390_vm1, %v379_v12  ;;  %v382_v23 = vld [vmem:[%s4219_s22 + $0x140] sm:$0xff]  ;;  %v384_v31 = vld [vmem:[%s4219_s22 + $0x150] sm:$0xff]  ;;  %v385_v36 = vld [vmem:[%s4219_s22 + $0x158] sm:$0xff] }
  0x1e   : > { %v4274_v16 = vld [vmem:[#allocation2 + $0x60] sm:$0xff]  ;;  %407 = vst.msk [vmem:[#allocation2 + $0x78] sm:$0xff] %vm390_vm1, %v357_v13  ;;  %v348_v35 = vld [vmem:[%s4219_s22 + $0x30] sm:$0xff]  ;;  %v363_v37 = vld [vmem:[%s4219_s22 + $0xa8] sm:$0xff] }
  0x1f   : > { %3814 = vmatmul.msk.f32.vlgmr.msra.gmra.mxu1 %vm390_vm1, %v4274_v16  ;;  %v4280_v18 = vld [vmem:[#allocation2 + $0xc0] sm:$0xff]  ;;  %419 = vst.msk [vmem:[#allocation2 + $0xd8] sm:$0xff] %vm390_vm1, %v369_v14  ;;  %v375_v39 = vld [vmem:[%s4219_s22 + $0x108] sm:$0xff]  ;;  %v349_v41 = vld [vmem:[%s4219_s22 + $0x38] sm:$0xff] }
  0x20   : > { %3822 = vmatmul.msk.f32.vlgmr.msra.gmra.mxu2 %vm390_vm1, %v4280_v18  ;;  %v4286_v20 = vld [vmem:[#allocation2 + $0x120] sm:$0xff]  ;;  %392 = vst.msk [vmem:[#allocation2 + $0x8] sm:$0xff] %vm390_vm1, %v343_v15  ;;  %v387_v43 = vld [vmem:[%s4219_s22 + $0x168] sm:$0xff]  ;;  %v364_v44 = vld [vmem:[%s4219_s22 + $0xb0] sm:$0xff] }
  0x21   : > { %3830 = vmatmul.msk.f32.vlgmr.msra.gmra.mxu3 %vm390_vm1, %v4286_v20  ;;  %431 = vst.msk [vmem:[#allocation2 + $0x138] sm:$0xff] %vm390_vm1, %v381_v17  ;;  %v4298_v26 = vld [vmem:[#allocation2 + $0x68] sm:$0xff]  ;;  %v346_v29 = vld [vmem:[%s4219_s22 + $0x20] sm:$0xff]  ;;  %v376_v45 = vld [vmem:[%s4219_s22 + $0x110] sm:$0xff] }
  0x22   : > { %408 = vst.msk [vmem:[#allocation2 + $0x80] sm:$0xff] %vm390_vm1, %v358_v19  ;;  %v4303_v28 = vld [vmem:[#allocation2 + $0xc8] sm:$0xff]  ;;  %v388_v48 = vld [vmem:[%s4219_s22 + $0x170] sm:$0xff]  ;;  %v4008_v58 = vld [vmem:[%s5296_s3 + $0x18] sm:$0xf] }
  0x23   : > { %v486_v24 = vld [vmem:[#allocation2] sm:$0xff]  ;;  %420 = vst.msk [vmem:[#allocation2 + $0xe0] sm:$0xff] %vm390_vm1, %v370_v21  ;;  %v351_v47 = vld [vmem:[%s4219_s22 + $0x48] sm:$0xff]  ;;  %v352_v53 = vld [vmem:[%s4219_s22 + $0x50] sm:$0xff]  ;;  %4009 = vmatpush.msk.msra.mxu2 %vm647_vm0, %v4008_v58 }
  0x24   : > { %3806 = vmatmul.msk.f32.vlgmr.msra.gmra.mxu0 %vm390_vm1, %v486_v24  ;;  %395 = vst.msk [vmem:[#allocation2 + $0x18] sm:$0xff] %vm390_vm1, %v345_v22  ;;  %v4307_v30 = vld [vmem:[#allocation2 + $0x128] sm:$0xff]  ;;  %v344_v57 = vld [vmem:[%s4219_s22 + $0x10] sm:$0x3]  ;;  %v4042_v60 = vld [vmem:[%s5296_s3 + $0x1c] sm:$0xf] }
  0x25   : > { %432 = vst.msk [vmem:[#allocation2 + $0x140] sm:$0xff] %vm390_vm1, %v382_v23  ;;  %v4327_v38 = vld [vmem:[#allocation2 + $0x78] sm:$0xff]  ;;  %v3974_v61 = vld [vmem:[%s5296_s3 + $0x14] sm:$0xf]  ;;  %4043 = vmatpush.msk.msra.mxu3 %vm647_vm0, %v4042_v60  ;;  %v4076_v2 = vld [vmem:[%s5296_s3 + $0x20] sm:$0xf] }
  0x26   : > { %410 = vst.msk [vmem:[#allocation2 + $0x90] sm:$0xff] %vm390_vm1, %v360_v25  ;;  %v4332_v40 = vld [vmem:[#allocation2 + $0xd8] sm:$0xff]  ;;  %3975 = vmatpush.msk.msra.mxu1 %vm647_vm0, %v3974_v61  ;;  %v347_v3 = vld [vmem:[%s4219_s22 + $0x28] sm:$0x3]  ;;  %4077 = vmatpush.msk.msra.mxu0 %vm647_vm0, %v4076_v2  ;;  %v350_v12 = vld [vmem:[%s4219_s22 + $0x40] sm:$0x3] }
  0x27   : > { %3815 = vmatmul.msk.f32.gmra.mxu1 %vm390_vm1, %v4298_v26  ;;  %422 = vst.msk [vmem:[#allocation2 + $0xf0] sm:$0xff] %vm390_vm1, %v372_v27  ;;  %v487_v34 = vld [vmem:[#allocation2 + $0x8] sm:$0xff]  ;;  %v353_v22 = vld [vmem:[%s4219_s22 + $0x58] sm:$0x3] }
  0x28   : > { %3823 = vmatmul.msk.f32.gmra.mxu2 %vm390_vm1, %v4303_v28  ;;  %396 = vst.msk [vmem:[#allocation2 + $0x20] sm:$0xff] %vm390_vm1, %v346_v29  ;;  %v4336_v42 = vld [vmem:[#allocation2 + $0x138] sm:$0xff]  ;;  %v828_v13 = vld [vmem:[#allocation2 + $0x1] sm:$0xff]  ;;  %v356_v29 = vld [vmem:[%s4219_s22 + $0x70] sm:$0x3] }
  0x29   : > { %3831 = vmatmul.msk.f32.gmra.mxu3 %vm390_vm1, %v4307_v30  ;;  %434 = vst.msk [vmem:[#allocation2 + $0x150] sm:$0xff] %vm390_vm1, %v384_v31  ;;  %v4357_v49 = vld [vmem:[#allocation2 + $0x80] sm:$0xff] }
  0x2a   : > { %411 = vst.msk [vmem:[#allocation2 + $0x98] sm:$0xff] %vm390_vm1, %v361_v32  ;;  %v4362_v50 = vld [vmem:[#allocation2 + $0xe0] sm:$0xff] }
  0x2b   : > { %423 = vst.msk [vmem:[#allocation2 + $0xf8] sm:$0xff] %vm390_vm1, %v373_v33  ;;  %v4350_v46 = vld [vmem:[#allocation2 + $0x18] sm:$0xff]  ;;  %v1170_v14 = vld [vmem:[#allocation2 + $0x2] sm:$0xff] }
  0x2c   : > { %3807 = vmatmul.msk.f32.gmra.mxu0 %vm390_vm1, %v487_v34  ;;  %398 = vst.msk [vmem:[#allocation2 + $0x30] sm:$0xff] %vm390_vm1, %v348_v35  ;;  %v4365_v51 = vld [vmem:[#allocation2 + $0x140] sm:$0xff]  ;;  %v359_v35 = vld [vmem:[%s4219_s22 + $0x88] sm:$0x3] }
  0x2d   : > { %435 = vst.msk [vmem:[#allocation2 + $0x158] sm:$0xff] %vm390_vm1, %v385_v36  ;;  %v4375_v54 = vld [vmem:[#allocation2 + $0x90] sm:$0xff]  ;;  %v4593_v2 = vld [vmem:[#allocation2 + $0x7a] sm:$0xff] }
  0x2e   : > { %413 = vst.msk [vmem:[#allocation2 + $0xa8] sm:$0xff] %vm390_vm1, %v363_v37  ;;  %v4378_v55 = vld [vmem:[#allocation2 + $0xf0] sm:$0xff]  ;;  %v4531_v37 = vld [vmem:[#allocation2 + $0x61] sm:$0xff] }
  0x2f   : > { %3816 = vmatmul.msk.f32.gmra.mxu1 %vm390_vm1, %v4327_v38  ;;  %425 = vst.msk [vmem:[#allocation2 + $0x108] sm:$0xff] %vm390_vm1, %v375_v39  ;;  %v489_v52 = vld [vmem:[#allocation2 + $0x20] sm:$0xff] }
  0x30   : > { %3824 = vmatmul.msk.f32.gmra.mxu2 %vm390_vm1, %v4332_v40  ;;  %399 = vst.msk [vmem:[#allocation2 + $0x38] sm:$0xff] %vm390_vm1, %v349_v41  ;;  %v4380_v56 = vld [vmem:[#allocation2 + $0x150] sm:$0xff]  ;;  %v1855_v15 = vld [vmem:[#allocation2 + $0x19] sm:$0xff] }
  0x31   : > { %3832 = vmatmul.msk.f32.gmra.mxu3 %vm390_vm1, %v4336_v42  ;;  %437 = vst.msk [vmem:[#allocation2 + $0x168] sm:$0xff] %vm390_vm1, %v387_v43  ;;  %v4404_v62 = vld [vmem:[#allocation2 + $0x98] sm:$0xff]  ;;  %v362_v43 = vld [vmem:[%s4219_s22 + $0xa0] sm:$0x3] }
  0x32   : > { %414 = vst.msk [vmem:[#allocation2 + $0xb0] sm:$0xff] %vm390_vm1, %v364_v44  ;;  %v4408_v63 = vld [vmem:[#allocation2 + $0xf8] sm:$0xff]  ;;  %v4551_v44 = vld [vmem:[#allocation2 + $0x62] sm:$0xff] }
  0x33   : > { %426 = vst.msk [vmem:[#allocation2 + $0x110] sm:$0xff] %vm390_vm1, %v376_v45  ;;  %v4393_v59 = vld [vmem:[#allocation2 + $0x30] sm:$0xff]  ;;  %v4473_v23 = vld [vmem:[#allocation2 + $0x1a] sm:$0xff] }
  0x34   : > { %3808 = vmatmul.msk.f32.gmra.mxu0 %vm390_vm1, %v4350_v46  ;;  %401 = vst.msk [vmem:[#allocation2 + $0x48] sm:$0xff] %vm390_vm1, %v351_v47  ;;  %v4410_v0 = vld [vmem:[#allocation2 + $0x158] sm:$0xff] }
  0x35   : > { %438 = vst.msk [vmem:[#allocation2 + $0x170] sm:$0xff] %vm390_vm1, %v388_v48  ;;  %v4426_v4 = vld [vmem:[#allocation2 + $0xa8] sm:$0xff]  ;;  %v4561_v45 = vld [vmem:[#allocation2 + $0x79] sm:$0xff] }
  0x36   : > { %402 = vst.msk [vmem:[#allocation2 + $0x50] sm:$0xff] %vm390_vm1, %v352_v53  ;;  %v4430_v5 = vld [vmem:[#allocation2 + $0x108] sm:$0xff] }
  0x37   : > { %3817 = vmatmul.msk.f32.gmra.mxu1 %vm390_vm1, %v4357_v49  ;;  %394 = vst.msk [vmem:[#allocation2 + $0x10] sm:$0x3] %vm393_vm2, %v344_v57  ;;  %v4418_v1 = vld [vmem:[#allocation2 + $0x38] sm:$0xff] }
  0x38   : > { %3825 = vmatmul.msk.f32.gmra.mxu2 %vm390_vm1, %v4362_v50  ;;  %397 = vst.msk [vmem:[#allocation2 + $0x28] sm:$0x3] %vm393_vm2, %v347_v3  ;;  %v4432_v6 = vld [vmem:[#allocation2 + $0x168] sm:$0xff]  ;;  %v4480_v24 = vld [vmem:[#allocation2 + $0x31] sm:$0xff] }
  0x39   : > { %3833 = vmatmul.msk.f32.gmra.mxu3 %vm390_vm1, %v4365_v51  ;;  %v4442_v8 = vld [vmem:[#allocation2 + $0xb0] sm:$0xff]  ;;  %400 = vst.msk [vmem:[#allocation2 + $0x40] sm:$0x3] %vm393_vm2, %v350_v12  ;;  %v365_v57 = vld [vmem:[%s4219_s22 + $0xb8] sm:$0x3] }
  0x3a   : > { %v4446_v9 = vld [vmem:[#allocation2 + $0x110] sm:$0xff]  ;;  %403 = vst.msk [vmem:[#allocation2 + $0x58] sm:$0x3] %vm393_vm2, %v353_v22 }
  0x3b   : > { %v4440_v7 = vld [vmem:[#allocation2 + $0x48] sm:$0xff]  ;;  %406 = vst.msk [vmem:[#allocation2 + $0x70] sm:$0x3] %vm393_vm2, %v356_v29  ;;  %v4497_v31 = vld [vmem:[#allocation2 + $0x32] sm:$0xff] }
  0x3c   : > { %3809 = vmatmul.msk.f32.gmra.mxu0 %vm390_vm1, %v489_v52  ;;  %v4448_v10 = vld [vmem:[#allocation2 + $0x170] sm:$0xff]  ;;  %409 = vst.msk [vmem:[#allocation2 + $0x88] sm:$0x3] %vm393_vm2, %v359_v35 }
  0x3d   : > { %v4456_v11 = vld [vmem:[#allocation2 + $0x50] sm:$0xff]  ;;  %412 = vst.msk [vmem:[#allocation2 + $0xa0] sm:$0x3] %vm393_vm2, %v362_v43 }
  0x3e   : > { %v829_v17 = vld [vmem:[#allocation2 + $0x9] sm:$0xff]  ;;  %5324 = vst [vmem:[#allocation4_spill] sm:$0xff] %v4561_v45  ;;  %v4603_v3 = vld [vmem:[#allocation2 + $0x91] sm:$0xff] }
  0x3f   : > { %3818 = vmatmul.msk.f32.gmra.mxu1 %vm390_vm1, %v4375_v54  ;;  %v1171_v19 = vld [vmem:[#allocation2 + $0xa] sm:$0xff]  ;;  %v1856_v21 = vld [vmem:[#allocation2 + $0x21] sm:$0xff]  ;;  %415 = vst.msk [vmem:[#allocation2 + $0xb8] sm:$0x3] %vm393_vm2, %v365_v57  ;;  %v4635_v35 = vld [vmem:[#allocation2 + $0x92] sm:$0xff] }
  0x40   : > { %3826 = vmatmul.msk.f32.gmra.mxu2 %vm390_vm1, %v4378_v55  ;;  %v4484_v25 = vld [vmem:[#allocation2 + $0x22] sm:$0xff]  ;;  %v4491_v27 = vld [vmem:[#allocation2 + $0x39] sm:$0xff]  ;;  %v4523_v36 = vld [vmem:[#allocation2 + $0x4a] sm:$0xff]  ;;  %5329 = vst [vmem:[#allocation9_spill] sm:$0xff] %v4593_v2 }
  0x41   : > { %3834 = vmatmul.msk.f32.gmra.mxu3 %vm390_vm1, %v4380_v56  ;;  %v4505_v32 = vld [vmem:[#allocation2 + $0x49] sm:$0xff]  ;;  %v4509_v33 = vld [vmem:[#allocation2 + $0x3a] sm:$0xff]  ;;  %v4517_v34 = vld [vmem:[#allocation2 + $0x51] sm:$0xff]  ;;  %5330 = vst [vmem:[#allocation10_spill] sm:$0xff] %v4603_v3 }
  0x42   : > { %v4535_v39 = vld [vmem:[#allocation2 + $0x52] sm:$0xff]  ;;  %v4543_v41 = vld [vmem:[#allocation2 + $0x69] sm:$0xff]  ;;  %5335 = vst [vmem:[#allocation15_spill] sm:$0xff] %v4635_v35 }
  0x43   : > { %v4581_v53 = vld [vmem:[#allocation2 + $0x81] sm:$0xff]  ;;  %v4645_v43 = vld [vmem:[#allocation2 + $0xa9] sm:$0xff] }
  0x44   : > { %3810 = vmatmul.msk.f32.gmra.mxu0 %vm390_vm1, %v4393_v59  ;;  %5327 = vst [vmem:[#allocation7_spill] sm:$0xff] %v4581_v53 }
  0x45   : > { %5336 = vst [vmem:[#allocation16_spill] sm:$0xff] %v4645_v43 }
  0x47   : > { %3819 = vmatmul.msk.f32.gmra.mxu1 %vm390_vm1, %v4404_v62 }
  0x48   : > { %3827 = vmatmul.msk.f32.gmra.mxu2 %vm390_vm1, %v4408_v63 }
  0x49   : > { %3835 = vmatmul.msk.f32.gmra.mxu3 %vm390_vm1, %v4410_v0 }
  0x4c   : > { %3811 = vmatmul.msk.f32.gmra.mxu0 %vm390_vm1, %v4418_v1 }
  0x4f   : > { %3820 = vmatmul.msk.f32.gmra.mxu1 %vm390_vm1, %v4426_v4 }
  0x50   : > { %3828 = vmatmul.msk.f32.gmra.mxu2 %vm390_vm1, %v4430_v5 }
  0x51   : > { %3836 = vmatmul.msk.f32.gmra.mxu3 %vm390_vm1, %v4432_v6 }
  0x54   : > { %3812 = vmatmul.msk.f32.gmra.mxu0 %vm390_vm1, %v4440_v7 }
  0x57   : > { %3821 = vmatmul.msk.f32.gmra.mxu1 %vm390_vm1, %v4442_v8 }
  0x58   : > { %3829 = vmatmul.msk.f32.gmra.mxu2 %vm390_vm1, %v4446_v9 }
  0x59   : > { %3837 = vmatmul.msk.f32.gmra.mxu3 %vm390_vm1, %v4448_v10 }
  0x5c   : > { %3813 = vmatmul.msk.f32.gmra.mxu0 %vm390_vm1, %v4456_v11 }
  0x5f   : > { %3840 = vmatmul.msk.f32.vlgmr.msrb.gmra.mxu1 %vm390_vm1, %v828_v13 }
  0x60   : > { %3874 = vmatmul.msk.f32.vlgmr.msrb.gmra.mxu2 %vm390_vm1, %v1170_v14 }
  0x61   : > { %3908 = vmatmul.msk.f32.vlgmr.msrb.gmra.mxu3 %vm390_vm1, %v4350_v46 }
  0x64   : > { %3942 = vmatmul.msk.f32.vlgmr.msrb.gmra.mxu0 %vm390_vm1, %v1855_v15 }
  0x67   : > { %3841 = vmatmul.msk.f32.gmra.mxu1 %vm390_vm1, %v829_v17  ;;  %v4623_v17 = vld [vmem:[#allocation2 + $0x99] sm:$0xff] }
  0x68   : > { %3875 = vmatmul.msk.f32.gmra.mxu2 %vm390_vm1, %v1171_v19  ;;  %5333 = vst [vmem:[#allocation13_spill] sm:$0xff] %v4623_v17  ;;  %v368_v19 = vld [vmem:[%s4219_s22 + $0xd0] sm:$0x3] }
  0x69   : > { %3909 = vmatmul.msk.f32.gmra.mxu3 %vm390_vm1, %v489_v52  ;;  %v4571_v52 = vld [vmem:[#allocation2 + $0x6a] sm:$0xff]  ;;  %418 = vst.msk [vmem:[#allocation2 + $0xd0] sm:$0x3] %vm393_vm2, %v368_v19 }
  0x6a   : > { %5326 = vst [vmem:[#allocation6_spill] sm:$0xff] %v4571_v52 }
  0x6c   : > { %3943 = vmatmul.msk.f32.gmra.mxu0 %vm390_vm1, %v1856_v21 }
  0x6f   : > { %3842 = vmatmul.msk.f32.gmra.mxu1 %vm390_vm1, %v1855_v15  ;;  %v4613_v15 = vld [vmem:[#allocation2 + $0x82] sm:$0xff] }
  0x70   : > { %3876 = vmatmul.msk.f32.gmra.mxu2 %vm390_vm1, %v4473_v23  ;;  %5332 = vst [vmem:[#allocation12_spill] sm:$0xff] %v4613_v15 }
  0x71   : > { %3910 = vmatmul.msk.f32.gmra.mxu3 %vm390_vm1, %v4393_v59 }
  0x74   : > { %3944 = vmatmul.msk.f32.gmra.mxu0 %vm390_vm1, %v4480_v24 }
  0x77   : > { %3843 = vmatmul.msk.f32.gmra.mxu1 %vm390_vm1, %v1856_v21 }
  0x78   : > { %3877 = vmatmul.msk.f32.gmra.mxu2 %vm390_vm1, %v4484_v25 }
  0x79   : > { %3911 = vmatmul.msk.f32.gmra.mxu3 %vm390_vm1, %v4418_v1 }
  0x7c   : > { %3945 = vmatmul.msk.f32.gmra.mxu0 %vm390_vm1, %v4491_v27 }
  0x7f   : > { %3844 = vmatmul.msk.f32.gmra.mxu1 %vm390_vm1, %v4480_v24 }
  0x80   : > { %3878 = vmatmul.msk.f32.gmra.mxu2 %vm390_vm1, %v4497_v31 }
  0x81   : > { %3912 = vmatmul.msk.f32.gmra.mxu3 %vm390_vm1, %v4440_v7 }
  0x84   : > { %3946 = vmatmul.msk.f32.gmra.mxu0 %vm390_vm1, %v4505_v32 }
  0x87   : > { %3845 = vmatmul.msk.f32.gmra.mxu1 %vm390_vm1, %v4491_v27 }
  0x88   : > { %3879 = vmatmul.msk.f32.gmra.mxu2 %vm390_vm1, %v4509_v33 }
  0x89   : > { %3913 = vmatmul.msk.f32.gmra.mxu3 %vm390_vm1, %v4456_v11 }
  0x8c   : > { %3947 = vmatmul.msk.f32.gmra.mxu0 %vm390_vm1, %v4517_v34 }
  0x8f   : > { %3846 = vmatmul.msk.f32.gmra.mxu1 %vm390_vm1, %v4505_v32 }
  0x90   : > { %3880 = vmatmul.msk.f32.gmra.mxu2 %vm390_vm1, %v4523_v36 }
  0x91   : > { %3914 = vmatmul.msk.f32.gmra.mxu3 %vm390_vm1, %v4274_v16 }
  0x94   : > { %3948 = vmatmul.msk.f32.gmra.mxu0 %vm390_vm1, %v4531_v37 }
  0x97   : > { %3847 = vmatmul.msk.f32.gmra.mxu1 %vm390_vm1, %v4517_v34 }
  0x98   : > { %3881 = vmatmul.msk.f32.gmra.mxu2 %vm390_vm1, %v4535_v39 }
  0x99   : > { %3915 = vmatmul.msk.f32.gmra.mxu3 %vm390_vm1, %v4298_v26 }
  0x9c   : > { %v4547_v16 = vpop.f32.mrf.mxu1  ;;  %3949 = vmatmul.msk.f32.gmra.mxu0 %vm390_vm1, %v4543_v41 }
  0x9f   : > { %3848 = vmatmul.msk.f32.gmra.mxu1 %vm390_vm1, %v4531_v37 }
  0xa0   : > { %3882 = vmatmul.msk.f32.gmra.mxu2 %vm390_vm1, %v4551_v44 }
  0xa1   : > { %3916 = vmatmul.msk.f32.gmra.mxu3 %vm390_vm1, %v4327_v38  ;;  %v4559_v26 = vpop.f32.mrf.mxu0 }
  0xa3   : > { %v4563_v46 = vpop.f32.mrf.mxu2 }
  0xa4   : > { %v4565_v47 = vpop.f32.mrf.mxu1  ;;  %v4567_v48 = vpop.f32.mrf.mxu3  ;;  %3950 = vmatmul.msk.f32.gmra.mxu0 %vm390_vm1, %v4561_v45 }
  0xa5   : > { %5325 = vst [vmem:[#allocation5_spill] sm:$0xff] %v4567_v48 }
  0xa7   : > { %3849 = vmatmul.msk.f32.gmra.mxu1 %vm390_vm1, %v4543_v41 }
  0xa8   : > { %3883 = vmatmul.msk.f32.gmra.mxu2 %vm390_vm1, %v4571_v52 }
  0xa9   : > { %3917 = vmatmul.msk.f32.gmra.mxu3 %vm390_vm1, %v4357_v49  ;;  %v4579_v38 = vpop.f32.mrf.mxu0 }
  0xab   : > { %v4585_v58 = vpop.f32.mrf.mxu2 }
  0xac   : > { %v4587_v60 = vpop.f32.mrf.mxu1  ;;  %v4589_v61 = vpop.f32.mrf.mxu3  ;;  %3951 = vmatmul.msk.f32.gmra.mxu0 %vm390_vm1, %v4581_v53 }
  0xad   : > { %5328 = vst [vmem:[#allocation8_spill] sm:$0xff] %v4589_v61  ;;  %v4665_v61 = vld [vmem:[#allocation2 + $0xb1] sm:$0xff] }
  0xae   : > { %5339 = vst [vmem:[#allocation19_spill] sm:$0xff] %v4665_v61 }
  0xaf   : > { %3850 = vmatmul.msk.f32.gmra.mxu1 %vm390_vm1, %v4561_v45 }
  0xb0   : > { %3884 = vmatmul.msk.f32.gmra.mxu2 %vm390_vm1, %v4593_v2 }
  0xb1   : > { %3918 = vmatmul.msk.f32.gmra.mxu3 %vm390_vm1, %v4375_v54  ;;  %v4601_v49 = vpop.f32.mrf.mxu0 }
  0xb3   : > { %v4605_v12 = vpop.f32.mrf.mxu2 }
  0xb4   : > { %v4607_v13 = vpop.f32.mrf.mxu1  ;;  %v4609_v14 = vpop.f32.mrf.mxu3  ;;  %3952 = vmatmul.msk.f32.gmra.mxu0 %vm390_vm1, %v4603_v3 }
  0xb5   : > { %5331 = vst [vmem:[#allocation11_spill] sm:$0xff] %v4609_v14  ;;  %v4655_v14 = vld [vmem:[#allocation2 + $0x9a] sm:$0xff] }
  0xb6   : > { %5338 = vst [vmem:[#allocation18_spill] sm:$0xff] %v4655_v14 }
  0xb7   : > { %3851 = vmatmul.msk.f32.gmra.mxu1 %vm390_vm1, %v4581_v53  ;;  %v374_v53 = vld [vmem:[%s4219_s22 + $0x100] sm:$0x3] }
  0xb8   : > { %3885 = vmatmul.msk.f32.gmra.mxu2 %vm390_vm1, %v4613_v15  ;;  %424 = vst.msk [vmem:[#allocation2 + $0x100] sm:$0x3] %vm393_vm2, %v374_v53  ;;  %v4725_v53 = vld [vmem:[#allocation2 + $0xd9] sm:$0xff] }
  0xb9   : > { %3919 = vmatmul.msk.f32.gmra.mxu3 %vm390_vm1, %v4404_v62  ;;  %v4621_v54 = vpop.f32.mrf.mxu0 }
  0xbb   : > { %v4627_v21 = vpop.f32.mrf.mxu2 }
  0xbc   : > { %v4629_v22 = vpop.f32.mrf.mxu1  ;;  %v4631_v29 = vpop.f32.mrf.mxu3  ;;  %3953 = vmatmul.msk.f32.gmra.mxu0 %vm390_vm1, %v4623_v17 }
  0xbd   : > { %5334 = vst [vmem:[#allocation14_spill] sm:$0xff] %v4631_v29 }
  0xbf   : > { %3852 = vmatmul.msk.f32.gmra.mxu1 %vm390_vm1, %v4603_v3 }
  0xc0   : > { %3886 = vmatmul.msk.f32.gmra.mxu2 %vm390_vm1, %v4635_v35  ;;  %v371_v35 = vld [vmem:[%s4219_s22 + $0xe8] sm:$0x3] }
  0xc1   : > { %3920 = vmatmul.msk.f32.gmra.mxu3 %vm390_vm1, %v4426_v4  ;;  %v4643_v62 = vpop.f32.mrf.mxu0  ;;  %421 = vst.msk [vmem:[#allocation2 + $0xe8] sm:$0x3] %vm393_vm2, %v371_v35  ;;  %v4687_v35 = vld [vmem:[#allocation2 + $0xc1] sm:$0xff] }
  0xc2   : > { %5343 = vst [vmem:[#allocation23_spill] sm:$0xff] %v4687_v35 }
  0xc3   : > { %v4647_v57 = vpop.f32.mrf.mxu2 }
  0xc4   : > { %v4649_v19 = vpop.f32.mrf.mxu1  ;;  %v4651_v29 = vpop.f32.mrf.mxu3  ;;  %3954 = vmatmul.msk.f32.gmra.mxu0 %vm390_vm1, %v4645_v43 }
  0xc5   : > { %5337 = vst [vmem:[#allocation17_spill] sm:$0xff] %v4651_v29 }
  0xc7   : > { %3853 = vmatmul.msk.f32.gmra.mxu1 %vm390_vm1, %v4623_v17 }
  0xc8   : > { %3887 = vmatmul.msk.f32.gmra.mxu2 %vm390_vm1, %v4655_v14  ;;  %v4677_v14 = vld [vmem:[#allocation2 + $0xaa] sm:$0xff] }
  0xc9   : > { %3921 = vmatmul.msk.f32.gmra.mxu3 %vm390_vm1, %v4442_v8  ;;  %v4663_v4 = vpop.f32.mrf.mxu0  ;;  %5342 = vst [vmem:[#allocation22_spill] sm:$0xff] %v4677_v14 }
  0xcb   : > { %v4669_v29 = vpop.f32.mrf.mxu2 }
  0xcc   : > { %5340 = vst [vmem:[#allocation20_spill] sm:$0xff] %v4669_v29  ;;  %v4671_v48 = vpop.f32.mrf.mxu1  ;;  %v4673_v3 = vpop.f32.mrf.mxu3  ;;  %3955 = vmatmul.msk.f32.gmra.mxu0 %vm390_vm1, %v4665_v61 }
  0xcd   : > { %5341 = vst [vmem:[#allocation21_spill] sm:$0xff] %v4673_v3 }
  0xcf   : > { %3854 = vmatmul.msk.f32.gmra.mxu1 %vm390_vm1, %v4645_v43  ;;  %v4697_v43 = vld [vmem:[#allocation2 + $0xb2] sm:$0xff] }
  0xd0   : > { %3888 = vmatmul.msk.f32.gmra.mxu2 %vm390_vm1, %v4677_v14  ;;  %5346 = vst [vmem:[#allocation26_spill] sm:$0xff] %v4697_v43  ;;  %v4707_v14 = vld [vmem:[#allocation2 + $0xc9] sm:$0xff] }
  0xd1   : > { %3922 = vmatmul.msk.f32.gmra.mxu3 %vm390_vm1, %v4280_v18  ;;  %v4685_v8 = vpop.f32.mrf.mxu0  ;;  %5347 = vst [vmem:[#allocation27_spill] sm:$0xff] %v4707_v14 }
  0xd3   : > { %v4689_v3 = vpop.f32.mrf.mxu2 }
  0xd4   : > { %5344 = vst [vmem:[#allocation24_spill] sm:$0xff] %v4689_v3  ;;  %v4691_v17 = vpop.f32.mrf.mxu1  ;;  %v4693_v15 = vpop.f32.mrf.mxu3  ;;  %3956 = vmatmul.msk.f32.gmra.mxu0 %vm390_vm1, %v4687_v35 }
  0xd5   : > { %5345 = vst [vmem:[#allocation25_spill] sm:$0xff] %v4693_v15 }
  0xd7   : > { %3855 = vmatmul.msk.f32.gmra.mxu1 %vm390_vm1, %v4665_v61  ;;  %v4717_v61 = vld [vmem:[#allocation2 + $0xc2] sm:$0xff] }
  0xd8   : > { %3889 = vmatmul.msk.f32.gmra.mxu2 %vm390_vm1, %v4697_v43  ;;  %5350 = vst [vmem:[#allocation30_spill] sm:$0xff] %v4717_v61 }
  0xd9   : > { %3923 = vmatmul.msk.f32.gmra.mxu3 %vm390_vm1, %v4303_v28  ;;  %v4705_v18 = vpop.f32.mrf.mxu0 }
  0xdb   : > { %v4711_v15 = vpop.f32.mrf.mxu2 }
  0xdc   : > { %5348 = vst [vmem:[#allocation28_spill] sm:$0xff] %v4711_v15  ;;  %v4713_v2 = vpop.f32.mrf.mxu3  ;;  %v1010_v3 = vpop.f32.mrf.mxu1  ;;  %3957 = vmatmul.msk.f32.gmra.mxu0 %vm390_vm1, %v4707_v14 }
  0xdd   : > { %5349 = vst [vmem:[#allocation29_spill] sm:$0xff] %v4713_v2  ;;  %v1106_v2 = vadd.f32 %v1010_v3, %v4559_v26  ;;  %v377_v3 = vld [vmem:[%s4219_s22 + $0x118] sm:$0x3] }
  0xde   : > { %427 = vst.msk [vmem:[#allocation2 + $0x118] sm:$0x3] %vm393_vm2, %v377_v3 }
  0xdf   : > { %3856 = vmatmul.msk.f32.gmra.mxu1 %vm390_vm1, %v4687_v35  ;;  %v4730_v35 = vld [vmem:[#allocation2 + $0xca] sm:$0xff] }
  0xe0   : > { %3890 = vmatmul.msk.f32.gmra.mxu2 %vm390_vm1, %v4717_v61 }
  0xe1   : > { %3924 = vmatmul.msk.f32.gmra.mxu3 %vm390_vm1, %v4332_v40  ;;  %v2037_v28 = vpop.f32.mrf.mxu0 }
  0xe3   : > { %v1352_v43 = vpop.f32.mrf.mxu2 }
  0xe4   : > { %v1448_v15 = vadd.f32 %v1352_v43, %v1106_v2  ;;  %v1013_v45 = vpop.f32.mrf.mxu1  ;;  %v1695_v52 = vpop.f32.mrf.mxu3  ;;  %3958 = vmatmul.msk.f32.gmra.mxu0 %vm390_vm1, %v4725_v53  ;;  %v4740_v2 = vld [vmem:[#allocation2 + $0xe1] sm:$0xff] }
  0xe5   : > { %v1107_v43 = vadd.f32 %v1013_v45, %v4579_v38  ;;  %v4757_v38 = vld [vmem:[#allocation2 + $0xf1] sm:$0xff] }
  0xe6   : > { %v1791_v29 = vadd.f32 %v1695_v52, %v1448_v15 }
  0xe7   : > { %3857 = vmatmul.msk.f32.gmra.mxu1 %vm390_vm1, %v4707_v14 }
  0xe8   : > { %v4734_v40 = vadd.f32 %v2037_v28, %v1791_v29  ;;  %3891 = vmatmul.msk.f32.gmra.mxu2 %vm390_vm1, %v4730_v35  ;;  %v4747_v29 = vld [vmem:[#allocation2 + $0xda] sm:$0xff] }
  0xe9   : > { %3925 = vmatmul.msk.f32.gmra.mxu3 %vm390_vm1, %v4362_v50  ;;  %v2040_v26 = vpop.f32.mrf.mxu0 }
  0xea   : > { %5351 = vst [vmem:[#allocation31_spill] sm:$0xff] %v4734_v40 }
  0xeb   : > { %v1355_v52 = vpop.f32.mrf.mxu2 }
  0xec   : > { %v1449_v15 = vadd.f32 %v1355_v52, %v1107_v43  ;;  %v1016_v61 = vpop.f32.mrf.mxu1  ;;  %v1698_v14 = vpop.f32.mrf.mxu3  ;;  %3959 = vmatmul.msk.f32.gmra.mxu0 %vm390_vm1, %v4740_v2 }
  0xed   : > { %v1108_v3 = vadd.f32 %v1016_v61, %v4601_v49  ;;  %v4772_v49 = vld [vmem:[#allocation2 + $0xf9] sm:$0xff] }
  0xee   : > { %v1792_v28 = vadd.f32 %v1698_v14, %v1449_v15 }
  0xef   : > { %3858 = vmatmul.msk.f32.gmra.mxu1 %vm390_vm1, %v4725_v53 }
  0xf0   : > { %v4751_v50 = vadd.f32 %v2040_v26, %v1792_v28  ;;  %3892 = vmatmul.msk.f32.gmra.mxu2 %vm390_vm1, %v4747_v29  ;;  %v4762_v26 = vld [vmem:[#allocation2 + $0xe2] sm:$0xff] }
  0xf1   : > { %3926 = vmatmul.msk.f32.gmra.mxu3 %vm390_vm1, %v4378_v55  ;;  %v2043_v45 = vpop.f32.mrf.mxu0 }
  0xf2   : > { %5352 = vst [vmem:[#allocation32_spill] sm:$0xff] %v4751_v50 }
  0xf3   : > { %v1358_v43 = vpop.f32.mrf.mxu2 }
  0xf4   : > { %v1450_v52 = vadd.f32 %v1358_v43, %v1108_v3  ;;  %v1019_v14 = vpop.f32.mrf.mxu1  ;;  %v1701_v15 = vpop.f32.mrf.mxu3  ;;  %3960 = vmatmul.msk.f32.gmra.mxu0 %vm390_vm1, %v4757_v38  ;;  %v380_v3 = vld [vmem:[%s4219_s22 + $0x130] sm:$0x3] }
  0xf5   : > { %v1109_v43 = vadd.f32 %v1019_v14, %v4621_v54  ;;  %430 = vst.msk [vmem:[#allocation2 + $0x130] sm:$0x3] %vm393_vm2, %v380_v3  ;;  %v4789_v14 = vld [vmem:[#allocation2 + $0x109] sm:$0xff] }
  0xf6   : > { %v1793_v28 = vadd.f32 %v1701_v15, %v1450_v52 }
  0xf7   : > { %3859 = vmatmul.msk.f32.gmra.mxu1 %vm390_vm1, %v4740_v2 }
  0xf8   : > { %v4766_v55 = vadd.f32 %v2043_v45, %v1793_v28  ;;  %3893 = vmatmul.msk.f32.gmra.mxu2 %vm390_vm1, %v4762_v26  ;;  %v4779_v45 = vld [vmem:[#allocation2 + $0xf2] sm:$0xff] }
  0xf9   : > { %3927 = vmatmul.msk.f32.gmra.mxu3 %vm390_vm1, %v4408_v63  ;;  %v2046_v61 = vpop.f32.mrf.mxu0 }
  0xfa   : > { %5353 = vst [vmem:[#allocation33_spill] sm:$0xff] %v4766_v55 }
  0xfb   : > { %v1361_v52 = vpop.f32.mrf.mxu2 }
  0xfc   : > { %v1451_v15 = vadd.f32 %v1361_v52, %v1109_v43  ;;  %v1022_v50 = vpop.f32.mrf.mxu1  ;;  %v1704_v40 = vpop.f32.mrf.mxu3  ;;  %3961 = vmatmul.msk.f32.gmra.mxu0 %vm390_vm1, %v4772_v49 }
  0xfd   : > { %v1110_v3 = vadd.f32 %v1022_v50, %v4643_v62  ;;  %v4804_v50 = vld [vmem:[#allocation2 + $0x111] sm:$0xff] }
  0xfe   : > { %v1794_v28 = vadd.f32 %v1704_v40, %v1451_v15 }
  0xff   : > { %3860 = vmatmul.msk.f32.gmra.mxu1 %vm390_vm1, %v4757_v38 }
 0x100   : > { %v4783_v63 = vadd.f32 %v2046_v61, %v1794_v28  ;;  %3894 = vmatmul.msk.f32.gmra.mxu2 %vm390_vm1, %v4779_v45  ;;  %v4794_v61 = vld [vmem:[#allocation2 + $0xfa] sm:$0xff] }
 0x101   : > { %3928 = vmatmul.msk.f32.gmra.mxu3 %vm390_vm1, %v4430_v5  ;;  %v2049_v54 = vpop.f32.mrf.mxu0 }
 0x102   : > { %5354 = vst [vmem:[#allocation34_spill] sm:$0xff] %v4783_v63 }
 0x103   : > { %v1364_v43 = vpop.f32.mrf.mxu2 }
 0x104   : > { %v1452_v52 = vadd.f32 %v1364_v43, %v1110_v3  ;;  %v1025_v40 = vpop.f32.mrf.mxu1  ;;  %v1707_v15 = vpop.f32.mrf.mxu3  ;;  %3962 = vmatmul.msk.f32.gmra.mxu0 %vm390_vm1, %v4789_v14  ;;  %v383_v3 = vld [vmem:[%s4219_s22 + $0x148] sm:$0x3] }
 0x105   : > { %v1111_v43 = vadd.f32 %v1025_v40, %v4663_v4  ;;  %433 = vst.msk [vmem:[#allocation2 + $0x148] sm:$0x3] %vm393_vm2, %v383_v3  ;;  %v4821_v40 = vld [vmem:[#allocation2 + $0x121] sm:$0xff] }
 0x106   : > { %v1795_v28 = vadd.f32 %v1707_v15, %v1452_v52 }
 0x107   : > { %3861 = vmatmul.msk.f32.gmra.mxu1 %vm390_vm1, %v4772_v49 }
 0x108   : > { %v4798_v5 = vadd.f32 %v2049_v54, %v1795_v28  ;;  %3895 = vmatmul.msk.f32.gmra.mxu2 %vm390_vm1, %v4794_v61  ;;  %v4811_v54 = vld [vmem:[#allocation2 + $0x10a] sm:$0xff] }
 0x109   : > { %3929 = vmatmul.msk.f32.gmra.mxu3 %vm390_vm1, %v4446_v9  ;;  %v2052_v62 = vpop.f32.mrf.mxu0 }
 0x10a   : > { %5355 = vst [vmem:[#allocation35_spill] sm:$0xff] %v4798_v5 }
 0x10b   : > { %v1367_v52 = vpop.f32.mrf.mxu2 }
 0x10c   : > { %v1453_v15 = vadd.f32 %v1367_v52, %v1111_v43  ;;  %v1028_v63 = vpop.f32.mrf.mxu1  ;;  %v1710_v55 = vpop.f32.mrf.mxu3  ;;  %3963 = vmatmul.msk.f32.gmra.mxu0 %vm390_vm1, %v4804_v50 }
 0x10d   : > { %v1112_v3 = vadd.f32 %v1028_v63, %v4685_v8  ;;  %v4836_v63 = vld [vmem:[#allocation2 + $0x129] sm:$0xff] }
 0x10e   : > { %v1796_v28 = vadd.f32 %v1710_v55, %v1453_v15 }
 0x10f   : > { %3862 = vmatmul.msk.f32.gmra.mxu1 %vm390_vm1, %v4789_v14 }
 0x110   : > { %v4815_v9 = vadd.f32 %v2052_v62, %v1796_v28  ;;  %3896 = vmatmul.msk.f32.gmra.mxu2 %vm390_vm1, %v4811_v54  ;;  %v4826_v62 = vld [vmem:[#allocation2 + $0x112] sm:$0xff] }
 0x111   : > { %3930 = vmatmul.msk.f32.gmra.mxu3 %vm390_vm1, %v4286_v20  ;;  %v2055_v4 = vpop.f32.mrf.mxu0 }
 0x112   : > { %5356 = vst [vmem:[#allocation36_spill] sm:$0xff] %v4815_v9 }
 0x113   : > { %v1370_v43 = vpop.f32.mrf.mxu2 }
 0x114   : > { %v1454_v52 = vadd.f32 %v1370_v43, %v1112_v3  ;;  %v1031_v55 = vpop.f32.mrf.mxu1  ;;  %v1713_v15 = vpop.f32.mrf.mxu3  ;;  %3964 = vmatmul.msk.f32.gmra.mxu0 %vm390_vm1, %v4821_v40  ;;  %v386_v3 = vld [vmem:[%s4219_s22 + $0x160] sm:$0x3] }
 0x115   : > { %v1113_v43 = vadd.f32 %v1031_v55, %v4705_v18  ;;  %436 = vst.msk [vmem:[#allocation2 + $0x160] sm:$0x3] %vm393_vm2, %v386_v3  ;;  %v4853_v55 = vld [vmem:[#allocation2 + $0x139] sm:$0xff] }
 0x116   : > { %v1797_v28 = vadd.f32 %v1713_v15, %v1454_v52 }
 0x117   : > { %3863 = vmatmul.msk.f32.gmra.mxu1 %vm390_vm1, %v4804_v50 }
 0x118   : > { %v4830_v20 = vadd.f32 %v2055_v4, %v1797_v28  ;;  %3897 = vmatmul.msk.f32.gmra.mxu2 %vm390_vm1, %v4826_v62  ;;  %v4843_v4 = vld [vmem:[#allocation2 + $0x122] sm:$0xff] }
 0x119   : > { %3931 = vmatmul.msk.f32.gmra.mxu3 %vm390_vm1, %v4307_v30  ;;  %v2058_v8 = vpop.f32.mrf.mxu0 }
 0x11a   : > { %5357 = vst [vmem:[#allocation37_spill] sm:$0xff] %v4830_v20 }
 0x11b   : > { %v1373_v52 = vpop.f32.mrf.mxu2 }
 0x11c   : > { %v1455_v15 = vadd.f32 %v1373_v52, %v1113_v43  ;;  %v1034_v9 = vpop.f32.mrf.mxu1  ;;  %v1716_v5 = vpop.f32.mrf.mxu3  ;;  %3965 = vmatmul.msk.f32.gmra.mxu0 %vm390_vm1, %v4836_v63 }
 0x11d   : > { %v1114_v3 = vadd.f32 %v1034_v9, %v4547_v16  ;;  %v4868_v9 = vld [vmem:[#allocation2 + $0x141] sm:$0xff] }
 0x11e   : > { %v1798_v28 = vadd.f32 %v1716_v5, %v1455_v15 }
 0x11f   : > { %3864 = vmatmul.msk.f32.gmra.mxu1 %vm390_vm1, %v4821_v40 }
 0x120   : > { %v4847_v30 = vadd.f32 %v2058_v8, %v1798_v28  ;;  %3898 = vmatmul.msk.f32.gmra.mxu2 %vm390_vm1, %v4843_v4  ;;  %v4858_v8 = vld [vmem:[#allocation2 + $0x12a] sm:$0xff] }
 0x121   : > { %3932 = vmatmul.msk.f32.gmra.mxu3 %vm390_vm1, %v4336_v42  ;;  %v2061_v18 = vpop.f32.mrf.mxu0 }
 0x122   : > { %5358 = vst [vmem:[#allocation38_spill] sm:$0xff] %v4847_v30 }
 0x123   : > { %v1376_v43 = vpop.f32.mrf.mxu2 }
 0x124   : > { %v1456_v5 = vadd.f32 %v1376_v43, %v1114_v3  ;;  %v1037_v52 = vpop.f32.mrf.mxu1  ;;  %v1719_v15 = vpop.f32.mrf.mxu3  ;;  %3966 = vmatmul.msk.f32.gmra.mxu0 %vm390_vm1, %v4853_v55  ;;  %v440_v3 = vld [vmem:[%s4224_s26] sm:$0xff]  ;;  %v389_v43 = vld [vmem:[%s4219_s22 + $0x178] sm:$0x3] }
 0x125   : > { %v1115_v30 = vadd.f32 %v1037_v52, %v4565_v47  ;;  %444 = vst.msk [vmem:[#allocation2 + $0x180] sm:$0xff] %vm390_vm1, %v440_v3  ;;  %v441_v52 = vld [vmem:[%s4224_s26 + $0x8] sm:$0xff] }
 0x126   : > { %v1799_v28 = vadd.f32 %v1719_v15, %v1456_v5  ;;  %439 = vst.msk [vmem:[#allocation2 + $0x178] sm:$0x3] %vm393_vm2, %v389_v43 }
 0x127   : > { %3865 = vmatmul.msk.f32.gmra.mxu1 %vm390_vm1, %v4836_v63  ;;  %445 = vst.msk [vmem:[#allocation2 + $0x188] sm:$0xff] %vm390_vm1, %v441_v52  ;;  %v442_v52 = vld [vmem:[%s4224_s26 + $0x10] sm:$0x3] }
 0x128   : > { %v4862_v42 = vadd.f32 %v2061_v18, %v1799_v28  ;;  %3899 = vmatmul.msk.f32.gmra.mxu2 %vm390_vm1, %v4858_v8  ;;  %446 = vst.msk [vmem:[#allocation2 + $0x190] sm:$0x3] %vm393_vm2, %v442_v52 }
 0x129   : > { %3933 = vmatmul.msk.f32.gmra.mxu3 %vm390_vm1, %v4365_v51  ;;  %v2064_v16 = vpop.f32.mrf.mxu0  ;;  %v4877_v51 = vld [vmem:[#allocation2 + $0x13a] sm:$0xff] }
 0x12a   : > { %5359 = vst [vmem:[#allocation39_spill] sm:$0xff] %v4862_v42 }
 0x12b   : > { %v1379_v5 = vpop.f32.mrf.mxu2 }
 0x12c   : > { %v1457_v18 = vadd.f32 %v1379_v5, %v1115_v30  ;;  %v1040_v15 = vpop.f32.mrf.mxu1  ;;  %v1722_v28 = vpop.f32.mrf.mxu3  ;;  %3967 = vmatmul.msk.f32.gmra.mxu0 %vm390_vm1, %v4868_v9  ;;  %v4887_v30 = vld [vmem:[#allocation2 + $0x151] sm:$0xff] }
 0x12d   : > { %v1116_v3 = vadd.f32 %v1040_v15, %v4587_v60  ;;  %v4904_v15 = vld [vmem:[#allocation2 + $0x159] sm:$0xff] }
 0x12e   : > { %v1800_v42 = vadd.f32 %v1722_v28, %v1457_v18 }
 0x12f   : > { %3866 = vmatmul.msk.f32.gmra.mxu1 %vm390_vm1, %v4853_v55 }
 0x130   : > { %v4881_v20 = vadd.f32 %v2064_v16, %v1800_v42  ;;  %3900 = vmatmul.msk.f32.gmra.mxu2 %vm390_vm1, %v4877_v51  ;;  %v4894_v16 = vld [vmem:[#allocation2 + $0x142] sm:$0xff] }
 0x131   : > { %3934 = vmatmul.msk.f32.gmra.mxu3 %vm390_vm1, %v4380_v56  ;;  %v2067_v47 = vpop.f32.mrf.mxu0 }
 0x132   : > { %5360 = vst [vmem:[#allocation40_spill] sm:$0xff] %v4881_v20 }
 0x133   : > { %v1382_v43 = vpop.f32.mrf.mxu2 }
 0x134   : > { %v1458_v5 = vadd.f32 %v1382_v43, %v1116_v3  ;;  %v1043_v18 = vpop.f32.mrf.mxu1  ;;  %v1725_v42 = vpop.f32.mrf.mxu3  ;;  %3968 = vmatmul.msk.f32.gmra.mxu0 %vm390_vm1, %v4887_v30 }
 0x135   : > { %v1117_v3 = vadd.f32 %v1043_v18, %v4607_v13  ;;  %v4921_v18 = vld [vmem:[#allocation2 + $0x169] sm:$0xff] }
 0x136   : > { %v1801_v28 = vadd.f32 %v1725_v42, %v1458_v5 }
 0x137   : > { %3867 = vmatmul.msk.f32.gmra.mxu1 %vm390_vm1, %v4868_v9 }
 0x138   : > { %v4898_v56 = vadd.f32 %v2067_v47, %v1801_v28  ;;  %3901 = vmatmul.msk.f32.gmra.mxu2 %vm390_vm1, %v4894_v16  ;;  %v4911_v47 = vld [vmem:[#allocation2 + $0x152] sm:$0xff] }
 0x139   : > { %3935 = vmatmul.msk.f32.gmra.mxu3 %vm390_vm1, %v4410_v0  ;;  %v2070_v60 = vpop.f32.mrf.mxu0 }
 0x13a   : > { %5361 = vst [vmem:[#allocation41_spill] sm:$0xff] %v4898_v56 }
 0x13b   : > { %v1385_v43 = vpop.f32.mrf.mxu2 }
 0x13c   : > { %v1459_v5 = vadd.f32 %v1385_v43, %v1117_v3  ;;  %v1046_v42 = vpop.f32.mrf.mxu1  ;;  %v1728_v20 = vpop.f32.mrf.mxu3  ;;  %3969 = vmatmul.msk.f32.gmra.mxu0 %vm390_vm1, %v4904_v15 }
 0x13d   : > { %v1118_v52 = vadd.f32 %v1046_v42, %v4629_v22  ;;  %v4936_v22 = vld [vmem:[#allocation2 + $0x171] sm:$0xff] }
 0x13e   : > { %v1802_v28 = vadd.f32 %v1728_v20, %v1459_v5 }
 0x13f   : > { %3868 = vmatmul.msk.f32.gmra.mxu1 %vm390_vm1, %v4887_v30 }
 0x140   : > { %v4915_v0 = vadd.f32 %v2070_v60, %v1802_v28  ;;  %3902 = vmatmul.msk.f32.gmra.mxu2 %vm390_vm1, %v4911_v47  ;;  %v4926_v60 = vld [vmem:[#allocation2 + $0x15a] sm:$0xff] }
 0x141   : > { %3936 = vmatmul.msk.f32.gmra.mxu3 %vm390_vm1, %v4432_v6  ;;  %v2073_v13 = vpop.f32.mrf.mxu0  ;;  %5363 = vst [vmem:[#allocation43_spill] sm:$0xff] %v4926_v60 }
 0x142   : > { %5362 = vst [vmem:[#allocation42_spill] sm:$0xff] %v4915_v0 }
 0x143   : > { %v1388_v3 = vpop.f32.mrf.mxu2 }
 0x144   : > { %v1460_v43 = vadd.f32 %v1388_v3, %v1118_v52  ;;  %v1049_v56 = vpop.f32.mrf.mxu1  ;;  %v1731_v20 = vpop.f32.mrf.mxu3  ;;  %3970 = vmatmul.msk.f32.gmra.mxu0 %vm390_vm1, %v4921_v18 }
 0x145   : > { %v1119_v42 = vadd.f32 %v1049_v56, %v4649_v19  ;;  %v4950_v56 = vld [vmem:[#allocation2 + $0x181] sm:$0xff] }
 0x146   : > { %v1803_v5 = vadd.f32 %v1731_v20, %v1460_v43  ;;  %5366 = vst [vmem:[#allocation46_spill] sm:$0xff] %v4950_v56 }
 0x147   : > { %3869 = vmatmul.msk.f32.gmra.mxu1 %vm390_vm1, %v4904_v15 }
 0x148   : > { %v4930_v28 = vadd.f32 %v2073_v13, %v1803_v5  ;;  %3903 = vmatmul.msk.f32.gmra.mxu2 %vm390_vm1, %v4926_v60  ;;  %v4941_v13 = vld [vmem:[#allocation2 + $0x16a] sm:$0xff]  ;;  %v1543_v5 = vld [vmem:[#allocation2 + $0x180] sm:$0xff] }
 0x149   : > { %3937 = vmatmul.msk.f32.gmra.mxu3 %vm390_vm1, %v4448_v10  ;;  %v2076_v6 = vpop.f32.mrf.mxu0 }
 0x14a   : > { %5364 = vst [vmem:[#allocation44_spill] sm:$0xff] %v4930_v28 }
 0x14b   : > { %v1391_v52 = vpop.f32.mrf.mxu2 }
 0x14c   : > { %v1461_v3 = vadd.f32 %v1391_v52, %v1119_v42  ;;  %v1052_v0 = vpop.f32.mrf.mxu1  ;;  %v1734_v43 = vpop.f32.mrf.mxu3  ;;  %3971 = vmatmul.msk.f32.gmra.mxu0 %vm390_vm1, %v4936_v22 }
 0x14d   : > { %v1120_v42 = vadd.f32 %v1052_v0, %v4671_v48  ;;  %v4964_v0 = vld [vmem:[#allocation2 + $0x189] sm:$0xff] }
 0x14e   : > { %v1804_v20 = vadd.f32 %v1734_v43, %v1461_v3  ;;  %v4955_v43 = vld [vmem:[#allocation2 + $0x172] sm:$0xff] }
 0x14f   : > { %3870 = vmatmul.msk.f32.gmra.mxu1 %vm390_vm1, %v4921_v18 }
 0x150   : > { %v4945_v10 = vadd.f32 %v2076_v6, %v1804_v20  ;;  %3904 = vmatmul.msk.f32.gmra.mxu2 %vm390_vm1, %v4941_v13  ;;  %v1544_v20 = vld [vmem:[#allocation2 + $0x188] sm:$0xff] }
 0x151   : > { %3938 = vmatmul.msk.f32.gmra.mxu3 %vm390_vm1, %v1543_v5  ;;  %v2079_v19 = vpop.f32.mrf.mxu0 }
 0x152   : > { %5365 = vst [vmem:[#allocation45_spill] sm:$0xff] %v4945_v10 }
 0x153   : > { %v1394_v52 = vpop.f32.mrf.mxu2 }
 0x154   : > { %v1462_v28 = vadd.f32 %v1394_v52, %v1120_v42  ;;  %v1055_v60 = vpop.f32.mrf.mxu1  ;;  %v1737_v3 = vpop.f32.mrf.mxu3  ;;  %3972 = vmatmul.msk.f32.gmra.mxu0 %vm390_vm1, %v4950_v56 }
 0x155   : > { %v1121_v42 = vadd.f32 %v1055_v60, %v4691_v17 }
 0x156   : > { %v1805_v6 = vadd.f32 %v1737_v3, %v1462_v28 }
 0x157   : > { %3871 = vmatmul.msk.f32.gmra.mxu1 %vm390_vm1, %v4936_v22 }
 0x158   : > { %v4959_v5 = vadd.f32 %v2079_v19, %v1805_v6  ;;  %3905 = vmatmul.msk.f32.gmra.mxu2 %vm390_vm1, %v4955_v43 }
 0x159   : > { %3939 = vmatmul.msk.f32.gmra.mxu3 %vm390_vm1, %v1544_v20  ;;  %v2082_v48 = vpop.f32.mrf.mxu0 }
 0x15b   : > { %v1397_v52 = vpop.f32.mrf.mxu2 }
 0x15c   : > { %v1463_v10 = vadd.f32 %v1397_v52, %v1121_v42  ;;  %v1058_v56 = vpop.f32.mrf.mxu1  ;;  %v1740_v28 = vpop.f32.mrf.mxu3  ;;  %3973 = vmatmul.msk.f32.gmra.mxu0 %vm390_vm1, %v4964_v0 }
 0x15d   : > { %v1122_v60 = vadd.f32 %v1058_v56, %v4563_v46 }
 0x15e   : > { %v1806_v3 = vadd.f32 %v1740_v28, %v1463_v10 }
 0x15f   : > { %3976 = vmatmul.msk.f32.vlgmr.msra.gmra.mxu1 %vm390_vm1, %v4473_v23 }
 0x160   : > { %v4971_v19 = vadd.f32 %v2082_v48, %v1806_v3  ;;  %4010 = vmatmul.msk.f32.vlgmr.msra.gmra.mxu2 %vm390_vm1, %v4393_v59 }
 0x161   : > { %4044 = vmatmul.msk.f32.vlgmr.msra.gmra.mxu3 %vm390_vm1, %v4480_v24  ;;  %v2085_v17 = vpop.f32.mrf.mxu0 }
 0x163   : > { %v1400_v6 = vpop.f32.mrf.mxu2 }
 0x164   : > { %v1464_v20 = vadd.f32 %v1400_v6, %v1122_v60  ;;  %v1061_v42 = vpop.f32.mrf.mxu1  ;;  %v1743_v52 = vpop.f32.mrf.mxu3  ;;  %4078 = vmatmul.msk.f32.vlgmr.msra.gmra.mxu0 %vm390_vm1, %v4497_v31 }
 0x165   : > { %v1123_v24 = vadd.f32 %v1061_v42, %v4585_v58 }
 0x166   : > { %v1807_v10 = vadd.f32 %v1743_v52, %v1464_v20 }
 0x167   : > { %3977 = vmatmul.msk.f32.gmra.mxu1 %vm390_vm1, %v4484_v25 }
 0x168   : > { %v4982_v23 = vadd.f32 %v2085_v17, %v1807_v10  ;;  %4011 = vmatmul.msk.f32.gmra.mxu2 %vm390_vm1, %v4418_v1 }
 0x169   : > { %4045 = vmatmul.msk.f32.gmra.mxu3 %vm390_vm1, %v4491_v27  ;;  %v2088_v59 = vpop.f32.mrf.mxu0 }
 0x16b   : > { %v1403_v46 = vpop.f32.mrf.mxu2 }
 0x16c   : > { %v1465_v56 = vadd.f32 %v1403_v46, %v1123_v24  ;;  %v1064_v48 = vpop.f32.mrf.mxu1  ;;  %v1746_v28 = vpop.f32.mrf.mxu3  ;;  %4079 = vmatmul.msk.f32.gmra.mxu0 %vm390_vm1, %v4509_v33 }
 0x16d   : > { %v1124_v27 = vadd.f32 %v1064_v48, %v4605_v12 }
 0x16e   : > { %v1808_v3 = vadd.f32 %v1746_v28, %v1465_v56  ;;  %v2545_v28 = vld [vmem:[#allocation2 + $0x68] sm:$0xff] }
 0x16f   : > { %3978 = vmatmul.msk.f32.gmra.mxu1 %vm390_vm1, %v4497_v31 }
 0x170   : > { %v4993_v25 = vadd.f32 %v2088_v59, %v1808_v3  ;;  %4012 = vmatmul.msk.f32.gmra.mxu2 %vm390_vm1, %v4440_v7  ;;  %v2544_v59 = vld [vmem:[#allocation2 + $0x60] sm:$0xff] }
 0x171   : > { %4046 = vmatmul.msk.f32.gmra.mxu3 %vm390_vm1, %v4505_v32  ;;  %v2091_v1 = vpop.f32.mrf.mxu0 }
 0x173   : > { %v1406_v58 = vpop.f32.mrf.mxu2 }
 0x174   : > { %v1466_v17 = vadd.f32 %v1406_v58, %v1124_v27  ;;  %v1067_v60 = vpop.f32.mrf.mxu1  ;;  %v1749_v6 = vpop.f32.mrf.mxu3  ;;  %4080 = vmatmul.msk.f32.gmra.mxu0 %vm390_vm1, %v4523_v36 }
 0x175   : > { %v1125_v32 = vadd.f32 %v1067_v60, %v4627_v21 }
 0x176   : > { %v1809_v20 = vadd.f32 %v1749_v6, %v1466_v17  ;;  %v5368_v6 = vld [vmem:[#allocation6_spill] sm:$0xff] }
 0x177   : > { %3979 = vmatmul.msk.f32.gmra.mxu1 %vm390_vm1, %v4509_v33 }
 0x178   : > { %v5004_v31 = vadd.f32 %v2091_v1, %v1809_v20  ;;  %4013 = vmatmul.msk.f32.gmra.mxu2 %vm390_vm1, %v4456_v11  ;;  %v2546_v20 = vld [vmem:[#allocation2 + $0x78] sm:$0xff] }
 0x179   : > { %4047 = vmatmul.msk.f32.gmra.mxu3 %vm390_vm1, %v4517_v34  ;;  %v2094_v7 = vpop.f32.mrf.mxu0 }
 0x17b   : > { %v1409_v12 = vpop.f32.mrf.mxu2 }
 0x17c   : > { %v1467_v42 = vadd.f32 %v1409_v12, %v1125_v32  ;;  %v1070_v52 = vpop.f32.mrf.mxu1  ;;  %v1752_v10 = vpop.f32.mrf.mxu3  ;;  %4081 = vmatmul.msk.f32.gmra.mxu0 %vm390_vm1, %v4535_v39  ;;  %v5370_v12 = vld [vmem:[#allocation24_spill] sm:$0xff] }
 0x17d   : > { %v1126_v34 = vadd.f32 %v1070_v52, %v4647_v57  ;;  %v5367_v57 = vld [vmem:[#allocation20_spill] sm:$0xff] }
 0x17e   : > { %v1810_v33 = vadd.f32 %v1752_v10, %v1467_v42 }
 0x17f   : > { %3980 = vmatmul.msk.f32.gmra.mxu1 %vm390_vm1, %v4523_v36 }
 0x180   : > { %v5015_v24 = vadd.f32 %v2094_v7, %v1810_v33  ;;  %4014 = vmatmul.msk.f32.gmra.mxu2 %vm390_vm1, %v2544_v59 }
 0x181   : > { %4048 = vmatmul.msk.f32.gmra.mxu3 %vm390_vm1, %v4531_v37  ;;  %v2097_v11 = vpop.f32.mrf.mxu0 }
 0x183   : > { %v1412_v21 = vpop.f32.mrf.mxu2 }
 0x184   : > { %v1468_v46 = vadd.f32 %v1412_v21, %v1126_v34  ;;  %v1073_v56 = vpop.f32.mrf.mxu1  ;;  %v1755_v48 = vpop.f32.mrf.mxu3  ;;  %4082 = vmatmul.msk.f32.gmra.mxu0 %vm390_vm1, %v4551_v44  ;;  %v2547_v34 = vld [vmem:[#allocation2 + $0x80] sm:$0xff] }
 0x185   : > { %v1127_v1 = vadd.f32 %v1073_v56, %v5367_v57 }
 0x186   : > { %v1811_v3 = vadd.f32 %v1755_v48, %v1468_v46  ;;  %v5372_v46 = vld [vmem:[#allocation7_spill] sm:$0xff]  ;;  %v5373_v48 = vld [vmem:[#allocation28_spill] sm:$0xff] }
 0x187   : > { %3981 = vmatmul.msk.f32.gmra.mxu1 %vm390_vm1, %v4535_v39 }
 0x188   : > { %v5025_v36 = vadd.f32 %v2097_v11, %v1811_v3  ;;  %4015 = vmatmul.msk.f32.gmra.mxu2 %vm390_vm1, %v2545_v28  ;;  %v5371_v11 = vld [vmem:[#allocation9_spill] sm:$0xff] }
 0x189   : > { %4049 = vmatmul.msk.f32.gmra.mxu3 %vm390_vm1, %v4543_v41  ;;  %v2100_v37 = vpop.f32.mrf.mxu0  ;;  %v5369_v41 = vld [vmem:[#allocation4_spill] sm:$0xff] }
 0x18b   : > { %v1415_v27 = vpop.f32.mrf.mxu2 }
 0x18c   : > { %v1469_v58 = vadd.f32 %v1415_v27, %v1127_v1  ;;  %v1076_v17 = vpop.f32.mrf.mxu1  ;;  %v1758_v60 = vpop.f32.mrf.mxu3  ;;  %4083 = vmatmul.msk.f32.gmra.mxu0 %vm390_vm1, %v5368_v6  ;;  %v5374_v27 = vld [vmem:[#allocation12_spill] sm:$0xff] }
 0x18d   : > { %v1128_v42 = vadd.f32 %v1076_v17, %v5370_v12 }
 0x18e   : > { %v1812_v7 = vadd.f32 %v1758_v60, %v1469_v58  ;;  %v2548_v58 = vld [vmem:[#allocation2 + $0x90] sm:$0xff] }
 0x18f   : > { %3982 = vmatmul.msk.f32.gmra.mxu1 %vm390_vm1, %v4551_v44 }
 0x190   : > { %v5035_v39 = vadd.f32 %v2100_v37, %v1812_v7  ;;  %4016 = vmatmul.msk.f32.gmra.mxu2 %vm390_vm1, %v2546_v20  ;;  %v5376_v7 = vld [vmem:[#allocation5_spill] sm:$0xff] }
 0x191   : > { %4050 = vmatmul.msk.f32.gmra.mxu3 %vm390_vm1, %v5369_v41  ;;  %v2103_v32 = vpop.f32.mrf.mxu0 }
 0x193   : > { %v1418_v52 = vpop.f32.mrf.mxu2 }
 0x194   : > { %v1470_v10 = vadd.f32 %v1418_v52, %v1128_v42  ;;  %v1079_v59 = vpop.f32.mrf.mxu1  ;;  %v1761_v33 = vpop.f32.mrf.mxu3  ;;  %4084 = vmatmul.msk.f32.gmra.mxu0 %vm390_vm1, %v5371_v11 }
 0x195   : > { %v1129_v28 = vadd.f32 %v1079_v59, %v5373_v48  ;;  %v2549_v59 = vld [vmem:[#allocation2 + $0x98] sm:$0xff] }
 0x196   : > { %v1813_v21 = vadd.f32 %v1761_v33, %v1470_v10  ;;  %v5377_v10 = vld [vmem:[#allocation15_spill] sm:$0xff] }
 0x197   : > { %3983 = vmatmul.msk.f32.gmra.mxu1 %vm390_vm1, %v5368_v6  ;;  %v5375_v6 = vld [vmem:[#allocation10_spill] sm:$0xff] }
 0x198   : > { %v5045_v44 = vadd.f32 %v2103_v32, %v1813_v21  ;;  %4017 = vmatmul.msk.f32.gmra.mxu2 %vm390_vm1, %v2547_v34  ;;  %v5378_v34 = vld [vmem:[#allocation13_spill] sm:$0xff] }
 0x199   : > { %4051 = vmatmul.msk.f32.gmra.mxu3 %vm390_vm1, %v5372_v46  ;;  %v2106_v56 = vpop.f32.mrf.mxu0  ;;  %v5379_v46 = vld [vmem:[#allocation8_spill] sm:$0xff] }
 0x19b   : > { %v1421_v3 = vpop.f32.mrf.mxu2 }
 0x19c   : > { %v1471_v37 = vadd.f32 %v1421_v3, %v1129_v28  ;;  %v1082_v57 = vpop.f32.mrf.mxu1  ;;  %v1764_v1 = vpop.f32.mrf.mxu3  ;;  %4085 = vmatmul.msk.f32.gmra.mxu0 %vm390_vm1, %v5374_v27 }
 0x19d   : > { %v1130_v41 = vadd.f32 %v1082_v57, %v5376_v7  ;;  %v5380_v57 = vld [vmem:[#allocation18_spill] sm:$0xff] }
 0x19e   : > { %v1814_v17 = vadd.f32 %v1764_v1, %v1471_v37  ;;  %v2550_v1 = vld [vmem:[#allocation2 + $0xa8] sm:$0xff] }
 0x19f   : > { %3984 = vmatmul.msk.f32.gmra.mxu1 %vm390_vm1, %v5371_v11 }
 0x1a0   : > { %v5055_v60 = vadd.f32 %v2106_v56, %v1814_v17  ;;  %4018 = vmatmul.msk.f32.gmra.mxu2 %vm390_vm1, %v2548_v58  ;;  %v5381_v17 = vld [vmem:[#allocation16_spill] sm:$0xff] }
 0x1a1   : > { %4052 = vmatmul.msk.f32.gmra.mxu3 %vm390_vm1, %v5375_v6  ;;  %v2109_v20 = vpop.f32.mrf.mxu0 }
 0x1a3   : > { %v1424_v32 = vpop.f32.mrf.mxu2 }
 0x1a4   : > { %v1472_v12 = vadd.f32 %v1424_v32, %v1130_v41  ;;  %v1085_v42 = vpop.f32.mrf.mxu1  ;;  %v1767_v52 = vpop.f32.mrf.mxu3  ;;  %4086 = vmatmul.msk.f32.gmra.mxu0 %vm390_vm1, %v5377_v10 }
 0x1a5   : > { %v1131_v56 = vadd.f32 %v1085_v42, %v5379_v46  ;;  %v5385_v46 = vld [vmem:[#allocation14_spill] sm:$0xff] }
 0x1a6   : > { %v1815_v33 = vadd.f32 %v1767_v52, %v1472_v12  ;;  %v5383_v52 = vld [vmem:[#allocation22_spill] sm:$0xff] }
 0x1a7   : > { %3985 = vmatmul.msk.f32.gmra.mxu1 %vm390_vm1, %v5374_v27 }
 0x1a8   : > { %v5065_v11 = vadd.f32 %v2109_v20, %v1815_v33  ;;  %4019 = vmatmul.msk.f32.gmra.mxu2 %vm390_vm1, %v2549_v59  ;;  %v5382_v20 = vld [vmem:[#allocation11_spill] sm:$0xff]  ;;  %v2551_v59 = vld [vmem:[#allocation2 + $0xb0] sm:$0xff] }
 0x1a9   : > { %4053 = vmatmul.msk.f32.gmra.mxu3 %vm390_vm1, %v5378_v34  ;;  %v2112_v21 = vpop.f32.mrf.mxu0  ;;  %v5384_v34 = vld [vmem:[#allocation19_spill] sm:$0xff] }
 0x1ab   : > { %v1427_v48 = vpop.f32.mrf.mxu2 }
 0x1ac   : > { %v1473_v28 = vadd.f32 %v1427_v48, %v1131_v56  ;;  %v1088_v3 = vpop.f32.mrf.mxu1  ;;  %v1770_v37 = vpop.f32.mrf.mxu3  ;;  %4087 = vmatmul.msk.f32.gmra.mxu0 %vm390_vm1, %v5380_v57 }
 0x1ad   : > { %v1132_v7 = vadd.f32 %v1088_v3, %v5382_v20 }
 0x1ae   : > { %v1816_v58 = vadd.f32 %v1770_v37, %v1473_v28 }
 0x1af   : > { %3986 = vmatmul.msk.f32.gmra.mxu1 %vm390_vm1, %v5377_v10 }
 0x1b0   : > { %v5075_v27 = vadd.f32 %v2112_v21, %v1816_v58  ;;  %4020 = vmatmul.msk.f32.gmra.mxu2 %vm390_vm1, %v2550_v1  ;;  %v5386_v1 = vld [vmem:[#allocation26_spill] sm:$0xff] }
 0x1b1   : > { %4054 = vmatmul.msk.f32.gmra.mxu3 %vm390_vm1, %v5381_v17  ;;  %v2115_v6 = vpop.f32.mrf.mxu0  ;;  %v2552_v58 = vld [vmem:[#allocation2 + $0xc0] sm:$0xff] }
 0x1b3   : > { %v1430_v41 = vpop.f32.mrf.mxu2 }
 0x1b4   : > { %v1474_v32 = vadd.f32 %v1430_v41, %v1132_v7  ;;  %v1091_v12 = vpop.f32.mrf.mxu1  ;;  %v1773_v42 = vpop.f32.mrf.mxu3  ;;  %4088 = vmatmul.msk.f32.gmra.mxu0 %vm390_vm1, %v5383_v52  ;;  %v5388_v7 = vld [vmem:[#allocation17_spill] sm:$0xff] }
 0x1b5   : > { %v1133_v56 = vadd.f32 %v1091_v12, %v5385_v46 }
 0x1b6   : > { %v1817_v33 = vadd.f32 %v1773_v42, %v1474_v32 }
 0x1b7   : > { %3987 = vmatmul.msk.f32.gmra.mxu1 %vm390_vm1, %v5380_v57 }
 0x1b8   : > { %v5085_v10 = vadd.f32 %v2115_v6, %v1817_v33  ;;  %4021 = vmatmul.msk.f32.gmra.mxu2 %vm390_vm1, %v2551_v59  ;;  %v5387_v6 = vld [vmem:[#allocation23_spill] sm:$0xff]  ;;  %v5389_v33 = vld [vmem:[#allocation30_spill] sm:$0xff] }
 0x1b9   : > { %4055 = vmatmul.msk.f32.gmra.mxu3 %vm390_vm1, %v5384_v34  ;;  %v2118_v21 = vpop.f32.mrf.mxu0  ;;  %v2553_v34 = vld [vmem:[#allocation2 + $0xc8] sm:$0xff] }
 0x1bb   : > { %v1433_v48 = vpop.f32.mrf.mxu2 }
 0x1bc   : > { %v1475_v28 = vadd.f32 %v1433_v48, %v1133_v56  ;;  %v1094_v3 = vpop.f32.mrf.mxu1  ;;  %v1776_v37 = vpop.f32.mrf.mxu3  ;;  %4089 = vmatmul.msk.f32.gmra.mxu0 %vm390_vm1, %v5386_v1  ;;  %v5391_v48 = vld [vmem:[#allocation21_spill] sm:$0xff] }
 0x1bd   : > { %v1134_v41 = vadd.f32 %v1094_v3, %v5388_v7 }
 0x1be   : > { %v1818_v17 = vadd.f32 %v1776_v37, %v1475_v28 }
 0x1bf   : > { %3988 = vmatmul.msk.f32.gmra.mxu1 %vm390_vm1, %v5383_v52 }
 0x1c0   : > { %v5095_v57 = vadd.f32 %v2118_v21, %v1818_v17  ;;  %4022 = vmatmul.msk.f32.gmra.mxu2 %vm390_vm1, %v2552_v58  ;;  %v5390_v21 = vld [vmem:[#allocation27_spill] sm:$0xff] }
 0x1c1   : > { %4056 = vmatmul.msk.f32.gmra.mxu3 %vm390_vm1, %v5387_v6  ;;  %v2121_v20 = vpop.f32.mrf.mxu0  ;;  %v2554_v6 = vld [vmem:[#allocation2 + $0xd8] sm:$0xff] }
 0x1c3   : > { %v1436_v32 = vpop.f32.mrf.mxu2 }
 0x1c4   : > { %v1476_v12 = vadd.f32 %v1436_v32, %v1134_v41  ;;  %v1097_v42 = vpop.f32.mrf.mxu1  ;;  %v1779_v59 = vpop.f32.mrf.mxu3  ;;  %4090 = vmatmul.msk.f32.gmra.mxu0 %vm390_vm1, %v5389_v33  ;;  %v5392_v41 = vld [vmem:[#allocation25_spill] sm:$0xff] }
 0x1c5   : > { %v1135_v28 = vadd.f32 %v1097_v42, %v5391_v48 }
 0x1c6   : > { %v1819_v46 = vadd.f32 %v1779_v59, %v1476_v12 }
 0x1c7   : > { %3989 = vmatmul.msk.f32.gmra.mxu1 %vm390_vm1, %v5386_v1 }
 0x1c8   : > { %v5105_v52 = vadd.f32 %v2121_v20, %v1819_v46  ;;  %4023 = vmatmul.msk.f32.gmra.mxu2 %vm390_vm1, %v2553_v34  ;;  %v2555_v46 = vld [vmem:[#allocation2 + $0xe0] sm:$0xff] }
 0x1c9   : > { %4057 = vmatmul.msk.f32.gmra.mxu3 %vm390_vm1, %v5390_v21  ;;  %v2124_v56 = vpop.f32.mrf.mxu0 }
 0x1cb   : > { %v1439_v3 = vpop.f32.mrf.mxu2 }
 0x1cc   : > { %v1477_v37 = vadd.f32 %v1439_v3, %v1135_v28  ;;  %v1100_v58 = vpop.f32.mrf.mxu1  ;;  %v1782_v17 = vpop.f32.mrf.mxu3  ;;  %4091 = vmatmul.msk.f32.gmra.mxu0 %vm390_vm1, %v4730_v35 }
 0x1cd   : > { %v1136_v32 = vadd.f32 %v1100_v58, %v5392_v41 }
 0x1ce   : > { %v1820_v7 = vadd.f32 %v1782_v17, %v1477_v37  ;;  %v2556_v17 = vld [vmem:[#allocation2 + $0xf0] sm:$0xff] }
 0x1cf   : > { %3990 = vmatmul.msk.f32.gmra.mxu1 %vm390_vm1, %v5389_v33 }
 0x1d0   : > { %v5115_v1 = vadd.f32 %v2124_v56, %v1820_v7  ;;  %4024 = vmatmul.msk.f32.gmra.mxu2 %vm390_vm1, %v2554_v6  ;;  %v5393_v56 = vld [vmem:[#allocation29_spill] sm:$0xff]  ;;  %v5394_v7 = vld [vmem:[#allocation31_spill] sm:$0xff] }
 0x1d1   : > { %4058 = vmatmul.msk.f32.gmra.mxu3 %vm390_vm1, %v4725_v53  ;;  %v2127_v20 = vpop.f32.mrf.mxu0 }
 0x1d3   : > { %v1442_v12 = vpop.f32.mrf.mxu2 }
 0x1d4   : > { %v1478_v42 = vadd.f32 %v1442_v12, %v1136_v32  ;;  %v1103_v59 = vpop.f32.mrf.mxu1  ;;  %v1785_v34 = vpop.f32.mrf.mxu3  ;;  %4092 = vmatmul.msk.f32.gmra.mxu0 %vm390_vm1, %v4747_v29 }
 0x1d5   : > { %v1137_v48 = vadd.f32 %v1103_v59, %v5393_v56  ;;  %v2557_v59 = vld [vmem:[#allocation2 + $0xf8] sm:$0xff] }
 0x1d6   : > { %v1821_v21 = vadd.f32 %v1785_v34, %v1478_v42 }
 0x1d7   : > { %3991 = vmatmul.msk.f32.gmra.mxu1 %vm390_vm1, %v4730_v35 }
 0x1d8   : > { %v5125_v33 = vadd.f32 %v2127_v20, %v1821_v21  ;;  %4025 = vmatmul.msk.f32.gmra.mxu2 %vm390_vm1, %v2555_v46  ;;  %v5395_v46 = vld [vmem:[#allocation32_spill] sm:$0xff] }
 0x1d9   : > { %4059 = vmatmul.msk.f32.gmra.mxu3 %vm390_vm1, %v4740_v2  ;;  %v2130_v53 = vpop.f32.mrf.mxu0 }
 0x1db   : > { %v1445_v28 = vpop.f32.mrf.mxu2 }
 0x1dc   : > { %v1479_v3 = vadd.f32 %v1445_v28, %v1137_v48  ;;  %v1788_v37 = vpop.f32.mrf.mxu3  ;;  %v2379_v58 = vpop.f32.mrf.mxu1  ;;  %4093 = vmatmul.msk.f32.gmra.mxu0 %vm390_vm1, %v4762_v26 }
 0x1dd   : > { %v2475_v20 = vadd.f32 %v2379_v58, %v5394_v7 }
 0x1de   : > { %v1822_v6 = vadd.f32 %v1788_v37, %v1479_v3  ;;  %v2558_v3 = vld [vmem:[#allocation2 + $0x108] sm:$0xff] }
 0x1df   : > { %3992 = vmatmul.msk.f32.gmra.mxu1 %vm390_vm1, %v4747_v29 }
 0x1e0   : > { %v5135_v35 = vadd.f32 %v2130_v53, %v1822_v6  ;;  %4026 = vmatmul.msk.f32.gmra.mxu2 %vm390_vm1, %v2556_v17  ;;  %v5396_v17 = vld [vmem:[#allocation33_spill] sm:$0xff] }
 0x1e1   : > { %4060 = vmatmul.msk.f32.gmra.mxu3 %vm390_vm1, %v4757_v38  ;;  %v3406_v2 = vpop.f32.mrf.mxu0 }
 0x1e3   : > { %v2722_v41 = vpop.f32.mrf.mxu2 }
 0x1e4   : > { %v2818_v32 = vadd.f32 %v2722_v41, %v2475_v20  ;;  %v2382_v12 = vpop.f32.mrf.mxu1  ;;  %v3064_v42 = vpop.f32.mrf.mxu3  ;;  %4094 = vmatmul.msk.f32.gmra.mxu0 %vm390_vm1, %v4779_v45 }
 0x1e5   : > { %v2476_v21 = vadd.f32 %v2382_v12, %v5395_v46 }
 0x1e6   : > { %v3160_v34 = vadd.f32 %v3064_v42, %v2818_v32 }
 0x1e7   : > { %3993 = vmatmul.msk.f32.gmra.mxu1 %vm390_vm1, %v4762_v26 }
 0x1e8   : > { %v3502_v29 = vadd.f32 %v3406_v2, %v3160_v34  ;;  %4027 = vmatmul.msk.f32.gmra.mxu2 %vm390_vm1, %v2557_v59 }
 0x1e9   : > { %4061 = vmatmul.msk.f32.gmra.mxu3 %vm390_vm1, %v4772_v49  ;;  %v3409_v38 = vpop.f32.mrf.mxu0 }
 0x1ea   : > { %v3639_v58 = vmul.f32 %v3502_v29, %v3502_v29 }
 0x1eb   : > { %v2725_v53 = vpop.f32.mrf.mxu2 }
 0x1ec   : > { %v2819_v56 = vadd.f32 %v2725_v53, %v2476_v21  ;;  %v2385_v48 = vpop.f32.mrf.mxu1  ;;  %v3067_v28 = vpop.f32.mrf.mxu3  ;;  %4095 = vmatmul.msk.f32.gmra.mxu0 %vm390_vm1, %v4794_v61 }
 0x1ed   : > { %v2477_v6 = vadd.f32 %v2385_v48, %v5396_v17 }
 0x1ee   : > { %v3161_v37 = vadd.f32 %v3067_v28, %v2819_v56 }
 0x1ef   : > { %3994 = vmatmul.msk.f32.gmra.mxu1 %vm390_vm1, %v4779_v45  ;;  %v2559_v45 = vld [vmem:[#allocation2 + $0x110] sm:$0xff] }
 0x1f0   : > { %v3503_v26 = vadd.f32 %v3409_v38, %v3161_v37  ;;  %4028 = vmatmul.msk.f32.gmra.mxu2 %vm390_vm1, %v2558_v3 }
 0x1f1   : > { %4062 = vmatmul.msk.f32.gmra.mxu3 %vm390_vm1, %v4789_v14  ;;  %v3412_v49 = vpop.f32.mrf.mxu0 }
 0x1f2   : > { %v3599_v2 = vadd.f32 %v3503_v26, %v3502_v29  ;;  %v3640_v7 = vmul.f32 %v3503_v26, %v3503_v26  ;;  %v5397_v29 = vld [vmem:[#allocation34_spill] sm:$0xff] }
 0x1f3   : > { %v2728_v20 = vpop.f32.mrf.mxu2 }
 0x1f4   : > { %v3671_v41 = vadd.f32 %v3640_v7, %v3639_v58  ;;  %v2820_v32 = vadd.f32 %v2728_v20, %v2477_v6  ;;  %v2388_v12 = vpop.f32.mrf.mxu1  ;;  %v3070_v42 = vpop.f32.mrf.mxu3  ;;  %4096 = vmatmul.msk.f32.gmra.mxu0 %vm390_vm1, %v4811_v54 }
 0x1f5   : > { %v2478_v38 = vadd.f32 %v2388_v12, %v5397_v29 }
 0x1f6   : > { %v3162_v59 = vadd.f32 %v3070_v42, %v2820_v32 }
 0x1f7   : > { %3995 = vmatmul.msk.f32.gmra.mxu1 %vm390_vm1, %v4794_v61  ;;  %v2560_v61 = vld [vmem:[#allocation2 + $0x120] sm:$0xff] }
 0x1f8   : > { %v3504_v14 = vadd.f32 %v3412_v49, %v3162_v59  ;;  %4029 = vmatmul.msk.f32.gmra.mxu2 %vm390_vm1, %v2559_v45  ;;  %v5398_v49 = vld [vmem:[#allocation35_spill] sm:$0xff]  ;;  %v5399_v45 = vld [vmem:[#allocation36_spill] sm:$0xff] }
 0x1f9   : > { %4063 = vmatmul.msk.f32.gmra.mxu3 %vm390_vm1, %v4804_v50  ;;  %v3415_v34 = vpop.f32.mrf.mxu0 }
 0x1fa   : > { %v3600_v46 = vadd.f32 %v3599_v2, %v3504_v14  ;;  %v3641_v21 = vmul.f32 %v3504_v14, %v3504_v14 }
 0x1fb   : > { %v2731_v53 = vpop.f32.mrf.mxu2 }
 0x1fc   : > { %v3672_v56 = vadd.f32 %v3671_v41, %v3641_v21  ;;  %v2821_v48 = vadd.f32 %v2731_v53, %v2478_v38  ;;  %v2391_v28 = vpop.f32.mrf.mxu1  ;;  %v3073_v3 = vpop.f32.mrf.mxu3  ;;  %4097 = vmatmul.msk.f32.gmra.mxu0 %vm390_vm1, %v4826_v62 }
 0x1fd   : > { %v2479_v58 = vadd.f32 %v2391_v28, %v5398_v49  ;;  %v5400_v28 = vld [vmem:[#allocation37_spill] sm:$0xff] }
 0x1fe   : > { %v3163_v37 = vadd.f32 %v3073_v3, %v2821_v48 }
 0x1ff   : > { %3996 = vmatmul.msk.f32.gmra.mxu1 %vm390_vm1, %v4811_v54  ;;  %v2561_v54 = vld [vmem:[#allocation2 + $0x128] sm:$0xff] }
 0x200   : > { %v3505_v26 = vadd.f32 %v3415_v34, %v3163_v37  ;;  %4030 = vmatmul.msk.f32.gmra.mxu2 %vm390_vm1, %v2560_v61 }
 0x201   : > { %4064 = vmatmul.msk.f32.gmra.mxu3 %vm390_vm1, %v4821_v40  ;;  %v3418_v50 = vpop.f32.mrf.mxu0 }
 0x202   : > { %v3601_v17 = vadd.f32 %v3600_v46, %v3505_v26  ;;  %v3642_v6 = vmul.f32 %v3505_v26, %v3505_v26 }
 0x203   : > { %v2734_v2 = vpop.f32.mrf.mxu2 }
 0x204   : > { %v3673_v7 = vadd.f32 %v3672_v56, %v3642_v6  ;;  %v2822_v20 = vadd.f32 %v2734_v2, %v2479_v58  ;;  %v2394_v41 = vpop.f32.mrf.mxu1  ;;  %v3076_v32 = vpop.f32.mrf.mxu3  ;;  %4098 = vmatmul.msk.f32.gmra.mxu0 %vm390_vm1, %v4843_v4 }
 0x205   : > { %v2480_v59 = vadd.f32 %v2394_v41, %v5399_v45 }
 0x206   : > { %v3164_v12 = vadd.f32 %v3076_v32, %v2822_v20 }
 0x207   : > { %3997 = vmatmul.msk.f32.gmra.mxu1 %vm390_vm1, %v4826_v62  ;;  %v2562_v62 = vld [vmem:[#allocation2 + $0x138] sm:$0xff] }
 0x208   : > { %v3506_v42 = vadd.f32 %v3418_v50, %v3164_v12  ;;  %4031 = vmatmul.msk.f32.gmra.mxu2 %vm390_vm1, %v2561_v54 }
 0x209   : > { %4065 = vmatmul.msk.f32.gmra.mxu3 %vm390_vm1, %v4836_v63  ;;  %v3421_v40 = vpop.f32.mrf.mxu0 }
 0x20a   : > { %v3602_v14 = vadd.f32 %v3601_v17, %v3506_v42  ;;  %v3643_v34 = vmul.f32 %v3506_v42, %v3506_v42 }
 0x20b   : > { %v2737_v29 = vpop.f32.mrf.mxu2 }
 0x20c   : > { %v3674_v38 = vadd.f32 %v3673_v7, %v3643_v34  ;;  %v2823_v46 = vadd.f32 %v2737_v29, %v2480_v59  ;;  %v2397_v21 = vpop.f32.mrf.mxu1  ;;  %v3079_v53 = vpop.f32.mrf.mxu3  ;;  %4099 = vmatmul.msk.f32.gmra.mxu0 %vm390_vm1, %v4858_v8  ;;  %v5401_v7 = vld [vmem:[#allocation38_spill] sm:$0xff] }
 0x20d   : > { %v2481_v3 = vadd.f32 %v2397_v21, %v5400_v28  ;;  %v2565_v28 = vld [vmem:[#allocation2 + $0x158] sm:$0xff] }
 0x20e   : > { %v3165_v56 = vadd.f32 %v3079_v53, %v2823_v46 }
 0x20f   : > { %3998 = vmatmul.msk.f32.gmra.mxu1 %vm390_vm1, %v4843_v4  ;;  %v2563_v4 = vld [vmem:[#allocation2 + $0x140] sm:$0xff] }
 0x210   : > { %v3507_v48 = vadd.f32 %v3421_v40, %v3165_v56  ;;  %4032 = vmatmul.msk.f32.gmra.mxu2 %vm390_vm1, %v2562_v62 }
 0x211   : > { %4066 = vmatmul.msk.f32.gmra.mxu3 %vm390_vm1, %v4853_v55  ;;  %v3424_v63 = vpop.f32.mrf.mxu0 }
 0x212   : > { %v3603_v61 = vadd.f32 %v3602_v14, %v3507_v48  ;;  %v3644_v37 = vmul.f32 %v3507_v48, %v3507_v48  ;;  %v2564_v14 = vld [vmem:[#allocation2 + $0x150] sm:$0xff]  ;;  %v2222_v48 = vld [vmem:[#allocation2 + $0x142] sm:$0xff] }
 0x213   : > { %v2740_v26 = vpop.f32.mrf.mxu2 }
 0x214   : > { %v3675_v50 = vadd.f32 %v3674_v38, %v3644_v37  ;;  %v2824_v49 = vadd.f32 %v2740_v26, %v2481_v3  ;;  %v2400_v58 = vpop.f32.mrf.mxu1  ;;  %v3082_v17 = vpop.f32.mrf.mxu3  ;;  %4100 = vmatmul.msk.f32.gmra.mxu0 %vm390_vm1, %v4877_v51  ;;  %v448_v26 = vld [vmem:[%s4229_s30 + $0x8] sm:$0xff] }
 0x215   : > { %v2482_v20 = vadd.f32 %v2400_v58, %v5401_v7  ;;  %452 = vst.msk [vmem:[#allocation2 + $0x1a0] sm:$0xff] %vm390_vm1, %v448_v26  ;;  %v5405_v7 = vld [vmem:[#allocation41_spill] sm:$0xff] }
 0x216   : > { %v3166_v6 = vadd.f32 %v3082_v17, %v2824_v49 }
 0x217   : > { %3999 = vmatmul.msk.f32.gmra.mxu1 %vm390_vm1, %v4858_v8  ;;  %v5402_v8 = vld [vmem:[#allocation39_spill] sm:$0xff] }
 0x218   : > { %v3508_v2 = vadd.f32 %v3424_v63, %v3166_v6  ;;  %4033 = vmatmul.msk.f32.gmra.mxu2 %vm390_vm1, %v2563_v4 }
 0x219   : > { %4067 = vmatmul.msk.f32.gmra.mxu3 %vm390_vm1, %v4868_v9  ;;  %v3427_v55 = vpop.f32.mrf.mxu0 }
 0x21a   : > { %v3604_v41 = vadd.f32 %v3603_v61, %v3508_v2  ;;  %v3645_v32 = vmul.f32 %v3508_v2, %v3508_v2  ;;  %v2223_v2 = vld [vmem:[#allocation2 + $0x152] sm:$0xff] }
 0x21b   : > { %v2743_v54 = vpop.f32.mrf.mxu2 }
 0x21c   : > { %v3676_v12 = vadd.f32 %v3675_v50, %v3645_v32  ;;  %v2825_v42 = vadd.f32 %v2743_v54, %v2482_v20  ;;  %v2403_v40 = vpop.f32.mrf.mxu1  ;;  %v3085_v45 = vpop.f32.mrf.mxu3  ;;  %4101 = vmatmul.msk.f32.gmra.mxu0 %vm390_vm1, %v4894_v16 }
 0x21d   : > { %v2483_v59 = vadd.f32 %v2403_v40, %v5402_v8 }
 0x21e   : > { %v3167_v34 = vadd.f32 %v3085_v45, %v2825_v42 }
 0x21f   : > { %4000 = vmatmul.msk.f32.gmra.mxu1 %vm390_vm1, %v4877_v51  ;;  %v5403_v51 = vld [vmem:[#allocation40_spill] sm:$0xff] }
 0x220   : > { %v3509_v9 = vadd.f32 %v3427_v55, %v3167_v34  ;;  %4034 = vmatmul.msk.f32.gmra.mxu2 %vm390_vm1, %v2564_v14  ;;  %v5404_v55 = vld [vmem:[#allocation43_spill] sm:$0xff] }
 0x221   : > { %4068 = vmatmul.msk.f32.gmra.mxu3 %vm390_vm1, %v4887_v30  ;;  %v3430_v29 = vpop.f32.mrf.mxu0  ;;  %v447_v30 = vld [vmem:[%s4229_s30] sm:$0xff] }
 0x222   : > { %v3605_v38 = vadd.f32 %v3604_v41, %v3509_v9  ;;  %v3646_v46 = vmul.f32 %v3509_v9, %v3509_v9  ;;  %451 = vst.msk [vmem:[#allocation2 + $0x198] sm:$0xff] %vm390_vm1, %v447_v30  ;;  %v2566_v41 = vld [vmem:[#allocation2 + $0x168] sm:$0xff]  ;;  %v2224_v9 = vld [vmem:[#allocation2 + $0x15a] sm:$0xff] }
 0x223   : > { %v2746_v21 = vpop.f32.mrf.mxu2 }
 0x224   : > { %v3677_v53 = vadd.f32 %v3676_v12, %v3646_v46  ;;  %v2826_v16 = vadd.f32 %v2746_v21, %v2483_v59  ;;  %v2406_v62 = vpop.f32.mrf.mxu1  ;;  %v3088_v56 = vpop.f32.mrf.mxu3  ;;  %4102 = vmatmul.msk.f32.gmra.mxu0 %vm390_vm1, %v4911_v47  ;;  %v449_v12 = vld [vmem:[%s4229_s30 + $0x10] sm:$0x3] }
 0x225   : > { %v2484_v63 = vadd.f32 %v2406_v62, %v5403_v51  ;;  %453 = vst.msk [vmem:[#allocation2 + $0x1a8] sm:$0x3] %vm393_vm2, %v449_v12  ;;  %v2567_v46 = vld [vmem:[#allocation2 + $0x170] sm:$0xff] }
 0x226   : > { %v3168_v3 = vadd.f32 %v3088_v56, %v2826_v16  ;;  %v3253_v12 = vld [vmem:[#allocation2 + $0x18a] sm:$0xff] }
 0x227   : > { %4001 = vmatmul.msk.f32.gmra.mxu1 %vm390_vm1, %v2222_v48 }
 0x228   : > { %v3510_v61 = vadd.f32 %v3430_v29, %v3168_v3  ;;  %4035 = vmatmul.msk.f32.gmra.mxu2 %vm390_vm1, %v2565_v28  ;;  %v5406_v29 = vld [vmem:[#allocation42_spill] sm:$0xff]  ;;  %v2225_v28 = vld [vmem:[#allocation2 + $0x16a] sm:$0xff] }
 0x229   : > { %4069 = vmatmul.msk.f32.gmra.mxu3 %vm390_vm1, %v4904_v15  ;;  %v3433_v37 = vpop.f32.mrf.mxu0  ;;  %v5407_v3 = vld [vmem:[#allocation44_spill] sm:$0xff] }
 0x22a   : > { %v3606_v50 = vadd.f32 %v3605_v38, %v3510_v61  ;;  %v3647_v49 = vmul.f32 %v3510_v61, %v3510_v61  ;;  %v2568_v61 = vld [vmem:[#allocation2 + $0x180] sm:$0xff] }
 0x22b   : > { %v2749_v47 = vpop.f32.mrf.mxu2 }
 0x22c   : > { %v3678_v58 = vadd.f32 %v3677_v53, %v3647_v49  ;;  %v2827_v17 = vadd.f32 %v2749_v47, %v2484_v63  ;;  %v2409_v4 = vpop.f32.mrf.mxu1  ;;  %v3091_v6 = vpop.f32.mrf.mxu3  ;;  %4103 = vmatmul.msk.f32.gmra.mxu0 %vm390_vm1, %v5404_v55  ;;  %v3252_v49 = vld [vmem:[#allocation2 + $0x182] sm:$0xff]  ;;  %v2226_v55 = vld [vmem:[#allocation2 + $0x172] sm:$0xff] }
 0x22d   : > { %v2485_v20 = vadd.f32 %v2409_v4, %v5405_v7  ;;  %v5409_v7 = vld [vmem:[#allocation45_spill] sm:$0xff] }
 0x22e   : > { %v3169_v15 = vadd.f32 %v3091_v6, %v2827_v17 }
 0x22f   : > { %4002 = vmatmul.msk.f32.gmra.mxu1 %vm390_vm1, %v2223_v2 }
 0x230   : > { %v3511_v32 = vadd.f32 %v3433_v37, %v3169_v15  ;;  %4036 = vmatmul.msk.f32.gmra.mxu2 %vm390_vm1, %v2566_v41  ;;  %v2569_v41 = vld [vmem:[#allocation2 + $0x188] sm:$0xff] }
 0x231   : > { %4070 = vmatmul.msk.f32.gmra.mxu3 %vm390_vm1, %v4921_v18  ;;  %v3436_v54 = vpop.f32.mrf.mxu0 }
 0x232   : > { %v3607_v42 = vadd.f32 %v3606_v50, %v3511_v32  ;;  %v3648_v40 = vmul.f32 %v3511_v32, %v3511_v32 }
 0x233   : > { %v2752_v45 = vpop.f32.mrf.mxu2 }
 0x234   : > { %v3679_v8 = vadd.f32 %v3678_v58, %v3648_v40  ;;  %v2828_v59 = vadd.f32 %v2752_v45, %v2485_v20  ;;  %v2412_v14 = vpop.f32.mrf.mxu1  ;;  %v3094_v34 = vpop.f32.mrf.mxu3  ;;  %4104 = vmatmul.msk.f32.gmra.mxu0 %vm390_vm1, %v4941_v13 }
 0x235   : > { %v2486_v38 = vadd.f32 %v2412_v14, %v5406_v29  ;;  %v2570_v29 = vld [vmem:[#allocation2 + $0x198] sm:$0xff] }
 0x236   : > { %v3170_v21 = vadd.f32 %v3094_v34, %v2828_v59 }
 0x237   : > { %4003 = vmatmul.msk.f32.gmra.mxu1 %vm390_vm1, %v2224_v9 }
 0x238   : > { %v3512_v18 = vadd.f32 %v3436_v54, %v3170_v21  ;;  %4037 = vmatmul.msk.f32.gmra.mxu2 %vm390_vm1, %v2567_v46  ;;  %v2912_v46 = vld [vmem:[#allocation2 + $0x199] sm:$0xff] }
 0x239   : > { %4071 = vmatmul.msk.f32.gmra.mxu3 %vm390_vm1, %v4936_v22  ;;  %v3439_v53 = vpop.f32.mrf.mxu0  ;;  %v5408_v22 = vld [vmem:[#allocation46_spill] sm:$0xff] }
 0x23a   : > { %v3608_v16 = vadd.f32 %v3607_v42, %v3512_v18  ;;  %v3649_v62 = vmul.f32 %v3512_v18, %v3512_v18  ;;  %v3254_v18 = vld [vmem:[#allocation2 + $0x19a] sm:$0xff] }
 0x23b   : > { %v2755_v56 = vpop.f32.mrf.mxu2 }
 0x23c   : > { %v3680_v48 = vadd.f32 %v3679_v8, %v3649_v62  ;;  %v2829_v51 = vadd.f32 %v2755_v56, %v2486_v38  ;;  %v2415_v63 = vpop.f32.mrf.mxu1  ;;  %v3097_v13 = vpop.f32.mrf.mxu3  ;;  %4105 = vmatmul.msk.f32.gmra.mxu0 %vm390_vm1, %v4955_v43 }
 0x23d   : > { %v2487_v30 = vadd.f32 %v2415_v63, %v5407_v3  ;;  %v2913_v3 = vld [vmem:[#allocation2 + $0x1a1] sm:$0xff] }
 0x23e   : > { %v3171_v37 = vadd.f32 %v3097_v13, %v2829_v51  ;;  %v2571_v13 = vld [vmem:[#allocation2 + $0x1a0] sm:$0xff] }
 0x23f   : > { %4004 = vmatmul.msk.f32.gmra.mxu1 %vm390_vm1, %v2225_v28 }
 0x240   : > { %v3513_v26 = vadd.f32 %v3439_v53, %v3171_v37  ;;  %4038 = vmatmul.msk.f32.gmra.mxu2 %vm390_vm1, %v2568_v61  ;;  %v3255_v37 = vld [vmem:[#allocation2 + $0x1a2] sm:$0xff] }
 0x241   : > { %4072 = vmatmul.msk.f32.gmra.mxu3 %vm390_vm1, %v5408_v22  ;;  %v3442_v50 = vpop.f32.mrf.mxu0 }
 0x242   : > { %v3609_v47 = vadd.f32 %v3608_v16, %v3513_v26  ;;  %v3650_v58 = vmul.f32 %v3513_v26, %v3513_v26 }
 0x243   : > { %v2758_v17 = vpop.f32.mrf.mxu2 }
 0x244   : > { %v3681_v4 = vadd.f32 %v3680_v48, %v3650_v58  ;;  %v2830_v6 = vadd.f32 %v2758_v17, %v2487_v30  ;;  %v2418_v43 = vpop.f32.mrf.mxu1  ;;  %v3100_v2 = vpop.f32.mrf.mxu3  ;;  %4106 = vmatmul.msk.f32.gmra.mxu0 %vm390_vm1, %v3252_v49 }
 0x245   : > { %v2488_v20 = vadd.f32 %v2418_v43, %v5409_v7 }
 0x246   : > { %v3172_v15 = vadd.f32 %v3100_v2, %v2830_v6 }
 0x247   : > { %4005 = vmatmul.msk.f32.gmra.mxu1 %vm390_vm1, %v2226_v55 }
 0x248   : > { %v3514_v32 = vadd.f32 %v3442_v50, %v3172_v15  ;;  %4039 = vmatmul.msk.f32.gmra.mxu2 %vm390_vm1, %v2569_v41 }
 0x249   : > { %4073 = vmatmul.msk.f32.gmra.mxu3 %vm390_vm1, %v4964_v0  ;;  %v3445_v54 = vpop.f32.mrf.mxu0 }
 0x24a   : > { %v3610_v42 = vadd.f32 %v3609_v47, %v3514_v32  ;;  %v3651_v40 = vmul.f32 %v3514_v32, %v3514_v32 }
 0x24b   : > { %v2761_v45 = vpop.f32.mrf.mxu2 }
 0x24c   : > { %v3682_v8 = vadd.f32 %v3681_v4, %v3651_v40  ;;  %v2831_v59 = vadd.f32 %v2761_v45, %v2488_v20  ;;  %v2421_v14 = vpop.f32.mrf.mxu1  ;;  %v3103_v34 = vpop.f32.mrf.mxu3  ;;  %4107 = vmatmul.msk.f32.gmra.mxu0 %vm390_vm1, %v3253_v12 }
 0x24d   : > { %v2489_v9 = vadd.f32 %v2421_v14, %v4959_v5 }
 0x24e   : > { %v3173_v38 = vadd.f32 %v3103_v34, %v2831_v59 }
 0x24f   : > { %4006 = vmatmul.msk.f32.gmra.mxu1 %vm390_vm1, %v3252_v49 }
 0x250   : > { %v3515_v21 = vadd.f32 %v3445_v54, %v3173_v38  ;;  %4040 = vmatmul.msk.f32.gmra.mxu2 %vm390_vm1, %v2570_v29 }
 0x251   : > { %4074 = vmatmul.msk.f32.gmra.mxu3 %vm390_vm1, %v2912_v46  ;;  %v3448_v0 = vpop.f32.mrf.mxu0 }
 0x252   : > { %v3611_v53 = vadd.f32 %v3610_v42, %v3515_v21  ;;  %v3652_v16 = vmul.f32 %v3515_v21, %v3515_v21 }
 0x253   : > { %v2764_v62 = vpop.f32.mrf.mxu2 }
 0x254   : > { %v3683_v56 = vadd.f32 %v3682_v8, %v3652_v16  ;;  %v2832_v48 = vadd.f32 %v2764_v62, %v2489_v9  ;;  %v2424_v51 = vpop.f32.mrf.mxu1  ;;  %v3106_v63 = vpop.f32.mrf.mxu3  ;;  %4108 = vmatmul.msk.f32.gmra.mxu0 %vm390_vm1, %v3254_v18 }
 0x255   : > { %v2490_v5 = vadd.f32 %v2424_v51, %v4971_v19 }
 0x256   : > { %v3174_v28 = vadd.f32 %v3106_v63, %v2832_v48 }
 0x257   : > { %4007 = vmatmul.msk.f32.gmra.mxu1 %vm390_vm1, %v3253_v12 }
 0x258   : > { %v3516_v30 = vadd.f32 %v3448_v0, %v3174_v28  ;;  %4041 = vmatmul.msk.f32.gmra.mxu2 %vm390_vm1, %v2571_v13 }
 0x259   : > { %4075 = vmatmul.msk.f32.gmra.mxu3 %vm390_vm1, %v2913_v3  ;;  %v3451_v61 = vpop.f32.mrf.mxu0 }
 0x25a   : > { %v3612_v26 = vadd.f32 %v3611_v53, %v3516_v30  ;;  %v3653_v22 = vmul.f32 %v3516_v30, %v3516_v30 }
 0x25b   : > { %v2767_v50 = vpop.f32.mrf.mxu2 }
 0x25c   : > { %v3684_v49 = vadd.f32 %v3683_v56, %v3653_v22  ;;  %v2833_v47 = vadd.f32 %v2767_v50, %v2490_v5  ;;  %v2427_v58 = vpop.f32.mrf.mxu1  ;;  %v3109_v17 = vpop.f32.mrf.mxu3  ;;  %4109 = vmatmul.msk.f32.gmra.mxu0 %vm390_vm1, %v3255_v37 }
 0x25d   : > { %v2491_v19 = vadd.f32 %v2427_v58, %v4982_v23 }
 0x25e   : > { %v3175_v4 = vadd.f32 %v3109_v17, %v2833_v47 }
 0x260   : > { %v3517_v6 = vadd.f32 %v3451_v61, %v3175_v4 }
 0x261   : > { %v3454_v43 = vpop.f32.mrf.mxu0 }
 0x262   : > { %v3613_v2 = vadd.f32 %v3612_v26, %v3517_v6  ;;  %v3654_v55 = vmul.f32 %v3517_v6, %v3517_v6 }
 0x263   : > { %v2770_v7 = vpop.f32.mrf.mxu2 }
 0x264   : > { %v3685_v20 = vadd.f32 %v3684_v49, %v3654_v55  ;;  %v2834_v41 = vadd.f32 %v2770_v7, %v2491_v19  ;;  %v2430_v15 = vpop.f32.mrf.mxu1  ;;  %v3112_v32 = vpop.f32.mrf.mxu3 }
 0x265   : > { %v2492_v54 = vadd.f32 %v2430_v15, %v4993_v25 }
 0x266   : > { %v3176_v12 = vadd.f32 %v3112_v32, %v2834_v41 }
 0x268   : > { %v3518_v42 = vadd.f32 %v3454_v43, %v3176_v12 }
 0x269   : > { %v3457_v40 = vpop.f32.mrf.mxu0 }
 0x26a   : > { %v3614_v45 = vadd.f32 %v3613_v2, %v3518_v42  ;;  %v3655_v8 = vmul.f32 %v3518_v42, %v3518_v42 }
 0x26b   : > { %v2773_v59 = vpop.f32.mrf.mxu2 }
 0x26c   : > { %v3686_v14 = vadd.f32 %v3685_v20, %v3655_v8  ;;  %v2835_v23 = vadd.f32 %v2773_v59, %v2492_v54  ;;  %v2433_v34 = vpop.f32.mrf.mxu1  ;;  %v3115_v9 = vpop.f32.mrf.mxu3 }
 0x26d   : > { %v2493_v29 = vadd.f32 %v2433_v34, %v5004_v31 }
 0x26e   : > { %v3177_v38 = vadd.f32 %v3115_v9, %v2835_v23 }
 0x270   : > { %v3519_v46 = vadd.f32 %v3457_v40, %v3177_v38 }
 0x271   : > { %v3460_v21 = vpop.f32.mrf.mxu0 }
 0x272   : > { %v3615_v0 = vadd.f32 %v3614_v45, %v3519_v46  ;;  %v3656_v18 = vmul.f32 %v3519_v46, %v3519_v46 }
 0x273   : > { %v2776_v53 = vpop.f32.mrf.mxu2 }
 0x274   : > { %v3687_v16 = vadd.f32 %v3686_v14, %v3656_v18  ;;  %v2836_v25 = vadd.f32 %v2776_v53, %v2493_v29  ;;  %v2436_v62 = vpop.f32.mrf.mxu1  ;;  %v3118_v56 = vpop.f32.mrf.mxu3 }
 0x275   : > { %v2494_v48 = vadd.f32 %v2436_v62, %v5015_v24 }
 0x276   : > { %v3178_v51 = vadd.f32 %v3118_v56, %v2836_v25 }
 0x278   : > { %v3520_v63 = vadd.f32 %v3460_v21, %v3178_v51 }
 0x279   : > { %v3463_v5 = vpop.f32.mrf.mxu0 }
 0x27a   : > { %v3616_v13 = vadd.f32 %v3615_v0, %v3520_v63  ;;  %v3657_v28 = vmul.f32 %v3520_v63, %v3520_v63 }
 0x27b   : > { %v2779_v3 = vpop.f32.mrf.mxu2 }
 0x27c   : > { %v3688_v30 = vadd.f32 %v3687_v16, %v3657_v28  ;;  %v2837_v31 = vadd.f32 %v2779_v3, %v2494_v48  ;;  %v2439_v61 = vpop.f32.mrf.mxu1  ;;  %v3121_v37 = vpop.f32.mrf.mxu3 }
 0x27d   : > { %v2495_v26 = vadd.f32 %v2439_v61, %v5025_v36 }
 0x27e   : > { %v3179_v22 = vadd.f32 %v3121_v37, %v2837_v31 }
 0x280   : > { %v3521_v50 = vadd.f32 %v3463_v5, %v3179_v22 }
 0x281   : > { %v3466_v49 = vpop.f32.mrf.mxu0 }
 0x282   : > { %v3617_v47 = vadd.f32 %v3616_v13, %v3521_v50  ;;  %v3658_v58 = vmul.f32 %v3521_v50, %v3521_v50 }
 0x283   : > { %v2782_v17 = vpop.f32.mrf.mxu2 }
 0x284   : > { %v3689_v19 = vadd.f32 %v3688_v30, %v3658_v58  ;;  %v2838_v24 = vadd.f32 %v2782_v17, %v2495_v26  ;;  %v2442_v4 = vpop.f32.mrf.mxu1  ;;  %v3124_v6 = vpop.f32.mrf.mxu3 }
 0x285   : > { %v2496_v7 = vadd.f32 %v2442_v4, %v5035_v39 }
 0x286   : > { %v3180_v43 = vadd.f32 %v3124_v6, %v2838_v24 }
 0x288   : > { %v3522_v2 = vadd.f32 %v3466_v49, %v3180_v43 }
 0x289   : > { %v3469_v55 = vpop.f32.mrf.mxu0 }
 0x28a   : > { %v3618_v20 = vadd.f32 %v3617_v47, %v3522_v2  ;;  %v3659_v41 = vmul.f32 %v3522_v2, %v3522_v2 }
 0x28b   : > { %v2785_v15 = vpop.f32.mrf.mxu2 }
 0x28c   : > { %v3690_v32 = vadd.f32 %v3689_v19, %v3659_v41  ;;  %v2839_v36 = vadd.f32 %v2785_v15, %v2496_v7  ;;  %v2445_v54 = vpop.f32.mrf.mxu1  ;;  %v3127_v12 = vpop.f32.mrf.mxu3 }
 0x28d   : > { %v2497_v8 = vadd.f32 %v2445_v54, %v5045_v44 }
 0x28e   : > { %v3181_v42 = vadd.f32 %v3127_v12, %v2839_v36 }
 0x290   : > { %v3523_v40 = vadd.f32 %v3469_v55, %v3181_v42 }
 0x291   : > { %v3472_v45 = vpop.f32.mrf.mxu0 }
 0x292   : > { %v3619_v59 = vadd.f32 %v3618_v20, %v3523_v40  ;;  %v3660_v14 = vmul.f32 %v3523_v40, %v3523_v40 }
 0x293   : > { %v2788_v23 = vpop.f32.mrf.mxu2 }
 0x294   : > { %v3691_v34 = vadd.f32 %v3690_v32, %v3660_v14  ;;  %v2840_v9 = vadd.f32 %v2788_v23, %v2497_v8  ;;  %v2448_v29 = vpop.f32.mrf.mxu1  ;;  %v3130_v38 = vpop.f32.mrf.mxu3 }
 0x295   : > { %v2498_v0 = vadd.f32 %v2448_v29, %v5055_v60 }
 0x296   : > { %v3182_v39 = vadd.f32 %v3130_v38, %v2840_v9 }
 0x298   : > { %v3524_v46 = vadd.f32 %v3472_v45, %v3182_v39 }
 0x299   : > { %v3475_v21 = vpop.f32.mrf.mxu0 }
 0x29a   : > { %v3620_v18 = vadd.f32 %v3619_v59, %v3524_v46  ;;  %v3661_v53 = vmul.f32 %v3524_v46, %v3524_v46 }
 0x29b   : > { %v2791_v16 = vpop.f32.mrf.mxu2 }
 0x29c   : > { %v3692_v25 = vadd.f32 %v3691_v34, %v3661_v53  ;;  %v2841_v62 = vadd.f32 %v2791_v16, %v2498_v0  ;;  %v2451_v56 = vpop.f32.mrf.mxu1  ;;  %v3133_v48 = vpop.f32.mrf.mxu3 }
 0x29d   : > { %v2499_v5 = vadd.f32 %v2451_v56, %v5065_v11 }
 0x29e   : > { %v3183_v44 = vadd.f32 %v3133_v48, %v2841_v62 }
 0x2a0   : > { %v3525_v51 = vadd.f32 %v3475_v21, %v3183_v44 }
 0x2a1   : > { %v3478_v63 = vpop.f32.mrf.mxu0 }
 0x2a2   : > { %v3621_v13 = vadd.f32 %v3620_v18, %v3525_v51  ;;  %v3662_v28 = vmul.f32 %v3525_v51, %v3525_v51 }
 0x2a3   : > { %v2794_v3 = vpop.f32.mrf.mxu2 }
 0x2a4   : > { %v3693_v30 = vadd.f32 %v3692_v25, %v3662_v28  ;;  %v2842_v31 = vadd.f32 %v2794_v3, %v2499_v5  ;;  %v2454_v61 = vpop.f32.mrf.mxu1  ;;  %v3136_v37 = vpop.f32.mrf.mxu3 }
 0x2a5   : > { %v2500_v50 = vadd.f32 %v2454_v61, %v5075_v27 }
 0x2a6   : > { %v3184_v60 = vadd.f32 %v3136_v37, %v2842_v31 }
 0x2a8   : > { %v3526_v26 = vadd.f32 %v3478_v63, %v3184_v60 }
 0x2a9   : > { %v3481_v22 = vpop.f32.mrf.mxu0 }
 0x2aa   : > { %v3622_v49 = vadd.f32 %v3621_v13, %v3526_v26  ;;  %v3663_v47 = vmul.f32 %v3526_v26, %v3526_v26 }
 0x2ab   : > { %v2797_v58 = vpop.f32.mrf.mxu2 }
 0x2ac   : > { %v3694_v17 = vadd.f32 %v3693_v30, %v3663_v47  ;;  %v2843_v19 = vadd.f32 %v2797_v58, %v2500_v50  ;;  %v2457_v24 = vpop.f32.mrf.mxu1  ;;  %v3139_v4 = vpop.f32.mrf.mxu3 }
 0x2ad   : > { %v2501_v2 = vadd.f32 %v2457_v24, %v5085_v10 }
 0x2ae   : > { %v3185_v11 = vadd.f32 %v3139_v4, %v2843_v19 }
 0x2b0   : > { %v3527_v6 = vadd.f32 %v3481_v22, %v3185_v11 }
 0x2b1   : > { %v3484_v43 = vpop.f32.mrf.mxu0 }
 0x2b2   : > { %v3623_v55 = vadd.f32 %v3622_v49, %v3527_v6  ;;  %v3664_v7 = vmul.f32 %v3527_v6, %v3527_v6 }
 0x2b3   : > { %v2800_v20 = vpop.f32.mrf.mxu2 }
 0x2b4   : > { %v3695_v41 = vadd.f32 %v3694_v17, %v3664_v7  ;;  %v2844_v15 = vadd.f32 %v2800_v20, %v2501_v2  ;;  %v2460_v32 = vpop.f32.mrf.mxu1  ;;  %v3142_v36 = vpop.f32.mrf.mxu3 }
 0x2b5   : > { %v2502_v42 = vadd.f32 %v2460_v32, %v5095_v57 }
 0x2b6   : > { %v3186_v27 = vadd.f32 %v3142_v36, %v2844_v15 }
 0x2b8   : > { %v3528_v54 = vadd.f32 %v3484_v43, %v3186_v27 }
 0x2b9   : > { %v3487_v12 = vpop.f32.mrf.mxu0 }
 0x2ba   : > { %v3624_v40 = vadd.f32 %v3623_v55, %v3528_v54  ;;  %v3665_v45 = vmul.f32 %v3528_v54, %v3528_v54 }
 0x2bb   : > { %v2803_v8 = vpop.f32.mrf.mxu2 }
 0x2bc   : > { %v3696_v59 = vadd.f32 %v3695_v41, %v3665_v45  ;;  %v2845_v14 = vadd.f32 %v2803_v8, %v2502_v42  ;;  %v2463_v23 = vpop.f32.mrf.mxu1  ;;  %v3145_v34 = vpop.f32.mrf.mxu3 }
 0x2bd   : > { %v2503_v38 = vadd.f32 %v2463_v23, %v5105_v52 }
 0x2be   : > { %v3187_v10 = vadd.f32 %v3145_v34, %v2845_v14 }
 0x2c0   : > { %v3529_v9 = vadd.f32 %v3487_v12, %v3187_v10 }
 0x2c1   : > { %v3490_v29 = vpop.f32.mrf.mxu0 }
 0x2c2   : > { %v3625_v39 = vadd.f32 %v3624_v40, %v3529_v9  ;;  %v3666_v46 = vmul.f32 %v3529_v9, %v3529_v9  ;;  %v3598_v40 = vld [vmem:[%s5297_s4] sm:$0x1] }
 0x2c3   : > { %v2806_v21 = vpop.f32.mrf.mxu2 }
 0x2c4   : > { %v3697_v0 = vadd.f32 %v3696_v59, %v3666_v46  ;;  %v2846_v18 = vadd.f32 %v2806_v21, %v2503_v38  ;;  %v2466_v53 = vpop.f32.mrf.mxu1  ;;  %v3148_v16 = vpop.f32.mrf.mxu3  ;;  %v3638_v59 = vld [vmem:[%s5297_s4 + $0x1] sm:$0x1] }
 0x2c5   : > { %v2504_v56 = vadd.f32 %v2466_v53, %v5115_v1 }
 0x2c6   : > { %v3188_v57 = vadd.f32 %v3148_v16, %v2846_v18 }
 0x2c8   : > { %v3530_v25 = vadd.f32 %v3490_v29, %v3188_v57 }
 0x2c9   : > { %v3493_v62 = vpop.f32.mrf.mxu0 }
 0x2ca   : > { %v3626_v48 = vadd.f32 %v3625_v39, %v3530_v25  ;;  %v3667_v44 = vmul.f32 %v3530_v25, %v3530_v25 }
 0x2cb   : > { %v2809_v51 = vpop.f32.mrf.mxu2 }
 0x2cc   : > { %v3698_v63 = vadd.f32 %v3697_v0, %v3667_v44  ;;  %v2847_v5 = vadd.f32 %v2809_v51, %v2504_v56  ;;  %v3151_v13 = vpop.f32.mrf.mxu3  ;;  %v2469_v28 = vpop.f32.mrf.mxu1 }
 0x2cd   : > { %v2505_v30 = vadd.f32 %v2469_v28, %v5125_v33 }
 0x2ce   : > { %v3189_v52 = vadd.f32 %v3151_v13, %v2847_v5 }
 0x2d0   : > { %v3531_v3 = vadd.f32 %v3493_v62, %v3189_v52 }
 0x2d1   : > { %v3496_v60 = vpop.f32.mrf.mxu0 }
 0x2d2   : > { %v3627_v31 = vadd.f32 %v3626_v48, %v3531_v3  ;;  %v3668_v61 = vmul.f32 %v3531_v3, %v3531_v3 }
 0x2d3   : > { %v2812_v37 = vpop.f32.mrf.mxu2 }
 0x2d4   : > { %v3699_v26 = vadd.f32 %v3698_v63, %v3668_v61  ;;  %v2848_v22 = vadd.f32 %v2812_v37, %v2505_v30  ;;  %v3154_v50 = vpop.f32.mrf.mxu3  ;;  %v2472_v1 = vpop.f32.mrf.mxu1 }
 0x2d5   : > { %v2506_v58 = vadd.f32 %v2472_v1, %v5135_v35 }
 0x2d6   : > { %v3190_v49 = vadd.f32 %v3154_v50, %v2848_v22 }
 0x2d8   : > { %v3532_v47 = vadd.f32 %v3496_v60, %v3190_v49 }
 0x2d9   : > { %v3499_v43 = vpop.f32.mrf.mxu0 }
 0x2da   : > { %v3628_v17 = vadd.f32 %v3627_v31, %v3532_v47  ;;  %v3669_v19 = vmul.f32 %v3532_v47, %v3532_v47 }
 0x2db   : > { %v2815_v24 = vpop.f32.mrf.mxu2 }
 0x2dc   : > { %v3700_v4 = vadd.f32 %v3699_v26, %v3669_v19  ;;  %v2849_v11 = vadd.f32 %v2815_v24, %v2506_v58  ;;  %v3157_v6 = vpop.f32.mrf.mxu3 }
 0x2de   : > { %v3191_v33 = vadd.f32 %v3157_v6, %v2849_v11 }
 0x2e0   : > { %v3533_v2 = vadd.f32 %v3499_v43, %v3191_v33 }
 0x2e2   : > { %v3629_v55 = vadd.f32 %v3628_v17, %v3533_v2  ;;  %v3670_v7 = vmul.f32 %v3533_v2, %v3533_v2 }
 0x2e4   : > { %v3630_v20 = vrot.slane %v3629_v55, 4  ;;  %v3701_v41 = vadd.f32 %v3700_v4, %v3670_v7 }
 0x2e6   : > { %v3631_v15 = vadd.f32 %v3630_v20, %v3629_v55  ;;  %v3702_v32 = vrot.slane %v3701_v41, 4 }
 0x2e8   : > { %v3632_v36 = vrot.slane %v3631_v15, 2  ;;  %v3703_v27 = vadd.f32 %v3702_v32, %v3701_v41 }
 0x2ea   : > { %v3633_v54 = vadd.f32 %v3632_v36, %v3631_v15  ;;  %v3704_v12 = vrot.slane %v3703_v27, 2 }
 0x2ec   : > { %v3634_v35 = vrot.slane %v3633_v54, 1  ;;  %v3705_v42 = vadd.f32 %v3704_v12, %v3703_v27 }
 0x2ee   : > { %v3635_v45 = vadd.f32 %v3634_v35, %v3633_v54  ;;  %v3706_v8 = vrot.slane %v3705_v42, 1 }
 0x2f0   : > { %v3636_v14 = vadd.f32 %v3635_v45, %v3598_v40  ;;  %v3707_v23 = vadd.f32 %v3706_v8, %v3705_v42 }
 0x2f2   : > { %3637 = vst [vmem:[%s5297_s4] sm:$0x1] %v3636_v14  ;;  %v3708_v34 = vadd.f32 %v3707_v23, %v3638_v59 }
 0x2f4   : > { %3709 = vst [vmem:[%s5297_s4 + $0x1] sm:$0x1] %v3708_v34 }
 0x2f5 PF: > { %s14_s17 = sadd.s32 1, %s4170_s17   ;;  %s5410_s15 = smov %s4166_s16 }
 0x2f6   : > { %p11_p6 = scmp.ge.s32.totalorder %s14_s17, 4   ;;  %s5411_s16 = smov %s5413_s18 }
 0x2f8   :  { %13 = sbr.rel (!%p11_p6) target bundleno = 2 (0x2), region = 84 }

// kernel: conv_block_forward.3
= control target key start
LH: loop header
LB: loop body
LE: loop exit
PB: predicated region body
PF: predicated region fallthrough
CT: control target
= control target key end

     0   :  { %s4426_s21 = smov 0   ;;  %s4428_s22 = smov 0   ;;  %s5545_s0 = inlined_call_operand.vmem [shape: f32[2,18,18,4], index: 0, kind: input, shape index: {}, may-alias: {0,1,2}]   ;;  %s5546_s1 = inlined_call_operand.vmem [shape: f32[2,18,18,4], index: 1, kind: input, shape index: {}, may-alias: {0,1,2}]   ;;  %s5547_s2 = inlined_call_operand.vmem [shape: f32[2,18,18,4], index: 2, kind: input, shape index: {}, may-alias: {0,1,2}]   ;;  %s5548_s3 = inlined_call_operand.vmem [shape: f32[9,4,128], index: 3, kind: input, shape index: {}]   ;;  %s5549_s4 = inlined_call_operand.vmem [shape: f32[1,128], index: 4, kind: input, shape index: {}]   ;;  %s5550_s5 = inlined_call_operand.vmem [shape: f32[1,128], index: 5, kind: input, shape index: {}]   ;;  %s5551_s6 = inlined_call_operand.vmem [shape: f32[2,16,16,128], index: 6, kind: output, shape index: {}]  }
   0x1   :  { %s4430_s23 = smov 0  }
   0x2 LB: > { %s28_s24 = sadd.s32 1, %s4385_s22  ;;  %p4015_p0 = scmp.ge.s32.totalorder %s4389_s23, 1  ;;  %s4389_s23 = sphi %s4430_s23, %s16_s23   ;;  %s4385_s22 = sphi %s4428_s22, %s5643_s22   ;;  %s4381_s21 = sphi %s4426_s21, %s5642_s21  }
   0x3   : > { %p30_p1 = scmp.ge.s32.totalorder %s28_s24, 2  ;;  %p292_p2 = scmp.lt.s32.totalorder %s4389_s23, 3 }
   0x5   : > { %s5645_s24 = smov (%p30_p1, %s28_s24), 0  ;;  %p293_p3 = pnand %p4015_p0, %p292_p2 }
   0x7   : > { %296 = sbr.rel (%p293_p3) target bundleno = 742 (0x2e6), region = 44 }
   0xc   : > { %v625_v0 = vld [vmem:[%s5548_s3] sm:$0xf]  ;;  %vm722_vm0 = vcmask 1043456   ;;  %p365_p4 = scmp.lt.s32.totalorder %s4381_s21, 1  ;;  %v4088_v1 = vld [vmem:[%s5548_s3 + $0x8] sm:$0xf] }
   0xd   : > { %4333 = vmatpush.msk.msra.mxu1 %vm722_vm0, %v625_v0  ;;  %4334 = vmatpush.msk.msra.mxu2 %vm722_vm0, %v625_v0  ;;  %v4122_v2 = vld [vmem:[%s5548_s3 + $0xc] sm:$0xf]  ;;  %v4054_v3 = vld [vmem:[%s5548_s3 + $0x4] sm:$0xf]  ;;  %v4156_v4 = vld [vmem:[%s5548_s3 + $0x10] sm:$0xf] }
   0xe   : > { %s5647_s21 = smov (!%p365_p4, %s4381_s21), 1  ;;  %4335 = vmatpush.msk.msra.mxu3 %vm722_vm0, %v625_v0  ;;  %4021 = vmatpush.msk.msra.mxu0 %vm722_vm0, %v625_v0  ;;  %vm465_vm1 = vcmask 31744   ;;  %vm468_vm2 = vcmask 25600   ;;  %v4224_v57 = vld [vmem:[%s5548_s3 + $0x18] sm:$0xf] }
   0xf   : > { %4089 = vmatpush.msk.msrb.mxu2 %vm722_vm0, %v4088_v1  ;;  %4055 = vmatpush.msk.msrb.mxu1 %vm722_vm0, %v4054_v3  ;;  %s4468_s11 = smul.u32 432, %s5647_s21  ;;  %v4258_v59 = vld [vmem:[%s5548_s3 + $0x1c] sm:$0xf]  ;;  %v4190_v60 = vld [vmem:[%s5548_s3 + $0x14] sm:$0xf]  ;;  %s4332_s12 = sshll.u32 %s5647_s21, 8 }
  0x10   : > { %4123 = vmatpush.msk.msrb.mxu3 %vm722_vm0, %v4122_v2  ;;  %4157 = vmatpush.msk.msrb.mxu0 %vm722_vm0, %v4156_v4  ;;  %v4292_v1 = vld [vmem:[%s5548_s3 + $0x20] sm:$0xf]  ;;  %s5337_s15 = scalar_lea.vmem %s5551_s6, %s4332_s12 }
  0x11   : > { %s4476_s14 = scalar_lea.vmem %s5545_s0, %s4468_s11  ;;  %s4329_s27 = sadd.s32 384, %s4468_s11 }
  0x12   : > { %v429_v5 = vld [vmem:[%s4476_s14 + $0x60] sm:$0xff]  ;;  %v430_v8 = vld [vmem:[%s4476_s14 + $0x68] sm:$0xff]  ;;  %v432_v12 = vld [vmem:[%s4476_s14 + $0x78] sm:$0xff]  ;;  %s5074_s30 = scalar_lea.vmem %s5546_s1, %s4329_s27  ;;  %s4331_s21 = sadd.s32 408, %s4468_s11 }
  0x13   : > { %v441_v6 = vld [vmem:[%s4476_s14 + $0xc0] sm:$0xff]  ;;  %479 = vst.msk [vmem:[#allocation2 + $0x60] sm:$0xff] %vm465_vm1, %v429_v5  ;;  %v442_v9 = vld [vmem:[%s4476_s14 + $0xc8] sm:$0xff]  ;;  %v444_v13 = vld [vmem:[%s4476_s14 + $0xd8] sm:$0xff]  ;;  %s5404_s18 = scalar_lea.vmem %s5547_s2, %s4331_s21 }
  0x14   : > { %v453_v7 = vld [vmem:[%s4476_s14 + $0x120] sm:$0xff]  ;;  %491 = vst.msk [vmem:[#allocation2 + $0xc0] sm:$0xff] %vm465_vm1, %v441_v6  ;;  %v454_v11 = vld [vmem:[%s4476_s14 + $0x128] sm:$0xff]  ;;  %v456_v16 = vld [vmem:[%s4476_s14 + $0x138] sm:$0xff] }
  0x15   : > { %503 = vst.msk [vmem:[#allocation2 + $0x120] sm:$0xff] %vm465_vm1, %v453_v7  ;;  %v417_v10 = vld [vmem:[%s4476_s14] sm:$0xff]  ;;  %v418_v14 = vld [vmem:[%s4476_s14 + $0x8] sm:$0xff]  ;;  %v420_v21 = vld [vmem:[%s4476_s14 + $0x18] sm:$0xff] }
  0x16   : > { %480 = vst.msk [vmem:[#allocation2 + $0x68] sm:$0xff] %vm465_vm1, %v430_v8  ;;  %v433_v18 = vld [vmem:[%s4476_s14 + $0x80] sm:$0xff]  ;;  %v435_v24 = vld [vmem:[%s4476_s14 + $0x90] sm:$0xff]  ;;  %v436_v31 = vld [vmem:[%s4476_s14 + $0x98] sm:$0xff] }
  0x17   : > { %492 = vst.msk [vmem:[#allocation2 + $0xc8] sm:$0xff] %vm465_vm1, %v442_v9  ;;  %v445_v20 = vld [vmem:[%s4476_s14 + $0xe0] sm:$0xff]  ;;  %v447_v26 = vld [vmem:[%s4476_s14 + $0xf0] sm:$0xff]  ;;  %v448_v32 = vld [vmem:[%s4476_s14 + $0xf8] sm:$0xff] }
  0x18   : > { %466 = vst.msk [vmem:[#allocation2] sm:$0xff] %vm465_vm1, %v417_v10  ;;  %v457_v22 = vld [vmem:[%s4476_s14 + $0x140] sm:$0xff]  ;;  %v459_v30 = vld [vmem:[%s4476_s14 + $0x150] sm:$0xff]  ;;  %v460_v35 = vld [vmem:[%s4476_s14 + $0x158] sm:$0xff] }
  0x19   : > { %504 = vst.msk [vmem:[#allocation2 + $0x128] sm:$0xff] %vm465_vm1, %v454_v11  ;;  %v421_v28 = vld [vmem:[%s4476_s14 + $0x20] sm:$0xff]  ;;  %v423_v34 = vld [vmem:[%s4476_s14 + $0x30] sm:$0xff]  ;;  %v438_v36 = vld [vmem:[%s4476_s14 + $0xa8] sm:$0xff] }
  0x1a   : > { %v4495_v15 = vld [vmem:[#allocation2 + $0x60] sm:$0xff]  ;;  %482 = vst.msk [vmem:[#allocation2 + $0x78] sm:$0xff] %vm465_vm1, %v432_v12  ;;  %v450_v38 = vld [vmem:[%s4476_s14 + $0x108] sm:$0xff]  ;;  %v424_v40 = vld [vmem:[%s4476_s14 + $0x38] sm:$0xff] }
  0x1b   : > { %4030 = vmatmul.msk.f32.vlgmr.msra.gmra.mxu1 %vm465_vm1, %v4495_v15  ;;  %v4501_v17 = vld [vmem:[#allocation2 + $0xc0] sm:$0xff]  ;;  %494 = vst.msk [vmem:[#allocation2 + $0xd8] sm:$0xff] %vm465_vm1, %v444_v13  ;;  %v462_v42 = vld [vmem:[%s4476_s14 + $0x168] sm:$0xff]  ;;  %v439_v43 = vld [vmem:[%s4476_s14 + $0xb0] sm:$0xff] }
  0x1c   : > { %4038 = vmatmul.msk.f32.vlgmr.msra.gmra.mxu2 %vm465_vm1, %v4501_v17  ;;  %v4507_v19 = vld [vmem:[#allocation2 + $0x120] sm:$0xff]  ;;  %467 = vst.msk [vmem:[#allocation2 + $0x8] sm:$0xff] %vm465_vm1, %v418_v14  ;;  %v451_v44 = vld [vmem:[%s4476_s14 + $0x110] sm:$0xff]  ;;  %v426_v46 = vld [vmem:[%s4476_s14 + $0x48] sm:$0xff]  ;;  %4191 = vmatpush.msk.msra.mxu1 %vm722_vm0, %v4190_v60 }
  0x1d   : > { %4046 = vmatmul.msk.f32.vlgmr.msra.gmra.mxu3 %vm465_vm1, %v4507_v19  ;;  %506 = vst.msk [vmem:[#allocation2 + $0x138] sm:$0xff] %vm465_vm1, %v456_v16  ;;  %v4519_v25 = vld [vmem:[#allocation2 + $0x68] sm:$0xff]  ;;  %v463_v47 = vld [vmem:[%s4476_s14 + $0x170] sm:$0xff]  ;;  %4225 = vmatpush.msk.msra.mxu2 %vm722_vm0, %v4224_v57  ;;  %v425_v11 = vld [vmem:[%s4476_s14 + $0x40] sm:$0x3] }
  0x1e   : > { %483 = vst.msk [vmem:[#allocation2 + $0x80] sm:$0xff] %vm465_vm1, %v433_v18  ;;  %v4524_v27 = vld [vmem:[#allocation2 + $0xc8] sm:$0xff]  ;;  %v427_v52 = vld [vmem:[%s4476_s14 + $0x50] sm:$0xff]  ;;  %4259 = vmatpush.msk.msra.mxu3 %vm722_vm0, %v4258_v59 }
  0x1f   : > { %v561_v23 = vld [vmem:[#allocation2] sm:$0xff]  ;;  %495 = vst.msk [vmem:[#allocation2 + $0xe0] sm:$0xff] %vm465_vm1, %v445_v20  ;;  %v419_v56 = vld [vmem:[%s4476_s14 + $0x10] sm:$0x3]  ;;  %v422_v2 = vld [vmem:[%s4476_s14 + $0x28] sm:$0x3] }
  0x20   : > { %4022 = vmatmul.msk.f32.vlgmr.msra.gmra.mxu0 %vm465_vm1, %v561_v23  ;;  %470 = vst.msk [vmem:[#allocation2 + $0x18] sm:$0xff] %vm465_vm1, %v420_v21  ;;  %v4528_v29 = vld [vmem:[#allocation2 + $0x128] sm:$0xff]  ;;  %v428_v21 = vld [vmem:[%s4476_s14 + $0x58] sm:$0x3] }
  0x21   : > { %507 = vst.msk [vmem:[#allocation2 + $0x140] sm:$0xff] %vm465_vm1, %v457_v22  ;;  %v4548_v37 = vld [vmem:[#allocation2 + $0x78] sm:$0xff]  ;;  %4293 = vmatpush.msk.msra.mxu0 %vm722_vm0, %v4292_v1 }
  0x22   : > { %485 = vst.msk [vmem:[#allocation2 + $0x90] sm:$0xff] %vm465_vm1, %v435_v24  ;;  %v4553_v39 = vld [vmem:[#allocation2 + $0xd8] sm:$0xff] }
  0x23   : > { %4031 = vmatmul.msk.f32.gmra.mxu1 %vm465_vm1, %v4519_v25  ;;  %497 = vst.msk [vmem:[#allocation2 + $0xf0] sm:$0xff] %vm465_vm1, %v447_v26  ;;  %v562_v33 = vld [vmem:[#allocation2 + $0x8] sm:$0xff] }
  0x24   : > { %4039 = vmatmul.msk.f32.gmra.mxu2 %vm465_vm1, %v4524_v27  ;;  %471 = vst.msk [vmem:[#allocation2 + $0x20] sm:$0xff] %vm465_vm1, %v421_v28  ;;  %v4557_v41 = vld [vmem:[#allocation2 + $0x138] sm:$0xff]  ;;  %v903_v12 = vld [vmem:[#allocation2 + $0x1] sm:$0xff]  ;;  %v431_v28 = vld [vmem:[%s4476_s14 + $0x70] sm:$0x3] }
  0x25   : > { %4047 = vmatmul.msk.f32.gmra.mxu3 %vm465_vm1, %v4528_v29  ;;  %509 = vst.msk [vmem:[#allocation2 + $0x150] sm:$0xff] %vm465_vm1, %v459_v30  ;;  %v4578_v48 = vld [vmem:[#allocation2 + $0x80] sm:$0xff] }
  0x26   : > { %486 = vst.msk [vmem:[#allocation2 + $0x98] sm:$0xff] %vm465_vm1, %v436_v31  ;;  %v4583_v49 = vld [vmem:[#allocation2 + $0xe0] sm:$0xff] }
  0x27   : > { %498 = vst.msk [vmem:[#allocation2 + $0xf8] sm:$0xff] %vm465_vm1, %v448_v32  ;;  %v4571_v45 = vld [vmem:[#allocation2 + $0x18] sm:$0xff]  ;;  %v1245_v13 = vld [vmem:[#allocation2 + $0x2] sm:$0xff] }
  0x28   : > { %4023 = vmatmul.msk.f32.gmra.mxu0 %vm465_vm1, %v562_v33  ;;  %473 = vst.msk [vmem:[#allocation2 + $0x30] sm:$0xff] %vm465_vm1, %v423_v34  ;;  %v4586_v50 = vld [vmem:[#allocation2 + $0x140] sm:$0xff]  ;;  %v434_v34 = vld [vmem:[%s4476_s14 + $0x88] sm:$0x3] }
  0x29   : > { %510 = vst.msk [vmem:[#allocation2 + $0x158] sm:$0xff] %vm465_vm1, %v460_v35  ;;  %v4596_v53 = vld [vmem:[#allocation2 + $0x90] sm:$0xff]  ;;  %v4814_v1 = vld [vmem:[#allocation2 + $0x7a] sm:$0xff] }
  0x2a   : > { %488 = vst.msk [vmem:[#allocation2 + $0xa8] sm:$0xff] %vm465_vm1, %v438_v36  ;;  %v4599_v54 = vld [vmem:[#allocation2 + $0xf0] sm:$0xff]  ;;  %v4752_v36 = vld [vmem:[#allocation2 + $0x61] sm:$0xff] }
  0x2b   : > { %4032 = vmatmul.msk.f32.gmra.mxu1 %vm465_vm1, %v4548_v37  ;;  %500 = vst.msk [vmem:[#allocation2 + $0x108] sm:$0xff] %vm465_vm1, %v450_v38  ;;  %v564_v51 = vld [vmem:[#allocation2 + $0x20] sm:$0xff] }
  0x2c   : > { %4040 = vmatmul.msk.f32.gmra.mxu2 %vm465_vm1, %v4553_v39  ;;  %474 = vst.msk [vmem:[#allocation2 + $0x38] sm:$0xff] %vm465_vm1, %v424_v40  ;;  %v4601_v55 = vld [vmem:[#allocation2 + $0x150] sm:$0xff]  ;;  %v1930_v14 = vld [vmem:[#allocation2 + $0x19] sm:$0xff] }
  0x2d   : > { %4048 = vmatmul.msk.f32.gmra.mxu3 %vm465_vm1, %v4557_v41  ;;  %512 = vst.msk [vmem:[#allocation2 + $0x168] sm:$0xff] %vm465_vm1, %v462_v42  ;;  %v4625_v61 = vld [vmem:[#allocation2 + $0x98] sm:$0xff]  ;;  %v437_v42 = vld [vmem:[%s4476_s14 + $0xa0] sm:$0x3] }
  0x2e   : > { %489 = vst.msk [vmem:[#allocation2 + $0xb0] sm:$0xff] %vm465_vm1, %v439_v43  ;;  %v4629_v62 = vld [vmem:[#allocation2 + $0xf8] sm:$0xff]  ;;  %v4772_v43 = vld [vmem:[#allocation2 + $0x62] sm:$0xff] }
  0x2f   : > { %501 = vst.msk [vmem:[#allocation2 + $0x110] sm:$0xff] %vm465_vm1, %v451_v44  ;;  %v4614_v58 = vld [vmem:[#allocation2 + $0x30] sm:$0xff]  ;;  %v4694_v22 = vld [vmem:[#allocation2 + $0x1a] sm:$0xff] }
  0x30   : > { %4024 = vmatmul.msk.f32.gmra.mxu0 %vm465_vm1, %v4571_v45  ;;  %476 = vst.msk [vmem:[#allocation2 + $0x48] sm:$0xff] %vm465_vm1, %v426_v46  ;;  %v4631_v63 = vld [vmem:[#allocation2 + $0x158] sm:$0xff] }
  0x31   : > { %513 = vst.msk [vmem:[#allocation2 + $0x170] sm:$0xff] %vm465_vm1, %v463_v47  ;;  %v4647_v3 = vld [vmem:[#allocation2 + $0xa8] sm:$0xff]  ;;  %v4782_v44 = vld [vmem:[#allocation2 + $0x79] sm:$0xff] }
  0x32   : > { %477 = vst.msk [vmem:[#allocation2 + $0x50] sm:$0xff] %vm465_vm1, %v427_v52  ;;  %v4651_v4 = vld [vmem:[#allocation2 + $0x108] sm:$0xff] }
  0x33   : > { %4033 = vmatmul.msk.f32.gmra.mxu1 %vm465_vm1, %v4578_v48  ;;  %469 = vst.msk [vmem:[#allocation2 + $0x10] sm:$0x3] %vm468_vm2, %v419_v56  ;;  %v4639_v0 = vld [vmem:[#allocation2 + $0x38] sm:$0xff] }
  0x34   : > { %4041 = vmatmul.msk.f32.gmra.mxu2 %vm465_vm1, %v4583_v49  ;;  %472 = vst.msk [vmem:[#allocation2 + $0x28] sm:$0x3] %vm468_vm2, %v422_v2  ;;  %v4653_v5 = vld [vmem:[#allocation2 + $0x168] sm:$0xff]  ;;  %v4701_v23 = vld [vmem:[#allocation2 + $0x31] sm:$0xff] }
  0x35   : > { %4049 = vmatmul.msk.f32.gmra.mxu3 %vm465_vm1, %v4586_v50  ;;  %v4663_v7 = vld [vmem:[#allocation2 + $0xb0] sm:$0xff]  ;;  %475 = vst.msk [vmem:[#allocation2 + $0x40] sm:$0x3] %vm468_vm2, %v425_v11  ;;  %v440_v56 = vld [vmem:[%s4476_s14 + $0xb8] sm:$0x3] }
  0x36   : > { %v4667_v8 = vld [vmem:[#allocation2 + $0x110] sm:$0xff]  ;;  %478 = vst.msk [vmem:[#allocation2 + $0x58] sm:$0x3] %vm468_vm2, %v428_v21 }
  0x37   : > { %v4661_v6 = vld [vmem:[#allocation2 + $0x48] sm:$0xff]  ;;  %481 = vst.msk [vmem:[#allocation2 + $0x70] sm:$0x3] %vm468_vm2, %v431_v28  ;;  %v4718_v30 = vld [vmem:[#allocation2 + $0x32] sm:$0xff] }
  0x38   : > { %4025 = vmatmul.msk.f32.gmra.mxu0 %vm465_vm1, %v564_v51  ;;  %v4669_v9 = vld [vmem:[#allocation2 + $0x170] sm:$0xff]  ;;  %484 = vst.msk [vmem:[#allocation2 + $0x88] sm:$0x3] %vm468_vm2, %v434_v34 }
  0x39   : > { %v4677_v10 = vld [vmem:[#allocation2 + $0x50] sm:$0xff]  ;;  %487 = vst.msk [vmem:[#allocation2 + $0xa0] sm:$0x3] %vm468_vm2, %v437_v42 }
  0x3a   : > { %v904_v16 = vld [vmem:[#allocation2 + $0x9] sm:$0xff]  ;;  %5576 = vst [vmem:[#allocation4_spill] sm:$0xff] %v4782_v44  ;;  %v4824_v2 = vld [vmem:[#allocation2 + $0x91] sm:$0xff] }
  0x3b   : > { %4034 = vmatmul.msk.f32.gmra.mxu1 %vm465_vm1, %v4596_v53  ;;  %v1246_v18 = vld [vmem:[#allocation2 + $0xa] sm:$0xff]  ;;  %v1931_v20 = vld [vmem:[#allocation2 + $0x21] sm:$0xff]  ;;  %490 = vst.msk [vmem:[#allocation2 + $0xb8] sm:$0x3] %vm468_vm2, %v440_v56  ;;  %v4856_v34 = vld [vmem:[#allocation2 + $0x92] sm:$0xff] }
  0x3c   : > { %4042 = vmatmul.msk.f32.gmra.mxu2 %vm465_vm1, %v4599_v54  ;;  %v4705_v24 = vld [vmem:[#allocation2 + $0x22] sm:$0xff]  ;;  %v4712_v26 = vld [vmem:[#allocation2 + $0x39] sm:$0xff]  ;;  %v4744_v35 = vld [vmem:[#allocation2 + $0x4a] sm:$0xff]  ;;  %5581 = vst [vmem:[#allocation9_spill] sm:$0xff] %v4814_v1 }
  0x3d   : > { %4050 = vmatmul.msk.f32.gmra.mxu3 %vm465_vm1, %v4601_v55  ;;  %v4726_v31 = vld [vmem:[#allocation2 + $0x49] sm:$0xff]  ;;  %v4730_v32 = vld [vmem:[#allocation2 + $0x3a] sm:$0xff]  ;;  %v4738_v33 = vld [vmem:[#allocation2 + $0x51] sm:$0xff]  ;;  %5582 = vst [vmem:[#allocation10_spill] sm:$0xff] %v4824_v2 }
  0x3e   : > { %v4756_v38 = vld [vmem:[#allocation2 + $0x52] sm:$0xff]  ;;  %v4764_v40 = vld [vmem:[#allocation2 + $0x69] sm:$0xff]  ;;  %5587 = vst [vmem:[#allocation15_spill] sm:$0xff] %v4856_v34 }
  0x3f   : > { %v4802_v52 = vld [vmem:[#allocation2 + $0x81] sm:$0xff]  ;;  %v4866_v42 = vld [vmem:[#allocation2 + $0xa9] sm:$0xff] }
  0x40   : > { %4026 = vmatmul.msk.f32.gmra.mxu0 %vm465_vm1, %v4614_v58  ;;  %5579 = vst [vmem:[#allocation7_spill] sm:$0xff] %v4802_v52 }
  0x41   : > { %5588 = vst [vmem:[#allocation16_spill] sm:$0xff] %v4866_v42 }
  0x43   : > { %4035 = vmatmul.msk.f32.gmra.mxu1 %vm465_vm1, %v4625_v61 }
  0x44   : > { %4043 = vmatmul.msk.f32.gmra.mxu2 %vm465_vm1, %v4629_v62 }
  0x45   : > { %4051 = vmatmul.msk.f32.gmra.mxu3 %vm465_vm1, %v4631_v63 }
  0x48   : > { %4027 = vmatmul.msk.f32.gmra.mxu0 %vm465_vm1, %v4639_v0 }
  0x4b   : > { %4036 = vmatmul.msk.f32.gmra.mxu1 %vm465_vm1, %v4647_v3 }
  0x4c   : > { %4044 = vmatmul.msk.f32.gmra.mxu2 %vm465_vm1, %v4651_v4 }
  0x4d   : > { %4052 = vmatmul.msk.f32.gmra.mxu3 %vm465_vm1, %v4653_v5 }
  0x50   : > { %4028 = vmatmul.msk.f32.gmra.mxu0 %vm465_vm1, %v4661_v6 }
  0x53   : > { %4037 = vmatmul.msk.f32.gmra.mxu1 %vm465_vm1, %v4663_v7 }
  0x54   : > { %4045 = vmatmul.msk.f32.gmra.mxu2 %vm465_vm1, %v4667_v8 }
  0x55   : > { %4053 = vmatmul.msk.f32.gmra.mxu3 %vm465_vm1, %v4669_v9 }
  0x58   : > { %4029 = vmatmul.msk.f32.gmra.mxu0 %vm465_vm1, %v4677_v10 }
  0x5b   : > { %4056 = vmatmul.msk.f32.vlgmr.msrb.gmra.mxu1 %vm465_vm1, %v903_v12 }
  0x5c   : > { %4090 = vmatmul.msk.f32.vlgmr.msrb.gmra.mxu2 %vm465_vm1, %v1245_v13 }
  0x5d   : > { %4124 = vmatmul.msk.f32.vlgmr.msrb.gmra.mxu3 %vm465_vm1, %v4571_v45 }
  0x60   : > { %4158 = vmatmul.msk.f32.vlgmr.msrb.gmra.mxu0 %vm465_vm1, %v1930_v14 }
  0x63   : > { %4057 = vmatmul.msk.f32.gmra.mxu1 %vm465_vm1, %v904_v16  ;;  %v4844_v16 = vld [vmem:[#allocation2 + $0x99] sm:$0xff] }
  0x64   : > { %4091 = vmatmul.msk.f32.gmra.mxu2 %vm465_vm1, %v1246_v18  ;;  %5585 = vst [vmem:[#allocation13_spill] sm:$0xff] %v4844_v16  ;;  %v443_v18 = vld [vmem:[%s4476_s14 + $0xd0] sm:$0x3] }
  0x65   : > { %4125 = vmatmul.msk.f32.gmra.mxu3 %vm465_vm1, %v564_v51  ;;  %v4792_v51 = vld [vmem:[#allocation2 + $0x6a] sm:$0xff]  ;;  %493 = vst.msk [vmem:[#allocation2 + $0xd0] sm:$0x3] %vm468_vm2, %v443_v18 }
  0x66   : > { %5578 = vst [vmem:[#allocation6_spill] sm:$0xff] %v4792_v51 }
  0x68   : > { %4159 = vmatmul.msk.f32.gmra.mxu0 %vm465_vm1, %v1931_v20 }
  0x6b   : > { %4058 = vmatmul.msk.f32.gmra.mxu1 %vm465_vm1, %v1930_v14  ;;  %v4834_v14 = vld [vmem:[#allocation2 + $0x82] sm:$0xff] }
  0x6c   : > { %4092 = vmatmul.msk.f32.gmra.mxu2 %vm465_vm1, %v4694_v22  ;;  %5584 = vst [vmem:[#allocation12_spill] sm:$0xff] %v4834_v14 }
  0x6d   : > { %4126 = vmatmul.msk.f32.gmra.mxu3 %vm465_vm1, %v4614_v58 }
  0x70   : > { %4160 = vmatmul.msk.f32.gmra.mxu0 %vm465_vm1, %v4701_v23 }
  0x73   : > { %4059 = vmatmul.msk.f32.gmra.mxu1 %vm465_vm1, %v1931_v20 }
  0x74   : > { %4093 = vmatmul.msk.f32.gmra.mxu2 %vm465_vm1, %v4705_v24 }
  0x75   : > { %4127 = vmatmul.msk.f32.gmra.mxu3 %vm465_vm1, %v4639_v0 }
  0x78   : > { %4161 = vmatmul.msk.f32.gmra.mxu0 %vm465_vm1, %v4712_v26 }
  0x7b   : > { %4060 = vmatmul.msk.f32.gmra.mxu1 %vm465_vm1, %v4701_v23 }
  0x7c   : > { %4094 = vmatmul.msk.f32.gmra.mxu2 %vm465_vm1, %v4718_v30 }
  0x7d   : > { %4128 = vmatmul.msk.f32.gmra.mxu3 %vm465_vm1, %v4661_v6 }
  0x80   : > { %4162 = vmatmul.msk.f32.gmra.mxu0 %vm465_vm1, %v4726_v31 }
  0x83   : > { %4061 = vmatmul.msk.f32.gmra.mxu1 %vm465_vm1, %v4712_v26 }
  0x84   : > { %4095 = vmatmul.msk.f32.gmra.mxu2 %vm465_vm1, %v4730_v32 }
  0x85   : > { %4129 = vmatmul.msk.f32.gmra.mxu3 %vm465_vm1, %v4677_v10 }
  0x88   : > { %4163 = vmatmul.msk.f32.gmra.mxu0 %vm465_vm1, %v4738_v33 }
  0x8b   : > { %4062 = vmatmul.msk.f32.gmra.mxu1 %vm465_vm1, %v4726_v31 }
  0x8c   : > { %4096 = vmatmul.msk.f32.gmra.mxu2 %vm465_vm1, %v4744_v35 }
  0x8d   : > { %4130 = vmatmul.msk.f32.gmra.mxu3 %vm465_vm1, %v4495_v15 }
  0x90   : > { %4164 = vmatmul.msk.f32.gmra.mxu0 %vm465_vm1, %v4752_v36 }
  0x93   : > { %4063 = vmatmul.msk.f32.gmra.mxu1 %vm465_vm1, %v4738_v33 }
  0x94   : > { %4097 = vmatmul.msk.f32.gmra.mxu2 %vm465_vm1, %v4756_v38 }
  0x95   : > { %4131 = vmatmul.msk.f32.gmra.mxu3 %vm465_vm1, %v4519_v25 }
  0x98   : > { %v4768_v15 = vpop.f32.mrf.mxu1  ;;  %4165 = vmatmul.msk.f32.gmra.mxu0 %vm465_vm1, %v4764_v40 }
  0x9b   : > { %4064 = vmatmul.msk.f32.gmra.mxu1 %vm465_vm1, %v4752_v36 }
  0x9c   : > { %4098 = vmatmul.msk.f32.gmra.mxu2 %vm465_vm1, %v4772_v43 }
  0x9d   : > { %4132 = vmatmul.msk.f32.gmra.mxu3 %vm465_vm1, %v4548_v37  ;;  %v4780_v25 = vpop.f32.mrf.mxu0 }
  0x9f   : > { %v4784_v45 = vpop.f32.mrf.mxu2 }
  0xa0   : > { %v4786_v46 = vpop.f32.mrf.mxu1  ;;  %v4788_v47 = vpop.f32.mrf.mxu3  ;;  %4166 = vmatmul.msk.f32.gmra.mxu0 %vm465_vm1, %v4782_v44 }
  0xa1   : > { %5577 = vst [vmem:[#allocation5_spill] sm:$0xff] %v4788_v47 }
  0xa3   : > { %4065 = vmatmul.msk.f32.gmra.mxu1 %vm465_vm1, %v4764_v40 }
  0xa4   : > { %4099 = vmatmul.msk.f32.gmra.mxu2 %vm465_vm1, %v4792_v51 }
  0xa5   : > { %4133 = vmatmul.msk.f32.gmra.mxu3 %vm465_vm1, %v4578_v48  ;;  %v4800_v37 = vpop.f32.mrf.mxu0 }
  0xa7   : > { %v4806_v57 = vpop.f32.mrf.mxu2 }
  0xa8   : > { %v4808_v59 = vpop.f32.mrf.mxu1  ;;  %v4810_v60 = vpop.f32.mrf.mxu3  ;;  %4167 = vmatmul.msk.f32.gmra.mxu0 %vm465_vm1, %v4802_v52 }
  0xa9   : > { %5580 = vst [vmem:[#allocation8_spill] sm:$0xff] %v4810_v60  ;;  %v4886_v60 = vld [vmem:[#allocation2 + $0xb1] sm:$0xff] }
  0xaa   : > { %5591 = vst [vmem:[#allocation19_spill] sm:$0xff] %v4886_v60 }
  0xab   : > { %4066 = vmatmul.msk.f32.gmra.mxu1 %vm465_vm1, %v4782_v44 }
  0xac   : > { %4100 = vmatmul.msk.f32.gmra.mxu2 %vm465_vm1, %v4814_v1 }
  0xad   : > { %4134 = vmatmul.msk.f32.gmra.mxu3 %vm465_vm1, %v4596_v53  ;;  %v4822_v48 = vpop.f32.mrf.mxu0 }
  0xaf   : > { %v4826_v11 = vpop.f32.mrf.mxu2 }
  0xb0   : > { %v4828_v12 = vpop.f32.mrf.mxu1  ;;  %v4830_v13 = vpop.f32.mrf.mxu3  ;;  %4168 = vmatmul.msk.f32.gmra.mxu0 %vm465_vm1, %v4824_v2 }
  0xb1   : > { %5583 = vst [vmem:[#allocation11_spill] sm:$0xff] %v4830_v13  ;;  %v4876_v13 = vld [vmem:[#allocation2 + $0x9a] sm:$0xff] }
  0xb2   : > { %5590 = vst [vmem:[#allocation18_spill] sm:$0xff] %v4876_v13 }
  0xb3   : > { %4067 = vmatmul.msk.f32.gmra.mxu1 %vm465_vm1, %v4802_v52  ;;  %v449_v52 = vld [vmem:[%s4476_s14 + $0x100] sm:$0x3] }
  0xb4   : > { %4101 = vmatmul.msk.f32.gmra.mxu2 %vm465_vm1, %v4834_v14  ;;  %499 = vst.msk [vmem:[#allocation2 + $0x100] sm:$0x3] %vm468_vm2, %v449_v52  ;;  %v4946_v52 = vld [vmem:[#allocation2 + $0xd9] sm:$0xff] }
  0xb5   : > { %4135 = vmatmul.msk.f32.gmra.mxu3 %vm465_vm1, %v4625_v61  ;;  %v4842_v53 = vpop.f32.mrf.mxu0 }
  0xb7   : > { %v4848_v20 = vpop.f32.mrf.mxu2 }
  0xb8   : > { %v4850_v21 = vpop.f32.mrf.mxu1  ;;  %v4852_v28 = vpop.f32.mrf.mxu3  ;;  %4169 = vmatmul.msk.f32.gmra.mxu0 %vm465_vm1, %v4844_v16 }
  0xb9   : > { %5586 = vst [vmem:[#allocation14_spill] sm:$0xff] %v4852_v28 }
  0xbb   : > { %4068 = vmatmul.msk.f32.gmra.mxu1 %vm465_vm1, %v4824_v2 }
  0xbc   : > { %4102 = vmatmul.msk.f32.gmra.mxu2 %vm465_vm1, %v4856_v34  ;;  %v446_v34 = vld [vmem:[%s4476_s14 + $0xe8] sm:$0x3] }
  0xbd   : > { %4136 = vmatmul.msk.f32.gmra.mxu3 %vm465_vm1, %v4647_v3  ;;  %v4864_v61 = vpop.f32.mrf.mxu0  ;;  %496 = vst.msk [vmem:[#allocation2 + $0xe8] sm:$0x3] %vm468_vm2, %v446_v34  ;;  %v4908_v34 = vld [vmem:[#allocation2 + $0xc1] sm:$0xff] }
  0xbe   : > { %5595 = vst [vmem:[#allocation23_spill] sm:$0xff] %v4908_v34 }
  0xbf   : > { %v4868_v56 = vpop.f32.mrf.mxu2 }
  0xc0   : > { %v4870_v18 = vpop.f32.mrf.mxu1  ;;  %v4872_v28 = vpop.f32.mrf.mxu3  ;;  %4170 = vmatmul.msk.f32.gmra.mxu0 %vm465_vm1, %v4866_v42 }
  0xc1   : > { %5589 = vst [vmem:[#allocation17_spill] sm:$0xff] %v4872_v28 }
  0xc3   : > { %4069 = vmatmul.msk.f32.gmra.mxu1 %vm465_vm1, %v4844_v16 }
  0xc4   : > { %4103 = vmatmul.msk.f32.gmra.mxu2 %vm465_vm1, %v4876_v13  ;;  %v4898_v13 = vld [vmem:[#allocation2 + $0xaa] sm:$0xff] }
  0xc5   : > { %4137 = vmatmul.msk.f32.gmra.mxu3 %vm465_vm1, %v4663_v7  ;;  %v4884_v3 = vpop.f32.mrf.mxu0  ;;  %5594 = vst [vmem:[#allocation22_spill] sm:$0xff] %v4898_v13 }
  0xc7   : > { %v4890_v28 = vpop.f32.mrf.mxu2 }
  0xc8   : > { %5592 = vst [vmem:[#allocation20_spill] sm:$0xff] %v4890_v28  ;;  %v4892_v47 = vpop.f32.mrf.mxu1  ;;  %v4894_v2 = vpop.f32.mrf.mxu3  ;;  %4171 = vmatmul.msk.f32.gmra.mxu0 %vm465_vm1, %v4886_v60 }
  0xc9   : > { %5593 = vst [vmem:[#allocation21_spill] sm:$0xff] %v4894_v2 }
  0xcb   : > { %4070 = vmatmul.msk.f32.gmra.mxu1 %vm465_vm1, %v4866_v42  ;;  %v4918_v42 = vld [vmem:[#allocation2 + $0xb2] sm:$0xff] }
  0xcc   : > { %4104 = vmatmul.msk.f32.gmra.mxu2 %vm465_vm1, %v4898_v13  ;;  %5598 = vst [vmem:[#allocation26_spill] sm:$0xff] %v4918_v42  ;;  %v4928_v13 = vld [vmem:[#allocation2 + $0xc9] sm:$0xff] }
  0xcd   : > { %4138 = vmatmul.msk.f32.gmra.mxu3 %vm465_vm1, %v4501_v17  ;;  %v4906_v7 = vpop.f32.mrf.mxu0  ;;  %5599 = vst [vmem:[#allocation27_spill] sm:$0xff] %v4928_v13 }
  0xcf   : > { %v4910_v2 = vpop.f32.mrf.mxu2 }
  0xd0   : > { %5596 = vst [vmem:[#allocation24_spill] sm:$0xff] %v4910_v2  ;;  %v4912_v16 = vpop.f32.mrf.mxu1  ;;  %v4914_v14 = vpop.f32.mrf.mxu3  ;;  %4172 = vmatmul.msk.f32.gmra.mxu0 %vm465_vm1, %v4908_v34 }
  0xd1   : > { %5597 = vst [vmem:[#allocation25_spill] sm:$0xff] %v4914_v14 }
  0xd3   : > { %4071 = vmatmul.msk.f32.gmra.mxu1 %vm465_vm1, %v4886_v60  ;;  %v4938_v60 = vld [vmem:[#allocation2 + $0xc2] sm:$0xff] }
  0xd4   : > { %4105 = vmatmul.msk.f32.gmra.mxu2 %vm465_vm1, %v4918_v42  ;;  %5602 = vst [vmem:[#allocation30_spill] sm:$0xff] %v4938_v60 }
  0xd5   : > { %4139 = vmatmul.msk.f32.gmra.mxu3 %vm465_vm1, %v4524_v27  ;;  %v4926_v17 = vpop.f32.mrf.mxu0 }
  0xd7   : > { %v4932_v14 = vpop.f32.mrf.mxu2 }
  0xd8   : > { %5600 = vst [vmem:[#allocation28_spill] sm:$0xff] %v4932_v14  ;;  %v4934_v1 = vpop.f32.mrf.mxu3  ;;  %v1085_v2 = vpop.f32.mrf.mxu1  ;;  %4173 = vmatmul.msk.f32.gmra.mxu0 %vm465_vm1, %v4928_v13 }
  0xd9   : > { %5601 = vst [vmem:[#allocation29_spill] sm:$0xff] %v4934_v1  ;;  %v1181_v1 = vadd.f32 %v1085_v2, %v4780_v25  ;;  %v452_v2 = vld [vmem:[%s4476_s14 + $0x118] sm:$0x3] }
  0xda   : > { %502 = vst.msk [vmem:[#allocation2 + $0x118] sm:$0x3] %vm468_vm2, %v452_v2 }
  0xdb   : > { %4072 = vmatmul.msk.f32.gmra.mxu1 %vm465_vm1, %v4908_v34  ;;  %v4951_v34 = vld [vmem:[#allocation2 + $0xca] sm:$0xff] }
  0xdc   : > { %4106 = vmatmul.msk.f32.gmra.mxu2 %vm465_vm1, %v4938_v60 }
  0xdd   : > { %4140 = vmatmul.msk.f32.gmra.mxu3 %vm465_vm1, %v4553_v39  ;;  %v2112_v27 = vpop.f32.mrf.mxu0 }
  0xdf   : > { %v1427_v42 = vpop.f32.mrf.mxu2 }
  0xe0   : > { %v1523_v14 = vadd.f32 %v1427_v42, %v1181_v1  ;;  %v1088_v44 = vpop.f32.mrf.mxu1  ;;  %v1770_v51 = vpop.f32.mrf.mxu3  ;;  %4174 = vmatmul.msk.f32.gmra.mxu0 %vm465_vm1, %v4946_v52  ;;  %v4961_v1 = vld [vmem:[#allocation2 + $0xe1] sm:$0xff] }
  0xe1   : > { %v1182_v42 = vadd.f32 %v1088_v44, %v4800_v37  ;;  %v4978_v37 = vld [vmem:[#allocation2 + $0xf1] sm:$0xff] }
  0xe2   : > { %v1866_v28 = vadd.f32 %v1770_v51, %v1523_v14 }
  0xe3   : > { %4073 = vmatmul.msk.f32.gmra.mxu1 %vm465_vm1, %v4928_v13 }
  0xe4   : > { %v4955_v39 = vadd.f32 %v2112_v27, %v1866_v28  ;;  %4107 = vmatmul.msk.f32.gmra.mxu2 %vm465_vm1, %v4951_v34  ;;  %v4968_v28 = vld [vmem:[#allocation2 + $0xda] sm:$0xff] }
  0xe5   : > { %4141 = vmatmul.msk.f32.gmra.mxu3 %vm465_vm1, %v4583_v49  ;;  %v2115_v25 = vpop.f32.mrf.mxu0 }
  0xe6   : > { %5603 = vst [vmem:[#allocation31_spill] sm:$0xff] %v4955_v39 }
  0xe7   : > { %v1430_v51 = vpop.f32.mrf.mxu2 }
  0xe8   : > { %v1524_v14 = vadd.f32 %v1430_v51, %v1182_v42  ;;  %v1091_v60 = vpop.f32.mrf.mxu1  ;;  %v1773_v13 = vpop.f32.mrf.mxu3  ;;  %4175 = vmatmul.msk.f32.gmra.mxu0 %vm465_vm1, %v4961_v1 }
  0xe9   : > { %v1183_v2 = vadd.f32 %v1091_v60, %v4822_v48  ;;  %v4993_v48 = vld [vmem:[#allocation2 + $0xf9] sm:$0xff] }
  0xea   : > { %v1867_v27 = vadd.f32 %v1773_v13, %v1524_v14 }
  0xeb   : > { %4074 = vmatmul.msk.f32.gmra.mxu1 %vm465_vm1, %v4946_v52 }
  0xec   : > { %v4972_v49 = vadd.f32 %v2115_v25, %v1867_v27  ;;  %4108 = vmatmul.msk.f32.gmra.mxu2 %vm465_vm1, %v4968_v28  ;;  %v4983_v25 = vld [vmem:[#allocation2 + $0xe2] sm:$0xff] }
  0xed   : > { %4142 = vmatmul.msk.f32.gmra.mxu3 %vm465_vm1, %v4599_v54  ;;  %v2118_v44 = vpop.f32.mrf.mxu0 }
  0xee   : > { %5604 = vst [vmem:[#allocation32_spill] sm:$0xff] %v4972_v49 }
  0xef   : > { %v1433_v42 = vpop.f32.mrf.mxu2 }
  0xf0   : > { %v1525_v51 = vadd.f32 %v1433_v42, %v1183_v2  ;;  %v1094_v13 = vpop.f32.mrf.mxu1  ;;  %v1776_v14 = vpop.f32.mrf.mxu3  ;;  %4176 = vmatmul.msk.f32.gmra.mxu0 %vm465_vm1, %v4978_v37  ;;  %v455_v2 = vld [vmem:[%s4476_s14 + $0x130] sm:$0x3] }
  0xf1   : > { %v1184_v42 = vadd.f32 %v1094_v13, %v4842_v53  ;;  %505 = vst.msk [vmem:[#allocation2 + $0x130] sm:$0x3] %vm468_vm2, %v455_v2  ;;  %v5010_v13 = vld [vmem:[#allocation2 + $0x109] sm:$0xff] }
  0xf2   : > { %v1868_v27 = vadd.f32 %v1776_v14, %v1525_v51 }
  0xf3   : > { %4075 = vmatmul.msk.f32.gmra.mxu1 %vm465_vm1, %v4961_v1 }
  0xf4   : > { %v4987_v54 = vadd.f32 %v2118_v44, %v1868_v27  ;;  %4109 = vmatmul.msk.f32.gmra.mxu2 %vm465_vm1, %v4983_v25  ;;  %v5000_v44 = vld [vmem:[#allocation2 + $0xf2] sm:$0xff] }
  0xf5   : > { %4143 = vmatmul.msk.f32.gmra.mxu3 %vm465_vm1, %v4629_v62  ;;  %v2121_v60 = vpop.f32.mrf.mxu0 }
  0xf6   : > { %5605 = vst [vmem:[#allocation33_spill] sm:$0xff] %v4987_v54 }
  0xf7   : > { %v1436_v51 = vpop.f32.mrf.mxu2 }
  0xf8   : > { %v1526_v14 = vadd.f32 %v1436_v51, %v1184_v42  ;;  %v1097_v49 = vpop.f32.mrf.mxu1  ;;  %v1779_v39 = vpop.f32.mrf.mxu3  ;;  %4177 = vmatmul.msk.f32.gmra.mxu0 %vm465_vm1, %v4993_v48 }
  0xf9   : > { %v1185_v2 = vadd.f32 %v1097_v49, %v4864_v61  ;;  %v5025_v49 = vld [vmem:[#allocation2 + $0x111] sm:$0xff] }
  0xfa   : > { %v1869_v27 = vadd.f32 %v1779_v39, %v1526_v14 }
  0xfb   : > { %4076 = vmatmul.msk.f32.gmra.mxu1 %vm465_vm1, %v4978_v37 }
  0xfc   : > { %v5004_v62 = vadd.f32 %v2121_v60, %v1869_v27  ;;  %4110 = vmatmul.msk.f32.gmra.mxu2 %vm465_vm1, %v5000_v44  ;;  %v5015_v60 = vld [vmem:[#allocation2 + $0xfa] sm:$0xff] }
  0xfd   : > { %4144 = vmatmul.msk.f32.gmra.mxu3 %vm465_vm1, %v4651_v4  ;;  %v2124_v53 = vpop.f32.mrf.mxu0 }
  0xfe   : > { %5606 = vst [vmem:[#allocation34_spill] sm:$0xff] %v5004_v62 }
  0xff   : > { %v1439_v42 = vpop.f32.mrf.mxu2 }
 0x100   : > { %v1527_v51 = vadd.f32 %v1439_v42, %v1185_v2  ;;  %v1100_v39 = vpop.f32.mrf.mxu1  ;;  %v1782_v14 = vpop.f32.mrf.mxu3  ;;  %4178 = vmatmul.msk.f32.gmra.mxu0 %vm465_vm1, %v5010_v13  ;;  %v458_v2 = vld [vmem:[%s4476_s14 + $0x148] sm:$0x3] }
 0x101   : > { %v1186_v42 = vadd.f32 %v1100_v39, %v4884_v3  ;;  %508 = vst.msk [vmem:[#allocation2 + $0x148] sm:$0x3] %vm468_vm2, %v458_v2  ;;  %v5042_v39 = vld [vmem:[#allocation2 + $0x121] sm:$0xff] }
 0x102   : > { %v1870_v27 = vadd.f32 %v1782_v14, %v1527_v51 }
 0x103   : > { %4077 = vmatmul.msk.f32.gmra.mxu1 %vm465_vm1, %v4993_v48 }
 0x104   : > { %v5019_v4 = vadd.f32 %v2124_v53, %v1870_v27  ;;  %4111 = vmatmul.msk.f32.gmra.mxu2 %vm465_vm1, %v5015_v60  ;;  %v5032_v53 = vld [vmem:[#allocation2 + $0x10a] sm:$0xff] }
 0x105   : > { %4145 = vmatmul.msk.f32.gmra.mxu3 %vm465_vm1, %v4667_v8  ;;  %v2127_v61 = vpop.f32.mrf.mxu0 }
 0x106   : > { %5607 = vst [vmem:[#allocation35_spill] sm:$0xff] %v5019_v4 }
 0x107   : > { %v1442_v51 = vpop.f32.mrf.mxu2 }
 0x108   : > { %v1528_v14 = vadd.f32 %v1442_v51, %v1186_v42  ;;  %v1103_v62 = vpop.f32.mrf.mxu1  ;;  %v1785_v54 = vpop.f32.mrf.mxu3  ;;  %4179 = vmatmul.msk.f32.gmra.mxu0 %vm465_vm1, %v5025_v49 }
 0x109   : > { %v1187_v2 = vadd.f32 %v1103_v62, %v4906_v7  ;;  %v5054_v7 = vld [vmem:[#allocation2 + $0x129] sm:$0xff]  ;;  %v461_v62 = vld [vmem:[%s4476_s14 + $0x160] sm:$0x3] }
 0x10a   : > { %v1871_v27 = vadd.f32 %v1785_v54, %v1528_v14  ;;  %511 = vst.msk [vmem:[#allocation2 + $0x160] sm:$0x3] %vm468_vm2, %v461_v62 }
 0x10b   : > { %4078 = vmatmul.msk.f32.gmra.mxu1 %vm465_vm1, %v5010_v13 }
 0x10c   : > { %v5036_v8 = vadd.f32 %v2127_v61, %v1871_v27  ;;  %4112 = vmatmul.msk.f32.gmra.mxu2 %vm465_vm1, %v5032_v53  ;;  %v1268_v61 = vld [vmem:[#allocation2 + $0x112] sm:$0xff] }
 0x10d   : > { %4146 = vmatmul.msk.f32.gmra.mxu3 %vm465_vm1, %v4507_v19  ;;  %v2130_v3 = vpop.f32.mrf.mxu0 }
 0x10e   : > { %5608 = vst [vmem:[#allocation36_spill] sm:$0xff] %v5036_v8 }
 0x10f   : > { %v1445_v42 = vpop.f32.mrf.mxu2 }
 0x110   : > { %v1529_v51 = vadd.f32 %v1445_v42, %v1187_v2  ;;  %v1106_v54 = vpop.f32.mrf.mxu1  ;;  %v1788_v14 = vpop.f32.mrf.mxu3  ;;  %4180 = vmatmul.msk.f32.gmra.mxu0 %vm465_vm1, %v5042_v39 }
 0x111   : > { %v1188_v2 = vadd.f32 %v1106_v54, %v4926_v17  ;;  %v1954_v54 = vld [vmem:[#allocation2 + $0x139] sm:$0xff] }
 0x112   : > { %v1872_v27 = vadd.f32 %v1788_v14, %v1529_v51 }
 0x113   : > { %4079 = vmatmul.msk.f32.gmra.mxu1 %vm465_vm1, %v5025_v49 }
 0x114   : > { %v5049_v8 = vadd.f32 %v2130_v3, %v1872_v27  ;;  %4113 = vmatmul.msk.f32.gmra.mxu2 %vm465_vm1, %v1268_v61  ;;  %v1269_v3 = vld [vmem:[#allocation2 + $0x122] sm:$0xff] }
 0x115   : > { %4147 = vmatmul.msk.f32.gmra.mxu3 %vm465_vm1, %v4528_v29  ;;  %v2133_v19 = vpop.f32.mrf.mxu0 }
 0x117   : > { %v1448_v42 = vpop.f32.mrf.mxu2 }
 0x118   : > { %v1530_v51 = vadd.f32 %v1448_v42, %v1188_v2  ;;  %v1109_v14 = vpop.f32.mrf.mxu1  ;;  %v1791_v4 = vpop.f32.mrf.mxu3  ;;  %4181 = vmatmul.msk.f32.gmra.mxu0 %vm465_vm1, %v5054_v7 }
 0x119   : > { %v1189_v27 = vadd.f32 %v1109_v14, %v4768_v15  ;;  %v1955_v14 = vld [vmem:[#allocation2 + $0x141] sm:$0xff] }
 0x11a   : > { %v1873_v61 = vadd.f32 %v1791_v4, %v1530_v51  ;;  %v1270_v51 = vld [vmem:[#allocation2 + $0x12a] sm:$0xff] }
 0x11b   : > { %4080 = vmatmul.msk.f32.gmra.mxu1 %vm465_vm1, %v5042_v39 }
 0x11c   : > { %v5063_v29 = vadd.f32 %v2133_v19, %v1873_v61  ;;  %4114 = vmatmul.msk.f32.gmra.mxu2 %vm465_vm1, %v1269_v3  ;;  %v515_v3 = vld [vmem:[%s5074_s30] sm:$0xff]  ;;  %v464_v61 = vld [vmem:[%s4476_s14 + $0x178] sm:$0x3] }
 0x11d   : > { %4148 = vmatmul.msk.f32.gmra.mxu3 %vm465_vm1, %v4557_v41  ;;  %v2136_v17 = vpop.f32.mrf.mxu0  ;;  %519 = vst.msk [vmem:[#allocation2 + $0x180] sm:$0xff] %vm465_vm1, %v515_v3  ;;  %v516_v3 = vld [vmem:[%s5074_s30 + $0x8] sm:$0xff] }
 0x11e   : > { %514 = vst.msk [vmem:[#allocation2 + $0x178] sm:$0x3] %vm468_vm2, %v464_v61 }
 0x11f   : > { %v1451_v62 = vpop.f32.mrf.mxu2  ;;  %520 = vst.msk [vmem:[#allocation2 + $0x188] sm:$0xff] %vm465_vm1, %v516_v3 }
 0x120   : > { %v1531_v2 = vadd.f32 %v1451_v62, %v1189_v27  ;;  %v1112_v42 = vpop.f32.mrf.mxu1  ;;  %v1794_v4 = vpop.f32.mrf.mxu3  ;;  %4182 = vmatmul.msk.f32.gmra.mxu0 %vm465_vm1, %v1954_v54 }
 0x121   : > { %v1190_v27 = vadd.f32 %v1112_v42, %v4786_v46  ;;  %v1956_v42 = vld [vmem:[#allocation2 + $0x151] sm:$0xff] }
 0x122   : > { %v1874_v19 = vadd.f32 %v1794_v4, %v1531_v2 }
 0x123   : > { %4081 = vmatmul.msk.f32.gmra.mxu1 %vm465_vm1, %v5054_v7 }
 0x124   : > { %v5078_v41 = vadd.f32 %v2136_v17, %v1874_v19  ;;  %4115 = vmatmul.msk.f32.gmra.mxu2 %vm465_vm1, %v1270_v51  ;;  %v1271_v51 = vld [vmem:[#allocation2 + $0x13a] sm:$0xff] }
 0x125   : > { %4149 = vmatmul.msk.f32.gmra.mxu3 %vm465_vm1, %v4586_v50  ;;  %v2139_v15 = vpop.f32.mrf.mxu0 }
 0x127   : > { %v1454_v62 = vpop.f32.mrf.mxu2 }
 0x128   : > { %v1532_v2 = vadd.f32 %v1454_v62, %v1190_v27  ;;  %v1115_v17 = vpop.f32.mrf.mxu1  ;;  %v1797_v4 = vpop.f32.mrf.mxu3  ;;  %4183 = vmatmul.msk.f32.gmra.mxu0 %vm465_vm1, %v1955_v14 }
 0x129   : > { %v1191_v61 = vadd.f32 %v1115_v17, %v4808_v59  ;;  %v1957_v59 = vld [vmem:[#allocation2 + $0x159] sm:$0xff]  ;;  %v517_v17 = vld [vmem:[%s5074_s30 + $0x10] sm:$0x3] }
 0x12a   : > { %v1875_v19 = vadd.f32 %v1797_v4, %v1532_v2  ;;  %521 = vst.msk [vmem:[#allocation2 + $0x190] sm:$0x3] %vm468_vm2, %v517_v17 }
 0x12b   : > { %4082 = vmatmul.msk.f32.gmra.mxu1 %vm465_vm1, %v1954_v54  ;;  %v1272_v54 = vld [vmem:[#allocation2 + $0x142] sm:$0xff] }
 0x12c   : > { %v5090_v50 = vadd.f32 %v2139_v15, %v1875_v19  ;;  %4116 = vmatmul.msk.f32.gmra.mxu2 %vm465_vm1, %v1271_v51 }
 0x12d   : > { %4150 = vmatmul.msk.f32.gmra.mxu3 %vm465_vm1, %v4601_v55  ;;  %v2142_v46 = vpop.f32.mrf.mxu0 }
 0x12f   : > { %v1457_v27 = vpop.f32.mrf.mxu2 }
 0x130   : > { %v1533_v62 = vadd.f32 %v1457_v27, %v1191_v61  ;;  %v1118_v2 = vpop.f32.mrf.mxu1  ;;  %v1800_v4 = vpop.f32.mrf.mxu3  ;;  %4184 = vmatmul.msk.f32.gmra.mxu0 %vm465_vm1, %v1956_v42 }
 0x131   : > { %v1192_v19 = vadd.f32 %v1118_v2, %v4828_v12  ;;  %v1958_v12 = vld [vmem:[#allocation2 + $0x169] sm:$0xff] }
 0x132   : > { %v1876_v15 = vadd.f32 %v1800_v4, %v1533_v62 }
 0x133   : > { %4083 = vmatmul.msk.f32.gmra.mxu1 %vm465_vm1, %v1955_v14  ;;  %v1273_v14 = vld [vmem:[#allocation2 + $0x152] sm:$0xff] }
 0x134   : > { %v5100_v51 = vadd.f32 %v2142_v46, %v1876_v15  ;;  %4117 = vmatmul.msk.f32.gmra.mxu2 %vm465_vm1, %v1272_v54 }
 0x135   : > { %4151 = vmatmul.msk.f32.gmra.mxu3 %vm465_vm1, %v4631_v63  ;;  %v2145_v55 = vpop.f32.mrf.mxu0 }
 0x137   : > { %v1460_v3 = vpop.f32.mrf.mxu2 }
 0x138   : > { %v1534_v61 = vadd.f32 %v1460_v3, %v1192_v19  ;;  %v1121_v27 = vpop.f32.mrf.mxu1  ;;  %v1803_v62 = vpop.f32.mrf.mxu3  ;;  %4185 = vmatmul.msk.f32.gmra.mxu0 %vm465_vm1, %v1957_v59  ;;  %v1274_v3 = vld [vmem:[#allocation2 + $0x15a] sm:$0xff] }
 0x139   : > { %v1193_v2 = vadd.f32 %v1121_v27, %v4850_v21 }
 0x13a   : > { %v1877_v46 = vadd.f32 %v1803_v62, %v1534_v61 }
 0x13b   : > { %4084 = vmatmul.msk.f32.gmra.mxu1 %vm465_vm1, %v1956_v42 }
 0x13c   : > { %v5110_v4 = vadd.f32 %v2145_v55, %v1877_v46  ;;  %4118 = vmatmul.msk.f32.gmra.mxu2 %vm465_vm1, %v1273_v14  ;;  %v1959_v55 = vld [vmem:[#allocation2 + $0x171] sm:$0xff] }
 0x13d   : > { %4152 = vmatmul.msk.f32.gmra.mxu3 %vm465_vm1, %v4653_v5  ;;  %v2148_v63 = vpop.f32.mrf.mxu0 }
 0x13f   : > { %v1463_v54 = vpop.f32.mrf.mxu2 }
 0x140   : > { %v1535_v15 = vadd.f32 %v1463_v54, %v1193_v2  ;;  %v1124_v17 = vpop.f32.mrf.mxu1  ;;  %v1806_v19 = vpop.f32.mrf.mxu3  ;;  %4186 = vmatmul.msk.f32.gmra.mxu0 %vm465_vm1, %v1958_v12  ;;  %v1275_v2 = vld [vmem:[#allocation2 + $0x16a] sm:$0xff] }
 0x141   : > { %v1194_v21 = vadd.f32 %v1124_v17, %v4870_v18 }
 0x142   : > { %v1878_v61 = vadd.f32 %v1806_v19, %v1535_v15  ;;  %v1960_v15 = vld [vmem:[#allocation2 + $0x181] sm:$0xff] }
 0x143   : > { %4085 = vmatmul.msk.f32.gmra.mxu1 %vm465_vm1, %v1957_v59  ;;  %v1618_v59 = vld [vmem:[#allocation2 + $0x180] sm:$0xff] }
 0x144   : > { %v5118_v42 = vadd.f32 %v2148_v63, %v1878_v61  ;;  %4119 = vmatmul.msk.f32.gmra.mxu2 %vm465_vm1, %v1274_v3 }
 0x145   : > { %4153 = vmatmul.msk.f32.gmra.mxu3 %vm465_vm1, %v4669_v9  ;;  %v2151_v5 = vpop.f32.mrf.mxu0 }
 0x147   : > { %v1466_v27 = vpop.f32.mrf.mxu2 }
 0x148   : > { %v1536_v62 = vadd.f32 %v1466_v27, %v1194_v21  ;;  %v1127_v14 = vpop.f32.mrf.mxu1  ;;  %v1809_v46 = vpop.f32.mrf.mxu3  ;;  %4187 = vmatmul.msk.f32.gmra.mxu0 %vm465_vm1, %v1959_v55  ;;  %v1276_v21 = vld [vmem:[#allocation2 + $0x172] sm:$0xff] }
 0x149   : > { %v1195_v18 = vadd.f32 %v1127_v14, %v4892_v47 }
 0x14a   : > { %v1879_v54 = vadd.f32 %v1809_v46, %v1536_v62  ;;  %v1619_v62 = vld [vmem:[#allocation2 + $0x188] sm:$0xff] }
 0x14b   : > { %4086 = vmatmul.msk.f32.gmra.mxu1 %vm465_vm1, %v1958_v12  ;;  %v1961_v46 = vld [vmem:[#allocation2 + $0x189] sm:$0xff] }
 0x14c   : > { %v5126_v63 = vadd.f32 %v2151_v5, %v1879_v54  ;;  %4120 = vmatmul.msk.f32.gmra.mxu2 %vm465_vm1, %v1275_v2 }
 0x14d   : > { %4154 = vmatmul.msk.f32.gmra.mxu3 %vm465_vm1, %v1618_v59  ;;  %v2154_v9 = vpop.f32.mrf.mxu0 }
 0x14f   : > { %v1469_v17 = vpop.f32.mrf.mxu2 }
 0x150   : > { %v1537_v19 = vadd.f32 %v1469_v17, %v1195_v18  ;;  %v1130_v3 = vpop.f32.mrf.mxu1  ;;  %v1812_v61 = vpop.f32.mrf.mxu3  ;;  %4188 = vmatmul.msk.f32.gmra.mxu0 %vm465_vm1, %v1960_v15 }
 0x151   : > { %v1196_v47 = vadd.f32 %v1130_v3, %v4912_v16 }
 0x152   : > { %v1880_v27 = vadd.f32 %v1812_v61, %v1537_v19 }
 0x153   : > { %4087 = vmatmul.msk.f32.gmra.mxu1 %vm465_vm1, %v1959_v55 }
 0x154   : > { %v5133_v12 = vadd.f32 %v2154_v9, %v1880_v27  ;;  %4121 = vmatmul.msk.f32.gmra.mxu2 %vm465_vm1, %v1276_v21 }
 0x155   : > { %4155 = vmatmul.msk.f32.gmra.mxu3 %vm465_vm1, %v1619_v62  ;;  %v2157_v5 = vpop.f32.mrf.mxu0 }
 0x157   : > { %v1472_v14 = vpop.f32.mrf.mxu2 }
 0x158   : > { %v1538_v2 = vadd.f32 %v1472_v14, %v1196_v47  ;;  %v1133_v54 = vpop.f32.mrf.mxu1  ;;  %v1815_v59 = vpop.f32.mrf.mxu3  ;;  %4189 = vmatmul.msk.f32.gmra.mxu0 %vm465_vm1, %v1961_v46 }
 0x159   : > { %v1197_v16 = vadd.f32 %v1133_v54, %v4784_v45 }
 0x15a   : > { %v1881_v15 = vadd.f32 %v1815_v59, %v1538_v2 }
 0x15b   : > { %4192 = vmatmul.msk.f32.vlgmr.msra.gmra.mxu1 %vm465_vm1, %v4694_v22 }
 0x15c   : > { %v5141_v55 = vadd.f32 %v2157_v5, %v1881_v15  ;;  %4226 = vmatmul.msk.f32.vlgmr.msra.gmra.mxu2 %vm465_vm1, %v4614_v58 }
 0x15d   : > { %4260 = vmatmul.msk.f32.vlgmr.msra.gmra.mxu3 %vm465_vm1, %v4701_v23  ;;  %v2160_v9 = vpop.f32.mrf.mxu0 }
 0x15f   : > { %v1475_v18 = vpop.f32.mrf.mxu2 }
 0x160   : > { %v1539_v17 = vadd.f32 %v1475_v18, %v1197_v16  ;;  %v1136_v19 = vpop.f32.mrf.mxu1  ;;  %v1818_v3 = vpop.f32.mrf.mxu3  ;;  %4294 = vmatmul.msk.f32.vlgmr.msra.gmra.mxu0 %vm465_vm1, %v4718_v30 }
 0x161   : > { %v1198_v23 = vadd.f32 %v1136_v19, %v4806_v57 }
 0x162   : > { %v1882_v61 = vadd.f32 %v1818_v3, %v1539_v17  ;;  %v2620_v3 = vld [vmem:[#allocation2 + $0x68] sm:$0xff] }
 0x163   : > { %4193 = vmatmul.msk.f32.gmra.mxu1 %vm465_vm1, %v4705_v24 }
 0x164   : > { %v5152_v22 = vadd.f32 %v2160_v9, %v1882_v61  ;;  %4227 = vmatmul.msk.f32.gmra.mxu2 %vm465_vm1, %v4639_v0  ;;  %v2619_v9 = vld [vmem:[#allocation2 + $0x60] sm:$0xff] }
 0x165   : > { %4261 = vmatmul.msk.f32.gmra.mxu3 %vm465_vm1, %v4712_v26  ;;  %v2163_v58 = vpop.f32.mrf.mxu0 }
 0x167   : > { %v1478_v45 = vpop.f32.mrf.mxu2 }
 0x168   : > { %v1540_v21 = vadd.f32 %v1478_v45, %v1198_v23  ;;  %v1139_v27 = vpop.f32.mrf.mxu1  ;;  %v1821_v62 = vpop.f32.mrf.mxu3  ;;  %4295 = vmatmul.msk.f32.gmra.mxu0 %vm465_vm1, %v4730_v32 }
 0x169   : > { %v1199_v26 = vadd.f32 %v1139_v27, %v4826_v11 }
 0x16a   : > { %v1883_v5 = vadd.f32 %v1821_v62, %v1540_v21  ;;  %v5610_v62 = vld [vmem:[#allocation6_spill] sm:$0xff] }
 0x16b   : > { %4194 = vmatmul.msk.f32.gmra.mxu1 %vm465_vm1, %v4718_v30 }
 0x16c   : > { %v5163_v24 = vadd.f32 %v2163_v58, %v1883_v5  ;;  %4228 = vmatmul.msk.f32.gmra.mxu2 %vm465_vm1, %v4661_v6  ;;  %v2621_v5 = vld [vmem:[#allocation2 + $0x78] sm:$0xff] }
 0x16d   : > { %4262 = vmatmul.msk.f32.gmra.mxu3 %vm465_vm1, %v4726_v31  ;;  %v2166_v0 = vpop.f32.mrf.mxu0 }
 0x16f   : > { %v1481_v57 = vpop.f32.mrf.mxu2 }
 0x170   : > { %v1541_v46 = vadd.f32 %v1481_v57, %v1199_v26  ;;  %v1142_v47 = vpop.f32.mrf.mxu1  ;;  %v1824_v14 = vpop.f32.mrf.mxu3  ;;  %4296 = vmatmul.msk.f32.gmra.mxu0 %vm465_vm1, %v4744_v35  ;;  %v5612_v57 = vld [vmem:[#allocation24_spill] sm:$0xff] }
 0x171   : > { %v1200_v31 = vadd.f32 %v1142_v47, %v4848_v20 }
 0x172   : > { %v1884_v2 = vadd.f32 %v1824_v14, %v1541_v46 }
 0x173   : > { %4195 = vmatmul.msk.f32.gmra.mxu1 %vm465_vm1, %v4730_v32 }
 0x174   : > { %v5174_v30 = vadd.f32 %v2166_v0, %v1884_v2  ;;  %4229 = vmatmul.msk.f32.gmra.mxu2 %vm465_vm1, %v4677_v10 }
 0x175   : > { %4263 = vmatmul.msk.f32.gmra.mxu3 %vm465_vm1, %v4738_v33  ;;  %v2169_v6 = vpop.f32.mrf.mxu0 }
 0x177   : > { %v1484_v11 = vpop.f32.mrf.mxu2 }
 0x178   : > { %v1542_v54 = vadd.f32 %v1484_v11, %v1200_v31  ;;  %v1145_v59 = vpop.f32.mrf.mxu1  ;;  %v1827_v15 = vpop.f32.mrf.mxu3  ;;  %4297 = vmatmul.msk.f32.gmra.mxu0 %vm465_vm1, %v4756_v38  ;;  %v5613_v31 = vld [vmem:[#allocation9_spill] sm:$0xff]  ;;  %v2622_v11 = vld [vmem:[#allocation2 + $0x80] sm:$0xff] }
 0x179   : > { %v1201_v33 = vadd.f32 %v1145_v59, %v4868_v56  ;;  %v5609_v56 = vld [vmem:[#allocation20_spill] sm:$0xff]  ;;  %v5614_v59 = vld [vmem:[#allocation7_spill] sm:$0xff] }
 0x17a   : > { %v1885_v32 = vadd.f32 %v1827_v15, %v1542_v54 }
 0x17b   : > { %4196 = vmatmul.msk.f32.gmra.mxu1 %vm465_vm1, %v4744_v35 }
 0x17c   : > { %v5185_v16 = vadd.f32 %v2169_v6, %v1885_v32  ;;  %4230 = vmatmul.msk.f32.gmra.mxu2 %vm465_vm1, %v2619_v9  ;;  %v5615_v9 = vld [vmem:[#allocation28_spill] sm:$0xff] }
 0x17d   : > { %4264 = vmatmul.msk.f32.gmra.mxu3 %vm465_vm1, %v4752_v36  ;;  %v2172_v10 = vpop.f32.mrf.mxu0 }
 0x17f   : > { %v1487_v20 = vpop.f32.mrf.mxu2 }
 0x180   : > { %v1543_v18 = vadd.f32 %v1487_v20, %v1201_v33  ;;  %v1148_v17 = vpop.f32.mrf.mxu1  ;;  %v1830_v19 = vpop.f32.mrf.mxu3  ;;  %4298 = vmatmul.msk.f32.gmra.mxu0 %vm465_vm1, %v4772_v43 }
 0x181   : > { %v1202_v58 = vadd.f32 %v1148_v17, %v5609_v56  ;;  %v5616_v17 = vld [vmem:[#allocation12_spill] sm:$0xff] }
 0x182   : > { %v1886_v61 = vadd.f32 %v1830_v19, %v1543_v18  ;;  %v2623_v19 = vld [vmem:[#allocation2 + $0x90] sm:$0xff] }
 0x183   : > { %4197 = vmatmul.msk.f32.gmra.mxu1 %vm465_vm1, %v4756_v38 }
 0x184   : > { %v5195_v35 = vadd.f32 %v2172_v10, %v1886_v61  ;;  %4231 = vmatmul.msk.f32.gmra.mxu2 %vm465_vm1, %v2620_v3 }
 0x185   : > { %4265 = vmatmul.msk.f32.gmra.mxu3 %vm465_vm1, %v4764_v40  ;;  %v2175_v36 = vpop.f32.mrf.mxu0  ;;  %v5611_v40 = vld [vmem:[#allocation4_spill] sm:$0xff] }
 0x187   : > { %v1490_v23 = vpop.f32.mrf.mxu2 }
 0x188   : > { %v1544_v45 = vadd.f32 %v1490_v23, %v1202_v58  ;;  %v1151_v21 = vpop.f32.mrf.mxu1  ;;  %v1833_v27 = vpop.f32.mrf.mxu3  ;;  %4299 = vmatmul.msk.f32.gmra.mxu0 %vm465_vm1, %v5610_v62  ;;  %v5618_v58 = vld [vmem:[#allocation5_spill] sm:$0xff] }
 0x189   : > { %v1203_v46 = vadd.f32 %v1151_v21, %v5612_v57  ;;  %v5620_v57 = vld [vmem:[#allocation13_spill] sm:$0xff] }
 0x18a   : > { %v1887_v0 = vadd.f32 %v1833_v27, %v1544_v45 }
 0x18b   : > { %4198 = vmatmul.msk.f32.gmra.mxu1 %vm465_vm1, %v4772_v43 }
 0x18c   : > { %v5205_v38 = vadd.f32 %v2175_v36, %v1887_v0  ;;  %4232 = vmatmul.msk.f32.gmra.mxu2 %vm465_vm1, %v2621_v5  ;;  %v5617_v36 = vld [vmem:[#allocation10_spill] sm:$0xff]  ;;  %v5619_v5 = vld [vmem:[#allocation15_spill] sm:$0xff]  ;;  %v2624_v0 = vld [vmem:[#allocation2 + $0x98] sm:$0xff] }
 0x18d   : > { %4266 = vmatmul.msk.f32.gmra.mxu3 %vm465_vm1, %v5611_v40  ;;  %v2178_v26 = vpop.f32.mrf.mxu0 }
 0x18f   : > { %v1493_v47 = vpop.f32.mrf.mxu2 }
 0x190   : > { %v1545_v14 = vadd.f32 %v1493_v47, %v1203_v46  ;;  %v1154_v2 = vpop.f32.mrf.mxu1  ;;  %v1836_v6 = vpop.f32.mrf.mxu3  ;;  %4300 = vmatmul.msk.f32.gmra.mxu0 %vm465_vm1, %v5613_v31  ;;  %v5621_v47 = vld [vmem:[#allocation8_spill] sm:$0xff] }
 0x191   : > { %v1204_v32 = vadd.f32 %v1154_v2, %v5615_v9 }
 0x192   : > { %v1888_v54 = vadd.f32 %v1836_v6, %v1545_v14 }
 0x193   : > { %4199 = vmatmul.msk.f32.gmra.mxu1 %vm465_vm1, %v5610_v62 }
 0x194   : > { %v5215_v43 = vadd.f32 %v2178_v26, %v1888_v54  ;;  %4233 = vmatmul.msk.f32.gmra.mxu2 %vm465_vm1, %v2622_v11  ;;  %v5622_v54 = vld [vmem:[#allocation18_spill] sm:$0xff] }
 0x195   : > { %4267 = vmatmul.msk.f32.gmra.mxu3 %vm465_vm1, %v5614_v59  ;;  %v2181_v15 = vpop.f32.mrf.mxu0  ;;  %v2625_v59 = vld [vmem:[#allocation2 + $0xa8] sm:$0xff] }
 0x197   : > { %v1496_v10 = vpop.f32.mrf.mxu2 }
 0x198   : > { %v1546_v33 = vadd.f32 %v1496_v10, %v1204_v32  ;;  %v1157_v20 = vpop.f32.mrf.mxu1  ;;  %v1839_v18 = vpop.f32.mrf.mxu3  ;;  %4301 = vmatmul.msk.f32.gmra.mxu0 %vm465_vm1, %v5616_v17  ;;  %v5623_v32 = vld [vmem:[#allocation16_spill] sm:$0xff] }
 0x199   : > { %v1205_v23 = vadd.f32 %v1157_v20, %v5618_v58 }
 0x19a   : > { %v1889_v3 = vadd.f32 %v1839_v18, %v1546_v33  ;;  %v5624_v33 = vld [vmem:[#allocation11_spill] sm:$0xff] }
 0x19b   : > { %4200 = vmatmul.msk.f32.gmra.mxu1 %vm465_vm1, %v5613_v31 }
 0x19c   : > { %v5225_v61 = vadd.f32 %v2181_v15, %v1889_v3  ;;  %4234 = vmatmul.msk.f32.gmra.mxu2 %vm465_vm1, %v2623_v19 }
 0x19d   : > { %4268 = vmatmul.msk.f32.gmra.mxu3 %vm465_vm1, %v5617_v36  ;;  %v2184_v56 = vpop.f32.mrf.mxu0  ;;  %v5625_v36 = vld [vmem:[#allocation22_spill] sm:$0xff] }
 0x19f   : > { %v1499_v45 = vpop.f32.mrf.mxu2 }
 0x1a0   : > { %v1547_v21 = vadd.f32 %v1499_v45, %v1205_v23  ;;  %v1160_v27 = vpop.f32.mrf.mxu1  ;;  %v1842_v62 = vpop.f32.mrf.mxu3  ;;  %4302 = vmatmul.msk.f32.gmra.mxu0 %vm465_vm1, %v5619_v5  ;;  %v5626_v45 = vld [vmem:[#allocation19_spill] sm:$0xff] }
 0x1a1   : > { %v1206_v14 = vadd.f32 %v1160_v27, %v5621_v47  ;;  %v5627_v27 = vld [vmem:[#allocation14_spill] sm:$0xff] }
 0x1a2   : > { %v1890_v40 = vadd.f32 %v1842_v62, %v1547_v21  ;;  %v2627_v47 = vld [vmem:[#allocation2 + $0xc0] sm:$0xff] }
 0x1a3   : > { %4201 = vmatmul.msk.f32.gmra.mxu1 %vm465_vm1, %v5616_v17 }
 0x1a4   : > { %v5235_v26 = vadd.f32 %v2184_v56, %v1890_v40  ;;  %4235 = vmatmul.msk.f32.gmra.mxu2 %vm465_vm1, %v2624_v0  ;;  %v2626_v56 = vld [vmem:[#allocation2 + $0xb0] sm:$0xff] }
 0x1a5   : > { %4269 = vmatmul.msk.f32.gmra.mxu3 %vm465_vm1, %v5620_v57  ;;  %v2187_v46 = vpop.f32.mrf.mxu0 }
 0x1a7   : > { %v1502_v2 = vpop.f32.mrf.mxu2 }
 0x1a8   : > { %v1548_v6 = vadd.f32 %v1502_v2, %v1206_v14  ;;  %v1163_v31 = vpop.f32.mrf.mxu1  ;;  %v1845_v11 = vpop.f32.mrf.mxu3  ;;  %4303 = vmatmul.msk.f32.gmra.mxu0 %vm465_vm1, %v5622_v54 }
 0x1a9   : > { %v1207_v20 = vadd.f32 %v1163_v31, %v5624_v33  ;;  %v5631_v33 = vld [vmem:[#allocation30_spill] sm:$0xff] }
 0x1aa   : > { %v1891_v15 = vadd.f32 %v1845_v11, %v1548_v6  ;;  %v5629_v6 = vld [vmem:[#allocation23_spill] sm:$0xff]  ;;  %v5630_v11 = vld [vmem:[#allocation17_spill] sm:$0xff] }
 0x1ab   : > { %4202 = vmatmul.msk.f32.gmra.mxu1 %vm465_vm1, %v5619_v5 }
 0x1ac   : > { %v5245_v9 = vadd.f32 %v2187_v46, %v1891_v15  ;;  %4236 = vmatmul.msk.f32.gmra.mxu2 %vm465_vm1, %v2625_v59  ;;  %v5628_v46 = vld [vmem:[#allocation26_spill] sm:$0xff] }
 0x1ad   : > { %4270 = vmatmul.msk.f32.gmra.mxu3 %vm465_vm1, %v5623_v32  ;;  %v2190_v10 = vpop.f32.mrf.mxu0 }
 0x1af   : > { %v1505_v18 = vpop.f32.mrf.mxu2 }
 0x1b0   : > { %v1549_v17 = vadd.f32 %v1505_v18, %v1207_v20  ;;  %v1166_v19 = vpop.f32.mrf.mxu1  ;;  %v1848_v3 = vpop.f32.mrf.mxu3  ;;  %4304 = vmatmul.msk.f32.gmra.mxu0 %vm465_vm1, %v5625_v36  ;;  %v2628_v20 = vld [vmem:[#allocation2 + $0xc8] sm:$0xff] }
 0x1b1   : > { %v1208_v62 = vadd.f32 %v1166_v19, %v5627_v27  ;;  %v5632_v19 = vld [vmem:[#allocation27_spill] sm:$0xff] }
 0x1b2   : > { %v1892_v58 = vadd.f32 %v1848_v3, %v1549_v17 }
 0x1b3   : > { %4203 = vmatmul.msk.f32.gmra.mxu1 %vm465_vm1, %v5622_v54 }
 0x1b4   : > { %v5255_v23 = vadd.f32 %v2190_v10, %v1892_v58  ;;  %4237 = vmatmul.msk.f32.gmra.mxu2 %vm465_vm1, %v2626_v56 }
 0x1b5   : > { %4271 = vmatmul.msk.f32.gmra.mxu3 %vm465_vm1, %v5626_v45  ;;  %v2193_v21 = vpop.f32.mrf.mxu0 }
 0x1b7   : > { %v1508_v5 = vpop.f32.mrf.mxu2 }
 0x1b8   : > { %v1550_v0 = vadd.f32 %v1508_v5, %v1208_v62  ;;  %v1169_v40 = vpop.f32.mrf.mxu1  ;;  %v1851_v57 = vpop.f32.mrf.mxu3  ;;  %4305 = vmatmul.msk.f32.gmra.mxu0 %vm465_vm1, %v5628_v46  ;;  %v2629_v62 = vld [vmem:[#allocation2 + $0xd8] sm:$0xff] }
 0x1b9   : > { %v1209_v54 = vadd.f32 %v1169_v40, %v5630_v11  ;;  %v2630_v11 = vld [vmem:[#allocation2 + $0xe0] sm:$0xff] }
 0x1ba   : > { %v1893_v14 = vadd.f32 %v1851_v57, %v1550_v0  ;;  %v5634_v57 = vld [vmem:[#allocation25_spill] sm:$0xff] }
 0x1bb   : > { %4204 = vmatmul.msk.f32.gmra.mxu1 %vm465_vm1, %v5625_v36  ;;  %v5633_v36 = vld [vmem:[#allocation21_spill] sm:$0xff] }
 0x1bc   : > { %v5265_v2 = vadd.f32 %v2193_v21, %v1893_v14  ;;  %4238 = vmatmul.msk.f32.gmra.mxu2 %vm465_vm1, %v2627_v47 }
 0x1bd   : > { %4272 = vmatmul.msk.f32.gmra.mxu3 %vm465_vm1, %v5629_v6  ;;  %v2196_v31 = vpop.f32.mrf.mxu0 }
 0x1bf   : > { %v1511_v59 = vpop.f32.mrf.mxu2 }
 0x1c0   : > { %v1551_v15 = vadd.f32 %v1511_v59, %v1209_v54  ;;  %v1172_v32 = vpop.f32.mrf.mxu1  ;;  %v1854_v10 = vpop.f32.mrf.mxu3  ;;  %4306 = vmatmul.msk.f32.gmra.mxu0 %vm465_vm1, %v5631_v33 }
 0x1c1   : > { %v1210_v56 = vadd.f32 %v1172_v32, %v5633_v36  ;;  %v5636_v36 = vld [vmem:[#allocation31_spill] sm:$0xff] }
 0x1c2   : > { %v1894_v18 = vadd.f32 %v1854_v10, %v1551_v15  ;;  %v5635_v15 = vld [vmem:[#allocation29_spill] sm:$0xff] }
 0x1c3   : > { %4205 = vmatmul.msk.f32.gmra.mxu1 %vm465_vm1, %v5628_v46 }
 0x1c4   : > { %v5275_v17 = vadd.f32 %v2196_v31, %v1894_v18  ;;  %4239 = vmatmul.msk.f32.gmra.mxu2 %vm465_vm1, %v2628_v20 }
 0x1c5   : > { %4273 = vmatmul.msk.f32.gmra.mxu3 %vm465_vm1, %v5632_v19  ;;  %v2199_v3 = vpop.f32.mrf.mxu0  ;;  %v2631_v19 = vld [vmem:[#allocation2 + $0xf0] sm:$0xff] }
 0x1c7   : > { %v1514_v58 = vpop.f32.mrf.mxu2 }
 0x1c8   : > { %v1552_v45 = vadd.f32 %v1514_v58, %v1210_v56  ;;  %v1175_v21 = vpop.f32.mrf.mxu1  ;;  %v1857_v27 = vpop.f32.mrf.mxu3  ;;  %4307 = vmatmul.msk.f32.gmra.mxu0 %vm465_vm1, %v4951_v34 }
 0x1c9   : > { %v1211_v46 = vadd.f32 %v1175_v21, %v5634_v57  ;;  %v5637_v57 = vld [vmem:[#allocation32_spill] sm:$0xff] }
 0x1ca   : > { %v1895_v5 = vadd.f32 %v1857_v27, %v1552_v45 }
 0x1cb   : > { %4206 = vmatmul.msk.f32.gmra.mxu1 %vm465_vm1, %v5631_v33 }
 0x1cc   : > { %v5285_v0 = vadd.f32 %v2199_v3, %v1895_v5  ;;  %4240 = vmatmul.msk.f32.gmra.mxu2 %vm465_vm1, %v2629_v62  ;;  %v2632_v62 = vld [vmem:[#allocation2 + $0xf8] sm:$0xff]  ;;  %v5316_v5 = vld [vmem:[%s5549_s4] ss:$0 sm:$0xff] }
 0x1cd   : > { %4274 = vmatmul.msk.f32.gmra.mxu3 %vm465_vm1, %v4946_v52  ;;  %v2202_v40 = vpop.f32.mrf.mxu0 }
 0x1cf   : > { %v1517_v47 = vpop.f32.mrf.mxu2 }
 0x1d0   : > { %v1553_v14 = vadd.f32 %v1517_v47, %v1211_v46  ;;  %v1178_v6 = vpop.f32.mrf.mxu1  ;;  %v1860_v31 = vpop.f32.mrf.mxu3  ;;  %4308 = vmatmul.msk.f32.gmra.mxu0 %vm465_vm1, %v4968_v28 }
 0x1d1   : > { %v1212_v32 = vadd.f32 %v1178_v6, %v5635_v15 }
 0x1d2   : > { %v1896_v54 = vadd.f32 %v1860_v31, %v1553_v14 }
 0x1d3   : > { %4207 = vmatmul.msk.f32.gmra.mxu1 %vm465_vm1, %v4951_v34 }
 0x1d4   : > { %v5295_v59 = vadd.f32 %v2202_v40, %v1896_v54  ;;  %4241 = vmatmul.msk.f32.gmra.mxu2 %vm465_vm1, %v2630_v11  ;;  %v5323_v40 = vld [vmem:[%s5550_s5] ss:$0 sm:$0xff]  ;;  %v2290_v54 = vld [vmem:[#allocation2 + $0xf2] sm:$0xff] }
 0x1d5   : > { %4275 = vmatmul.msk.f32.gmra.mxu3 %vm465_vm1, %v4961_v1  ;;  %v2205_v52 = vpop.f32.mrf.mxu0 }
 0x1d7   : > { %v1520_v10 = vpop.f32.mrf.mxu2 }
 0x1d8   : > { %v1554_v33 = vadd.f32 %v1520_v10, %v1212_v32  ;;  %v1863_v20 = vpop.f32.mrf.mxu3  ;;  %v2454_v18 = vpop.f32.mrf.mxu1  ;;  %4309 = vmatmul.msk.f32.gmra.mxu0 %vm465_vm1, %v4983_v25 }
 0x1d9   : > { %v2550_v56 = vadd.f32 %v2454_v18, %v5636_v36 }
 0x1da   : > { %v1897_v3 = vadd.f32 %v1863_v20, %v1554_v33  ;;  %v5638_v33 = vld [vmem:[#allocation33_spill] sm:$0xff] }
 0x1db   : > { %4208 = vmatmul.msk.f32.gmra.mxu1 %vm465_vm1, %v4968_v28 }
 0x1dc   : > { %v5305_v34 = vadd.f32 %v2205_v52, %v1897_v3  ;;  %4242 = vmatmul.msk.f32.gmra.mxu2 %vm465_vm1, %v2631_v19  ;;  %v2633_v52 = vld [vmem:[#allocation2 + $0x108] sm:$0xff] }
 0x1dd   : > { %4276 = vmatmul.msk.f32.gmra.mxu3 %vm465_vm1, %v4978_v37  ;;  %v3481_v1 = vpop.f32.mrf.mxu0 }
 0x1df   : > { %v2797_v58 = vpop.f32.mrf.mxu2 }
 0x1e0   : > { %v2893_v45 = vadd.f32 %v2797_v58, %v2550_v56  ;;  %v2457_v21 = vpop.f32.mrf.mxu1  ;;  %v3139_v27 = vpop.f32.mrf.mxu3  ;;  %4310 = vmatmul.msk.f32.gmra.mxu0 %vm465_vm1, %v5000_v44  ;;  %v2291_v58 = vld [vmem:[#allocation2 + $0xfa] sm:$0xff] }
 0x1e1   : > { %v2551_v46 = vadd.f32 %v2457_v21, %v5637_v57 }
 0x1e2   : > { %v3235_v28 = vadd.f32 %v3139_v27, %v2893_v45  ;;  %v2634_v45 = vld [vmem:[#allocation2 + $0x110] sm:$0xff] }
 0x1e3   : > { %4209 = vmatmul.msk.f32.gmra.mxu1 %vm465_vm1, %v4983_v25 }
 0x1e4   : > { %v3577_v37 = vadd.f32 %v3481_v1, %v3235_v28  ;;  %4243 = vmatmul.msk.f32.gmra.mxu2 %vm465_vm1, %v2632_v62 }
 0x1e5   : > { %4277 = vmatmul.msk.f32.gmra.mxu3 %vm465_vm1, %v4993_v48  ;;  %v3484_v44 = vpop.f32.mrf.mxu0 }
 0x1e6   : > { %v3677_v47 = vmul.f32 %v5316_v5, %v3577_v37  ;;  %v3318_v37 = vld [vmem:[#allocation2 + $0x112] sm:$0xff] }
 0x1e7   : > { %v2800_v14 = vpop.f32.mrf.mxu2 }
 0x1e8   : > { %v3713_v25 = vadd.f32 %v5323_v40, %v3677_v47  ;;  %v2894_v6 = vadd.f32 %v2800_v14, %v2551_v46  ;;  %v2460_v31 = vpop.f32.mrf.mxu1  ;;  %v3142_v11 = vpop.f32.mrf.mxu3  ;;  %4311 = vmatmul.msk.f32.gmra.mxu0 %vm465_vm1, %v5015_v60 }
 0x1e9   : > { %v2552_v20 = vadd.f32 %v2460_v31, %v5638_v33  ;;  %v2292_v31 = vld [vmem:[#allocation2 + $0x10a] sm:$0xff] }
 0x1ea   : > { %vm3745_vm3 = vcmp.gt.f32.partialorder %v3713_v25, 0.0  ;;  %v3777_v48 = vmul.f32 0.01, %v3713_v25  ;;  %v3236_v15 = vadd.f32 %v3142_v11, %v2894_v6  ;;  %v2635_v11 = vld [vmem:[#allocation2 + $0x120] sm:$0xff] }
 0x1eb   : > { %4210 = vmatmul.msk.f32.gmra.mxu1 %vm465_vm1, %v2290_v54 }
 0x1ec   : > { %v3809_v32 = vsel %vm3745_vm3, %v3713_v25, %v3777_v48  ;;  %v3578_v10 = vadd.f32 %v3484_v44, %v3236_v15  ;;  %4244 = vmatmul.msk.f32.gmra.mxu2 %vm465_vm1, %v2633_v52  ;;  %v5639_v44 = vld [vmem:[#allocation34_spill] sm:$0xff] }
 0x1ed   : > { %3841 = vst [vmem:[%s5337_s15] sm:$0xff] %v3809_v32  ;;  %4278 = vmatmul.msk.f32.gmra.mxu3 %vm465_vm1, %v5010_v13  ;;  %v3487_v60 = vpop.f32.mrf.mxu0  ;;  %v3319_v32 = vld [vmem:[#allocation2 + $0x122] sm:$0xff] }
 0x1ee   : > { %v3678_v18 = vmul.f32 %v5316_v5, %v3578_v10  ;;  %v5640_v10 = vld [vmem:[#allocation35_spill] sm:$0xff] }
 0x1ef   : > { %v2803_v19 = vpop.f32.mrf.mxu2 }
 0x1f0   : > { %v3714_v3 = vadd.f32 %v5323_v40, %v3678_v18  ;;  %v2895_v1 = vadd.f32 %v2803_v19, %v2552_v20  ;;  %v2463_v36 = vpop.f32.mrf.mxu1  ;;  %v3145_v56 = vpop.f32.mrf.mxu3  ;;  %4312 = vmatmul.msk.f32.gmra.mxu0 %vm465_vm1, %v5032_v53 }
 0x1f1   : > { %v2553_v57 = vadd.f32 %v2463_v36, %v5639_v44  ;;  %v2636_v36 = vld [vmem:[#allocation2 + $0x128] sm:$0xff] }
 0x1f2   : > { %vm3746_vm4 = vcmp.gt.f32.partialorder %v3714_v3, 0.0  ;;  %v3778_v21 = vmul.f32 0.01, %v3714_v3  ;;  %v3237_v13 = vadd.f32 %v3145_v56, %v2895_v1 }
 0x1f3   : > { %4211 = vmatmul.msk.f32.gmra.mxu1 %vm465_vm1, %v2291_v58 }
 0x1f4   : > { %v3810_v27 = vsel %vm3746_vm4, %v3714_v3, %v3778_v21  ;;  %v3579_v62 = vadd.f32 %v3487_v60, %v3237_v13  ;;  %4245 = vmatmul.msk.f32.gmra.mxu2 %vm465_vm1, %v2634_v45  ;;  %v3320_v13 = vld [vmem:[#allocation2 + $0x12a] sm:$0xff] }
 0x1f5   : > { %3842 = vst [vmem:[%s5337_s15 + $0x8] sm:$0xff] %v3810_v27  ;;  %4279 = vmatmul.msk.f32.gmra.mxu3 %vm465_vm1, %v5025_v49  ;;  %v3490_v28 = vpop.f32.mrf.mxu0  ;;  %v5641_v27 = vld [vmem:[#allocation36_spill] sm:$0xff] }
 0x1f6   : > { %v3679_v53 = vmul.f32 %v5316_v5, %v3579_v62 }
 0x1f7   : > { %v2806_v46 = vpop.f32.mrf.mxu2 }
 0x1f8   : > { %v3715_v47 = vadd.f32 %v5323_v40, %v3679_v53  ;;  %v2896_v14 = vadd.f32 %v2806_v46, %v2553_v57  ;;  %v2466_v25 = vpop.f32.mrf.mxu1  ;;  %v3148_v6 = vpop.f32.mrf.mxu3  ;;  %4313 = vmatmul.msk.f32.gmra.mxu0 %vm465_vm1, %v3318_v37 }
 0x1f9   : > { %v2554_v60 = vadd.f32 %v2466_v25, %v5640_v10 }
 0x1fa   : > { %vm3747_vm5 = vcmp.gt.f32.partialorder %v3715_v47, 0.0  ;;  %v3779_v54 = vmul.f32 0.01, %v3715_v47  ;;  %v3238_v49 = vadd.f32 %v3148_v6, %v2896_v14 }
 0x1fb   : > { %4212 = vmatmul.msk.f32.gmra.mxu1 %vm465_vm1, %v2292_v31 }
 0x1fc   : > { %v3811_v52 = vsel %vm3747_vm5, %v3715_v47, %v3779_v54  ;;  %v3580_v48 = vadd.f32 %v3490_v28, %v3238_v49  ;;  %4246 = vmatmul.msk.f32.gmra.mxu2 %vm465_vm1, %v2635_v11  ;;  %v2637_v47 = vld [vmem:[#allocation2 + $0x138] sm:$0xff] }
 0x1fd   : > { %3843 = vst [vmem:[%s5337_s15 + $0x10] sm:$0xff] %v3811_v52  ;;  %4280 = vmatmul.msk.f32.gmra.mxu3 %vm465_vm1, %v5042_v39  ;;  %v3493_v15 = vpop.f32.mrf.mxu0  ;;  %v3321_v54 = vld [vmem:[#allocation2 + $0x13a] sm:$0xff] }
 0x1fe   : > { %v3680_v33 = vmul.f32 %v5316_v5, %v3580_v48 }
 0x1ff   : > { %v2809_v20 = vpop.f32.mrf.mxu2 }
 0x200   : > { %v3716_v18 = vadd.f32 %v5323_v40, %v3680_v33  ;;  %v2897_v19 = vadd.f32 %v2809_v20, %v2554_v60  ;;  %v2469_v3 = vpop.f32.mrf.mxu1  ;;  %v3151_v1 = vpop.f32.mrf.mxu3  ;;  %4314 = vmatmul.msk.f32.gmra.mxu0 %vm465_vm1, %v3319_v32  ;;  %v2638_v33 = vld [vmem:[#allocation2 + $0x140] sm:$0xff] }
 0x201   : > { %v2555_v62 = vadd.f32 %v2469_v3, %v5641_v27 }
 0x202   : > { %vm3748_vm6 = vcmp.gt.f32.partialorder %v3716_v18, 0.0  ;;  %v3780_v56 = vmul.f32 0.01, %v3716_v18  ;;  %v3239_v58 = vadd.f32 %v3151_v1, %v2897_v19  ;;  %v2980_v19 = vld [vmem:[#allocation2 + $0x141] sm:$0xff] }
 0x203   : > { %4213 = vmatmul.msk.f32.gmra.mxu1 %vm465_vm1, %v3318_v37 }
 0x204   : > { %v3812_v39 = vsel %vm3748_vm6, %v3716_v18, %v3780_v56  ;;  %v3581_v45 = vadd.f32 %v3493_v15, %v3239_v58  ;;  %4247 = vmatmul.msk.f32.gmra.mxu2 %vm465_vm1, %v2636_v36  ;;  %v3322_v36 = vld [vmem:[#allocation2 + $0x142] sm:$0xff] }
 0x205   : > { %3844 = vst [vmem:[%s5337_s15 + $0x18] sm:$0xff] %v3812_v39  ;;  %4281 = vmatmul.msk.f32.gmra.mxu3 %vm465_vm1, %v5054_v7  ;;  %v3496_v21 = vpop.f32.mrf.mxu0  ;;  %v2979_v7 = vld [vmem:[#allocation2 + $0x139] sm:$0xff] }
 0x206   : > { %v3681_v28 = vmul.f32 %v5316_v5, %v3581_v45 }
 0x207   : > { %v2812_v44 = vpop.f32.mrf.mxu2 }
 0x208   : > { %v3717_v57 = vadd.f32 %v5323_v40, %v3681_v28  ;;  %v2898_v53 = vadd.f32 %v2812_v44, %v2555_v62  ;;  %v2472_v37 = vpop.f32.mrf.mxu1  ;;  %v3154_v46 = vpop.f32.mrf.mxu3  ;;  %4315 = vmatmul.msk.f32.gmra.mxu0 %vm465_vm1, %v3320_v13  ;;  %v2639_v62 = vld [vmem:[#allocation2 + $0x150] sm:$0xff] }
 0x209   : > { %v2556_v49 = vadd.f32 %v2472_v37, %v5049_v8 }
 0x20a   : > { %vm3749_vm7 = vcmp.gt.f32.partialorder %v3717_v57, 0.0  ;;  %v3781_v14 = vmul.f32 0.01, %v3717_v57  ;;  %v3240_v25 = vadd.f32 %v3154_v46, %v2898_v53  ;;  %v3323_v46 = vld [vmem:[#allocation2 + $0x152] sm:$0xff] }
 0x20b   : > { %4214 = vmatmul.msk.f32.gmra.mxu1 %vm465_vm1, %v3319_v32 }
 0x20c   : > { %v3813_v6 = vsel %vm3749_vm7, %v3717_v57, %v3781_v14  ;;  %v3582_v31 = vadd.f32 %v3496_v21, %v3240_v25  ;;  %4248 = vmatmul.msk.f32.gmra.mxu2 %vm465_vm1, %v2637_v47  ;;  %v2981_v57 = vld [vmem:[#allocation2 + $0x151] sm:$0xff] }
 0x20d   : > { %3845 = vst [vmem:[%s5337_s15 + $0x20] sm:$0xff] %v3813_v6  ;;  %4282 = vmatmul.msk.f32.gmra.mxu3 %vm465_vm1, %v2979_v7  ;;  %v3499_v11 = vpop.f32.mrf.mxu0 }
 0x20e   : > { %v3682_v52 = vmul.f32 %v5316_v5, %v3582_v31 }
 0x20f   : > { %v2815_v48 = vpop.f32.mrf.mxu2 }
 0x210   : > { %v3718_v15 = vadd.f32 %v5323_v40, %v3682_v52  ;;  %v2899_v10 = vadd.f32 %v2815_v48, %v2556_v49  ;;  %v2475_v60 = vpop.f32.mrf.mxu1  ;;  %v3157_v32 = vpop.f32.mrf.mxu3  ;;  %4316 = vmatmul.msk.f32.gmra.mxu0 %vm465_vm1, %v3321_v54  ;;  %v2982_v52 = vld [vmem:[#allocation2 + $0x159] sm:$0xff] }
 0x211   : > { %v2557_v56 = vadd.f32 %v2475_v60, %v5063_v29  ;;  %v522_v48 = vld [vmem:[%s5404_s18] sm:$0xff] }
 0x212   : > { %vm3750_vm8 = vcmp.gt.f32.partialorder %v3718_v15, 0.0  ;;  %v3782_v20 = vmul.f32 0.01, %v3718_v15  ;;  %v3241_v18 = vadd.f32 %v3157_v32, %v2899_v10  ;;  %526 = vst.msk [vmem:[#allocation2 + $0x198] sm:$0xff] %vm465_vm1, %v522_v48  ;;  %v3324_v32 = vld [vmem:[#allocation2 + $0x15a] sm:$0xff] }
 0x213   : > { %4215 = vmatmul.msk.f32.gmra.mxu1 %vm465_vm1, %v3320_v13 }
 0x214   : > { %v3814_v3 = vsel %vm3750_vm8, %v3718_v15, %v3782_v20  ;;  %v3583_v8 = vadd.f32 %v3499_v11, %v3241_v18  ;;  %4249 = vmatmul.msk.f32.gmra.mxu2 %vm465_vm1, %v2638_v33  ;;  %v523_v33 = vld [vmem:[%s5404_s18 + $0x8] sm:$0xff] }
 0x215   : > { %3846 = vst [vmem:[%s5337_s15 + $0x28] sm:$0xff] %v3814_v3  ;;  %4283 = vmatmul.msk.f32.gmra.mxu3 %vm465_vm1, %v2980_v19  ;;  %v3502_v1 = vpop.f32.mrf.mxu0 }
 0x216   : > { %v3683_v58 = vmul.f32 %v5316_v5, %v3583_v8  ;;  %527 = vst.msk [vmem:[#allocation2 + $0x1a0] sm:$0xff] %vm465_vm1, %v523_v33 }
 0x217   : > { %v2818_v39 = vpop.f32.mrf.mxu2 }
 0x218   : > { %v3719_v45 = vadd.f32 %v5323_v40, %v3683_v58  ;;  %v2900_v21 = vadd.f32 %v2818_v39, %v2557_v56  ;;  %v2478_v27 = vpop.f32.mrf.mxu1  ;;  %v3160_v13 = vpop.f32.mrf.mxu3  ;;  %4317 = vmatmul.msk.f32.gmra.mxu0 %vm465_vm1, %v3322_v36  ;;  %v2641_v56 = vld [vmem:[#allocation2 + $0x168] sm:$0xff] }
 0x219   : > { %v2558_v47 = vadd.f32 %v2478_v27, %v5078_v41 }
 0x21a   : > { %vm3751_vm9 = vcmp.gt.f32.partialorder %v3719_v45, 0.0  ;;  %v3783_v28 = vmul.f32 0.01, %v3719_v45  ;;  %v3242_v44 = vadd.f32 %v3160_v13, %v2900_v21  ;;  %v3325_v13 = vld [vmem:[#allocation2 + $0x16a] sm:$0xff] }
 0x21b   : > { %4216 = vmatmul.msk.f32.gmra.mxu1 %vm465_vm1, %v3321_v54  ;;  %v2640_v54 = vld [vmem:[#allocation2 + $0x158] sm:$0xff] }
 0x21c   : > { %v3815_v29 = vsel %vm3751_vm9, %v3719_v45, %v3783_v28  ;;  %v3584_v53 = vadd.f32 %v3502_v1, %v3242_v44  ;;  %4250 = vmatmul.msk.f32.gmra.mxu2 %vm465_vm1, %v2639_v62  ;;  %v2983_v45 = vld [vmem:[#allocation2 + $0x169] sm:$0xff] }
 0x21d   : > { %3847 = vst [vmem:[%s5337_s15 + $0x30] sm:$0xff] %v3815_v29  ;;  %4284 = vmatmul.msk.f32.gmra.mxu3 %vm465_vm1, %v2981_v57  ;;  %v3505_v37 = vpop.f32.mrf.mxu0  ;;  %v524_v62 = vld [vmem:[%s5404_s18 + $0x10] sm:$0x3] }
 0x21e   : > { %v3684_v14 = vmul.f32 %v5316_v5, %v3584_v53  ;;  %528 = vst.msk [vmem:[#allocation2 + $0x1a8] sm:$0x3] %vm468_vm2, %v524_v62 }
 0x21f   : > { %v2821_v25 = vpop.f32.mrf.mxu2 }
 0x220   : > { %v3720_v7 = vadd.f32 %v5323_v40, %v3684_v14  ;;  %v2901_v6 = vadd.f32 %v2821_v25, %v2558_v47  ;;  %v2481_v31 = vpop.f32.mrf.mxu1  ;;  %v3163_v11 = vpop.f32.mrf.mxu3  ;;  %4318 = vmatmul.msk.f32.gmra.mxu0 %vm465_vm1, %v3323_v46  ;;  %v2642_v47 = vld [vmem:[#allocation2 + $0x170] sm:$0xff] }
 0x221   : > { %v2559_v20 = vadd.f32 %v2481_v31, %v5090_v50 }
 0x222   : > { %vm3752_vm10 = vcmp.gt.f32.partialorder %v3720_v7, 0.0  ;;  %v3784_v41 = vmul.f32 0.01, %v3720_v7  ;;  %v3243_v49 = vadd.f32 %v3163_v11, %v2901_v6  ;;  %v3326_v11 = vld [vmem:[#allocation2 + $0x172] sm:$0xff] }
 0x223   : > { %4217 = vmatmul.msk.f32.gmra.mxu1 %vm465_vm1, %v3322_v36 }
 0x224   : > { %v3816_v15 = vsel %vm3752_vm10, %v3720_v7, %v3784_v41  ;;  %v3585_v10 = vadd.f32 %v3505_v37, %v3243_v49  ;;  %4251 = vmatmul.msk.f32.gmra.mxu2 %vm465_vm1, %v2640_v54  ;;  %v2984_v7 = vld [vmem:[#allocation2 + $0x171] sm:$0xff] }
 0x225   : > { %3848 = vst [vmem:[%s5337_s15 + $0x38] sm:$0xff] %v3816_v15  ;;  %4285 = vmatmul.msk.f32.gmra.mxu3 %vm465_vm1, %v2982_v52  ;;  %v3508_v60 = vpop.f32.mrf.mxu0 }
 0x226   : > { %v3685_v18 = vmul.f32 %v5316_v5, %v3585_v10 }
 0x227   : > { %v2824_v19 = vpop.f32.mrf.mxu2 }
 0x228   : > { %v3721_v3 = vadd.f32 %v5323_v40, %v3685_v18  ;;  %v2902_v8 = vadd.f32 %v2824_v19, %v2559_v20  ;;  %v2484_v1 = vpop.f32.mrf.mxu1  ;;  %v3166_v36 = vpop.f32.mrf.mxu3  ;;  %4319 = vmatmul.msk.f32.gmra.mxu0 %vm465_vm1, %v3324_v32  ;;  %v2985_v20 = vld [vmem:[#allocation2 + $0x181] sm:$0xff] }
 0x229   : > { %v2560_v28 = vadd.f32 %v2484_v1, %v5100_v51 }
 0x22a   : > { %vm3753_vm11 = vcmp.gt.f32.partialorder %v3721_v3, 0.0  ;;  %v3785_v58 = vmul.f32 0.01, %v3721_v3  ;;  %v3244_v39 = vadd.f32 %v3166_v36, %v2902_v8 }
 0x22b   : > { %4218 = vmatmul.msk.f32.gmra.mxu1 %vm465_vm1, %v3323_v46 }
 0x22c   : > { %v3817_v50 = vsel %vm3753_vm11, %v3721_v3, %v3785_v58  ;;  %v3586_v21 = vadd.f32 %v3508_v60, %v3244_v39  ;;  %4252 = vmatmul.msk.f32.gmra.mxu2 %vm465_vm1, %v2641_v56  ;;  %v2643_v60 = vld [vmem:[#allocation2 + $0x180] sm:$0xff] }
 0x22d   : > { %3849 = vst [vmem:[%s5337_s15 + $0x40] sm:$0xff] %v3817_v50  ;;  %4286 = vmatmul.msk.f32.gmra.mxu3 %vm465_vm1, %v2983_v45  ;;  %v3511_v27 = vpop.f32.mrf.mxu0  ;;  %v3327_v3 = vld [vmem:[#allocation2 + $0x182] sm:$0xff] }
 0x22e   : > { %v3686_v44 = vmul.f32 %v5316_v5, %v3586_v21  ;;  %v2644_v50 = vld [vmem:[#allocation2 + $0x188] sm:$0xff] }
 0x22f   : > { %v2827_v57 = vpop.f32.mrf.mxu2 }
 0x230   : > { %v3722_v29 = vadd.f32 %v5323_v40, %v3686_v44  ;;  %v2903_v53 = vadd.f32 %v2827_v57, %v2560_v28  ;;  %v2487_v37 = vpop.f32.mrf.mxu1  ;;  %v3169_v46 = vpop.f32.mrf.mxu3  ;;  %4320 = vmatmul.msk.f32.gmra.mxu0 %vm465_vm1, %v3325_v13  ;;  %v3328_v44 = vld [vmem:[#allocation2 + $0x18a] sm:$0xff] }
 0x231   : > { %v2561_v54 = vadd.f32 %v2487_v37, %v5110_v4 }
 0x232   : > { %vm3754_vm12 = vcmp.gt.f32.partialorder %v3722_v29, 0.0  ;;  %v3786_v14 = vmul.f32 0.01, %v3722_v29  ;;  %v3245_v25 = vadd.f32 %v3169_v46, %v2903_v53 }
 0x233   : > { %4219 = vmatmul.msk.f32.gmra.mxu1 %vm465_vm1, %v3324_v32 }
 0x234   : > { %v3818_v51 = vsel %vm3754_vm12, %v3722_v29, %v3786_v14  ;;  %v3587_v6 = vadd.f32 %v3511_v27, %v3245_v25  ;;  %4253 = vmatmul.msk.f32.gmra.mxu2 %vm465_vm1, %v2642_v47  ;;  %v2645_v25 = vld [vmem:[#allocation2 + $0x198] sm:$0xff] }
 0x235   : > { %3850 = vst [vmem:[%s5337_s15 + $0x48] sm:$0xff] %v3818_v51  ;;  %4287 = vmatmul.msk.f32.gmra.mxu3 %vm465_vm1, %v2984_v7  ;;  %v3514_v31 = vpop.f32.mrf.mxu0 }
 0x236   : > { %v3687_v41 = vmul.f32 %v5316_v5, %v3587_v6  ;;  %v2987_v6 = vld [vmem:[#allocation2 + $0x199] sm:$0xff] }
 0x237   : > { %v2830_v49 = vpop.f32.mrf.mxu2 }
 0x238   : > { %v3723_v52 = vadd.f32 %v5323_v40, %v3687_v41  ;;  %v2904_v48 = vadd.f32 %v2830_v49, %v2561_v54  ;;  %v2490_v15 = vpop.f32.mrf.mxu1  ;;  %v3172_v10 = vpop.f32.mrf.mxu3  ;;  %4321 = vmatmul.msk.f32.gmra.mxu0 %vm465_vm1, %v3326_v11  ;;  %v3329_v54 = vld [vmem:[#allocation2 + $0x19a] sm:$0xff] }
 0x239   : > { %v2562_v8 = vadd.f32 %v2490_v15, %v5118_v42 }
 0x23a   : > { %vm3755_vm13 = vcmp.gt.f32.partialorder %v3723_v52, 0.0  ;;  %v3787_v32 = vmul.f32 0.01, %v3723_v52  ;;  %v3246_v33 = vadd.f32 %v3172_v10, %v2904_v48 }
 0x23b   : > { %4220 = vmatmul.msk.f32.gmra.mxu1 %vm465_vm1, %v3325_v13  ;;  %v2986_v13 = vld [vmem:[#allocation2 + $0x189] sm:$0xff] }
 0x23c   : > { %v3819_v18 = vsel %vm3755_vm13, %v3723_v52, %v3787_v32  ;;  %v3588_v4 = vadd.f32 %v3514_v31, %v3246_v33  ;;  %4254 = vmatmul.msk.f32.gmra.mxu2 %vm465_vm1, %v2643_v60  ;;  %v2646_v32 = vld [vmem:[#allocation2 + $0x1a0] sm:$0xff] }
 0x23d   : > { %3851 = vst [vmem:[%s5337_s15 + $0x50] sm:$0xff] %v3819_v18  ;;  %4288 = vmatmul.msk.f32.gmra.mxu3 %vm465_vm1, %v2985_v20  ;;  %v3517_v19 = vpop.f32.mrf.mxu0  ;;  %v2988_v18 = vld [vmem:[#allocation2 + $0x1a1] sm:$0xff] }
 0x23e   : > { %v3688_v1 = vmul.f32 %v5316_v5, %v3588_v4 }
 0x23f   : > { %v2833_v36 = vpop.f32.mrf.mxu2 }
 0x240   : > { %v3724_v56 = vadd.f32 %v5323_v40, %v3688_v1  ;;  %v2905_v58 = vadd.f32 %v2833_v36, %v2562_v8  ;;  %v2493_v39 = vpop.f32.mrf.mxu1  ;;  %v3175_v45 = vpop.f32.mrf.mxu3  ;;  %4322 = vmatmul.msk.f32.gmra.mxu0 %vm465_vm1, %v3327_v3 }
 0x241   : > { %v2563_v57 = vadd.f32 %v2493_v39, %v5126_v63 }
 0x242   : > { %vm3756_vm14 = vcmp.gt.f32.partialorder %v3724_v56, 0.0  ;;  %v3788_v21 = vmul.f32 0.01, %v3724_v56  ;;  %v3247_v27 = vadd.f32 %v3175_v45, %v2905_v58 }
 0x243   : > { %4221 = vmatmul.msk.f32.gmra.mxu1 %vm465_vm1, %v3326_v11 }
 0x244   : > { %v3820_v62 = vsel %vm3756_vm14, %v3724_v56, %v3788_v21  ;;  %v3589_v42 = vadd.f32 %v3517_v19, %v3247_v27  ;;  %4255 = vmatmul.msk.f32.gmra.mxu2 %vm465_vm1, %v2644_v50 }
 0x245   : > { %3852 = vst [vmem:[%s5337_s15 + $0x58] sm:$0xff] %v3820_v62  ;;  %4289 = vmatmul.msk.f32.gmra.mxu3 %vm465_vm1, %v2986_v13  ;;  %v3520_v28 = vpop.f32.mrf.mxu0 }
 0x246   : > { %v3689_v29 = vmul.f32 %v5316_v5, %v3589_v42 }
 0x247   : > { %v2836_v53 = vpop.f32.mrf.mxu2 }
 0x248   : > { %v3725_v37 = vadd.f32 %v5323_v40, %v3689_v29  ;;  %v2906_v46 = vadd.f32 %v2836_v53, %v2563_v57  ;;  %v2496_v47 = vpop.f32.mrf.mxu1  ;;  %v3178_v14 = vpop.f32.mrf.mxu3  ;;  %4323 = vmatmul.msk.f32.gmra.mxu0 %vm465_vm1, %v3328_v44 }
 0x249   : > { %v2564_v41 = vadd.f32 %v2496_v47, %v5133_v12 }
 0x24a   : > { %vm3757_vm15 = vcmp.gt.f32.partialorder %v3725_v37, 0.0  ;;  %v3789_v7 = vmul.f32 0.01, %v3725_v37  ;;  %v3248_v51 = vadd.f32 %v3178_v14, %v2906_v46 }
 0x24b   : > { %4222 = vmatmul.msk.f32.gmra.mxu1 %vm465_vm1, %v3327_v3  ;;  %v3330_v3 = vld [vmem:[#allocation2 + $0x1a2] sm:$0xff] }
 0x24c   : > { %v3821_v31 = vsel %vm3757_vm15, %v3725_v37, %v3789_v7  ;;  %v3590_v63 = vadd.f32 %v3520_v28, %v3248_v51  ;;  %4256 = vmatmul.msk.f32.gmra.mxu2 %vm465_vm1, %v2645_v25 }
 0x24d   : > { %3853 = vst [vmem:[%s5337_s15 + $0x60] sm:$0xff] %v3821_v31  ;;  %4290 = vmatmul.msk.f32.gmra.mxu3 %vm465_vm1, %v2987_v6  ;;  %v3523_v11 = vpop.f32.mrf.mxu0 }
 0x24e   : > { %v3690_v49 = vmul.f32 %v5316_v5, %v3590_v63 }
 0x24f   : > { %v2839_v52 = vpop.f32.mrf.mxu2 }
 0x250   : > { %v3726_v48 = vadd.f32 %v5323_v40, %v3690_v49  ;;  %v2907_v15 = vadd.f32 %v2839_v52, %v2564_v41  ;;  %v2499_v10 = vpop.f32.mrf.mxu1  ;;  %v3181_v60 = vpop.f32.mrf.mxu3  ;;  %4324 = vmatmul.msk.f32.gmra.mxu0 %vm465_vm1, %v3329_v54 }
 0x251   : > { %v2565_v8 = vadd.f32 %v2499_v10, %v5141_v55 }
 0x252   : > { %vm3758_vm0 = vcmp.gt.f32.partialorder %v3726_v48, 0.0  ;;  %v3790_v33 = vmul.f32 0.01, %v3726_v48  ;;  %v3249_v20 = vadd.f32 %v3181_v60, %v2907_v15 }
 0x253   : > { %4223 = vmatmul.msk.f32.gmra.mxu1 %vm465_vm1, %v3328_v44 }
 0x254   : > { %v3822_v4 = vsel %vm3758_vm0, %v3726_v48, %v3790_v33  ;;  %v3591_v12 = vadd.f32 %v3523_v11, %v3249_v20  ;;  %4257 = vmatmul.msk.f32.gmra.mxu2 %vm465_vm1, %v2646_v32 }
 0x255   : > { %3854 = vst [vmem:[%s5337_s15 + $0x68] sm:$0xff] %v3822_v4  ;;  %4291 = vmatmul.msk.f32.gmra.mxu3 %vm465_vm1, %v2988_v18  ;;  %v3526_v19 = vpop.f32.mrf.mxu0 }
 0x256   : > { %v3691_v1 = vmul.f32 %v5316_v5, %v3591_v12 }
 0x257   : > { %v2842_v36 = vpop.f32.mrf.mxu2 }
 0x258   : > { %v3727_v56 = vadd.f32 %v5323_v40, %v3691_v1  ;;  %v2908_v58 = vadd.f32 %v2842_v36, %v2565_v8  ;;  %v2502_v39 = vpop.f32.mrf.mxu1  ;;  %v3184_v45 = vpop.f32.mrf.mxu3  ;;  %4325 = vmatmul.msk.f32.gmra.mxu0 %vm465_vm1, %v3330_v3 }
 0x259   : > { %v2566_v55 = vadd.f32 %v2502_v39, %v5152_v22 }
 0x25a   : > { %vm3759_vm2 = vcmp.gt.f32.partialorder %v3727_v56, 0.0  ;;  %v3791_v50 = vmul.f32 0.01, %v3727_v56  ;;  %v3250_v21 = vadd.f32 %v3184_v45, %v2908_v58 }
 0x25c   : > { %v3823_v27 = vsel %vm3759_vm2, %v3727_v56, %v3791_v50  ;;  %v3592_v13 = vadd.f32 %v3526_v19, %v3250_v21 }
 0x25d   : > { %3855 = vst [vmem:[%s5337_s15 + $0x70] sm:$0xff] %v3823_v27  ;;  %v3529_v62 = vpop.f32.mrf.mxu0 }
 0x25e   : > { %v3692_v42 = vmul.f32 %v5316_v5, %v3592_v13 }
 0x25f   : > { %v2845_v28 = vpop.f32.mrf.mxu2 }
 0x260   : > { %v3728_v44 = vadd.f32 %v5323_v40, %v3692_v42  ;;  %v2909_v57 = vadd.f32 %v2845_v28, %v2566_v55  ;;  %v2505_v29 = vpop.f32.mrf.mxu1  ;;  %v3187_v53 = vpop.f32.mrf.mxu3 }
 0x261   : > { %v2567_v7 = vadd.f32 %v2505_v29, %v5163_v24 }
 0x262   : > { %vm3760_vm3 = vcmp.gt.f32.partialorder %v3728_v44, 0.0  ;;  %v3792_v37 = vmul.f32 0.01, %v3728_v44  ;;  %v3251_v46 = vadd.f32 %v3187_v53, %v2909_v57 }
 0x264   : > { %v3824_v47 = vsel %vm3760_vm3, %v3728_v44, %v3792_v37  ;;  %v3593_v14 = vadd.f32 %v3529_v62, %v3251_v46 }
 0x265   : > { %3856 = vst [vmem:[%s5337_s15 + $0x78] sm:$0xff] %v3824_v47  ;;  %v3532_v25 = vpop.f32.mrf.mxu0 }
 0x266   : > { %v3693_v22 = vmul.f32 %v5316_v5, %v3593_v14 }
 0x267   : > { %v2848_v51 = vpop.f32.mrf.mxu2 }
 0x268   : > { %v3729_v6 = vadd.f32 %v5323_v40, %v3693_v22  ;;  %v2910_v31 = vadd.f32 %v2848_v51, %v2567_v7  ;;  %v2508_v63 = vpop.f32.mrf.mxu1  ;;  %v3190_v11 = vpop.f32.mrf.mxu3 }
 0x269   : > { %v2568_v15 = vadd.f32 %v2508_v63, %v5174_v30 }
 0x26a   : > { %vm3761_vm1 = vcmp.gt.f32.partialorder %v3729_v6, 0.0  ;;  %v3793_v54 = vmul.f32 0.01, %v3729_v6  ;;  %v3252_v41 = vadd.f32 %v3190_v11, %v2910_v31 }
 0x26c   : > { %v3825_v49 = vsel %vm3761_vm1, %v3729_v6, %v3793_v54  ;;  %v3594_v52 = vadd.f32 %v3532_v25, %v3252_v41 }
 0x26d   : > { %3857 = vst [vmem:[%s5337_s15 + $0x80] sm:$0xff] %v3825_v49  ;;  %v3535_v48 = vpop.f32.mrf.mxu0 }
 0x26e   : > { %v3694_v24 = vmul.f32 %v5316_v5, %v3594_v52 }
 0x26f   : > { %v2851_v10 = vpop.f32.mrf.mxu2 }
 0x270   : > { %v3730_v60 = vadd.f32 %v5323_v40, %v3694_v24  ;;  %v2911_v32 = vadd.f32 %v2851_v10, %v2568_v15  ;;  %v2511_v33 = vpop.f32.mrf.mxu1  ;;  %v3193_v20 = vpop.f32.mrf.mxu3 }
 0x271   : > { %v2569_v8 = vadd.f32 %v2511_v33, %v5185_v16 }
 0x272   : > { %vm3762_vm4 = vcmp.gt.f32.partialorder %v3730_v60, 0.0  ;;  %v3794_v18 = vmul.f32 0.01, %v3730_v60  ;;  %v3253_v4 = vadd.f32 %v3193_v20, %v2911_v32 }
 0x274   : > { %v3826_v12 = vsel %vm3762_vm4, %v3730_v60, %v3794_v18  ;;  %v3595_v19 = vadd.f32 %v3535_v48, %v3253_v4 }
 0x275   : > { %3858 = vst [vmem:[%s5337_s15 + $0x88] sm:$0xff] %v3826_v12  ;;  %v3538_v3 = vpop.f32.mrf.mxu0 }
 0x276   : > { %v3695_v30 = vmul.f32 %v5316_v5, %v3595_v19 }
 0x277   : > { %v2854_v1 = vpop.f32.mrf.mxu2 }
 0x278   : > { %v3731_v36 = vadd.f32 %v5323_v40, %v3695_v30  ;;  %v2912_v56 = vadd.f32 %v2854_v1, %v2569_v8  ;;  %v2514_v58 = vpop.f32.mrf.mxu1  ;;  %v3196_v39 = vpop.f32.mrf.mxu3 }
 0x279   : > { %v2570_v62 = vadd.f32 %v2514_v58, %v5195_v35 }
 0x27a   : > { %vm3763_vm5 = vcmp.gt.f32.partialorder %v3731_v36, 0.0  ;;  %v3795_v45 = vmul.f32 0.01, %v3731_v36  ;;  %v3254_v50 = vadd.f32 %v3196_v39, %v2912_v56 }
 0x27c   : > { %v3827_v21 = vsel %vm3763_vm5, %v3731_v36, %v3795_v45  ;;  %v3596_v27 = vadd.f32 %v3538_v3, %v3254_v50 }
 0x27d   : > { %3859 = vst [vmem:[%s5337_s15 + $0x90] sm:$0xff] %v3827_v21  ;;  %v3541_v13 = vpop.f32.mrf.mxu0 }
 0x27e   : > { %v3696_v16 = vmul.f32 %v5316_v5, %v3596_v27 }
 0x27f   : > { %v2857_v55 = vpop.f32.mrf.mxu2 }
 0x280   : > { %v3732_v42 = vadd.f32 %v5323_v40, %v3696_v16  ;;  %v2913_v28 = vadd.f32 %v2857_v55, %v2570_v62  ;;  %v2517_v44 = vpop.f32.mrf.mxu1  ;;  %v3199_v57 = vpop.f32.mrf.mxu3 }
 0x281   : > { %v2571_v14 = vadd.f32 %v2517_v44, %v5205_v38 }
 0x282   : > { %vm3764_vm6 = vcmp.gt.f32.partialorder %v3732_v42, 0.0  ;;  %v3796_v29 = vmul.f32 0.01, %v3732_v42  ;;  %v3255_v53 = vadd.f32 %v3199_v57, %v2913_v28 }
 0x284   : > { %v3828_v37 = vsel %vm3764_vm6, %v3732_v42, %v3796_v29  ;;  %v3597_v46 = vadd.f32 %v3541_v13, %v3255_v53 }
 0x285   : > { %3860 = vst [vmem:[%s5337_s15 + $0x98] sm:$0xff] %v3828_v37  ;;  %v3544_v47 = vpop.f32.mrf.mxu0 }
 0x286   : > { %v3697_v35 = vmul.f32 %v5316_v5, %v3597_v46 }
 0x287   : > { %v2860_v25 = vpop.f32.mrf.mxu2 }
 0x288   : > { %v3733_v7 = vadd.f32 %v5323_v40, %v3697_v35  ;;  %v2914_v22 = vadd.f32 %v2860_v25, %v2571_v14  ;;  %v2520_v51 = vpop.f32.mrf.mxu1  ;;  %v3202_v6 = vpop.f32.mrf.mxu3 }
 0x289   : > { %v2572_v49 = vadd.f32 %v2520_v51, %v5215_v43 }
 0x28a   : > { %vm3765_vm7 = vcmp.gt.f32.partialorder %v3733_v7, 0.0  ;;  %v3797_v31 = vmul.f32 0.01, %v3733_v7  ;;  %v3256_v63 = vadd.f32 %v3202_v6, %v2914_v22 }
 0x28c   : > { %v3829_v11 = vsel %vm3765_vm7, %v3733_v7, %v3797_v31  ;;  %v3598_v54 = vadd.f32 %v3544_v47, %v3256_v63 }
 0x28d   : > { %3861 = vst [vmem:[%s5337_s15 + $0xa0] sm:$0xff] %v3829_v11  ;;  %v3547_v41 = vpop.f32.mrf.mxu0 }
 0x28e   : > { %v3698_v38 = vmul.f32 %v5316_v5, %v3598_v54 }
 0x28f   : > { %v2863_v52 = vpop.f32.mrf.mxu2 }
 0x290   : > { %v3734_v48 = vadd.f32 %v5323_v40, %v3698_v38  ;;  %v2915_v15 = vadd.f32 %v2863_v52, %v2572_v49  ;;  %v2523_v24 = vpop.f32.mrf.mxu1  ;;  %v3205_v10 = vpop.f32.mrf.mxu3 }
 0x291   : > { %v2573_v4 = vadd.f32 %v2523_v24, %v5225_v61 }
 0x292   : > { %vm3766_vm8 = vcmp.gt.f32.partialorder %v3734_v48, 0.0  ;;  %v3798_v60 = vmul.f32 0.01, %v3734_v48  ;;  %v3257_v32 = vadd.f32 %v3205_v10, %v2915_v15 }
 0x294   : > { %v3830_v33 = vsel %vm3766_vm8, %v3734_v48, %v3798_v60  ;;  %v3599_v20 = vadd.f32 %v3547_v41, %v3257_v32 }
 0x295   : > { %3862 = vst [vmem:[%s5337_s15 + $0xa8] sm:$0xff] %v3830_v33  ;;  %v3550_v18 = vpop.f32.mrf.mxu0 }
 0x296   : > { %v3699_v43 = vmul.f32 %v5316_v5, %v3599_v20 }
 0x297   : > { %v2866_v12 = vpop.f32.mrf.mxu2 }
 0x298   : > { %v3735_v19 = vadd.f32 %v5323_v40, %v3699_v43  ;;  %v2916_v3 = vadd.f32 %v2866_v12, %v2573_v4  ;;  %v2526_v8 = vpop.f32.mrf.mxu1  ;;  %v3208_v30 = vpop.f32.mrf.mxu3 }
 0x299   : > { %v2574_v45 = vadd.f32 %v2526_v8, %v5235_v26 }
 0x29a   : > { %vm3767_vm9 = vcmp.gt.f32.partialorder %v3735_v19, 0.0  ;;  %v3799_v1 = vmul.f32 0.01, %v3735_v19  ;;  %v3258_v36 = vadd.f32 %v3208_v30, %v2916_v3 }
 0x29c   : > { %v3831_v56 = vsel %vm3767_vm9, %v3735_v19, %v3799_v1  ;;  %v3600_v58 = vadd.f32 %v3550_v18, %v3258_v36 }
 0x29d   : > { %3863 = vst [vmem:[%s5337_s15 + $0xb0] sm:$0xff] %v3831_v56  ;;  %v3553_v39 = vpop.f32.mrf.mxu0 }
 0x29e   : > { %v3700_v61 = vmul.f32 %v5316_v5, %v3600_v58 }
 0x29f   : > { %v2869_v50 = vpop.f32.mrf.mxu2 }
 0x2a0   : > { %v3736_v21 = vadd.f32 %v5323_v40, %v3700_v61  ;;  %v2917_v27 = vadd.f32 %v2869_v50, %v2574_v45  ;;  %v2529_v13 = vpop.f32.mrf.mxu1  ;;  %v3211_v62 = vpop.f32.mrf.mxu3 }
 0x2a1   : > { %v2575_v57 = vadd.f32 %v2529_v13, %v5245_v9 }
 0x2a2   : > { %vm3768_vm10 = vcmp.gt.f32.partialorder %v3736_v21, 0.0  ;;  %v3800_v16 = vmul.f32 0.01, %v3736_v21  ;;  %v3259_v55 = vadd.f32 %v3211_v62, %v2917_v27 }
 0x2a4   : > { %v3832_v42 = vsel %vm3768_vm10, %v3736_v21, %v3800_v16  ;;  %v3601_v28 = vadd.f32 %v3553_v39, %v3259_v55 }
 0x2a5   : > { %3864 = vst [vmem:[%s5337_s15 + $0xb8] sm:$0xff] %v3832_v42  ;;  %v3556_v44 = vpop.f32.mrf.mxu0 }
 0x2a6   : > { %v3701_v26 = vmul.f32 %v5316_v5, %v3601_v28 }
 0x2a7   : > { %v2872_v29 = vpop.f32.mrf.mxu2 }
 0x2a8   : > { %v3737_v53 = vadd.f32 %v5323_v40, %v3701_v26  ;;  %v2918_v37 = vadd.f32 %v2872_v29, %v2575_v57  ;;  %v2532_v46 = vpop.f32.mrf.mxu1  ;;  %v3214_v47 = vpop.f32.mrf.mxu3 }
 0x2a9   : > { %v2576_v51 = vadd.f32 %v2532_v46, %v5255_v23 }
 0x2aa   : > { %vm3769_vm11 = vcmp.gt.f32.partialorder %v3737_v53, 0.0  ;;  %v3801_v14 = vmul.f32 0.01, %v3737_v53  ;;  %v3260_v35 = vadd.f32 %v3214_v47, %v2918_v37 }
 0x2ac   : > { %v3833_v25 = vsel %vm3769_vm11, %v3737_v53, %v3801_v14  ;;  %v3602_v7 = vadd.f32 %v3556_v44, %v3260_v35 }
 0x2ad   : > { %3865 = vst [vmem:[%s5337_s15 + $0xc0] sm:$0xff] %v3833_v25  ;;  %v3559_v22 = vpop.f32.mrf.mxu0 }
 0x2ae   : > { %v3702_v9 = vmul.f32 %v5316_v5, %v3602_v7 }
 0x2af   : > { %v2875_v6 = vpop.f32.mrf.mxu2 }
 0x2b0   : > { %v3738_v31 = vadd.f32 %v5323_v40, %v3702_v9  ;;  %v2919_v63 = vadd.f32 %v2875_v6, %v2576_v51  ;;  %v2535_v11 = vpop.f32.mrf.mxu1  ;;  %v3217_v54 = vpop.f32.mrf.mxu3 }
 0x2b1   : > { %v2577_v15 = vadd.f32 %v2535_v11, %v5265_v2 }
 0x2b2   : > { %vm3770_vm12 = vcmp.gt.f32.partialorder %v3738_v31, 0.0  ;;  %v3802_v41 = vmul.f32 0.01, %v3738_v31  ;;  %v3261_v49 = vadd.f32 %v3217_v54, %v2919_v63 }
 0x2b4   : > { %v3834_v38 = vsel %vm3770_vm12, %v3738_v31, %v3802_v41  ;;  %v3603_v52 = vadd.f32 %v3559_v22, %v3261_v49 }
 0x2b5   : > { %3866 = vst [vmem:[%s5337_s15 + $0xc8] sm:$0xff] %v3834_v38  ;;  %v3562_v48 = vpop.f32.mrf.mxu0 }
 0x2b6   : > { %v3703_v23 = vmul.f32 %v5316_v5, %v3603_v52 }
 0x2b7   : > { %v2878_v24 = vpop.f32.mrf.mxu2 }
 0x2b8   : > { %v3739_v10 = vadd.f32 %v5323_v40, %v3703_v23  ;;  %v2920_v60 = vadd.f32 %v2878_v24, %v2577_v15  ;;  %v2538_v32 = vpop.f32.mrf.mxu1  ;;  %v3220_v33 = vpop.f32.mrf.mxu3 }
 0x2b9   : > { %v2578_v19 = vadd.f32 %v2538_v32, %v5275_v17 }
 0x2ba   : > { %vm3771_vm13 = vcmp.gt.f32.partialorder %v3739_v10, 0.0  ;;  %v3803_v20 = vmul.f32 0.01, %v3739_v10  ;;  %v3262_v18 = vadd.f32 %v3220_v33, %v2920_v60 }
 0x2bc   : > { %v3835_v4 = vsel %vm3771_vm13, %v3739_v10, %v3803_v20  ;;  %v3604_v43 = vadd.f32 %v3562_v48, %v3262_v18 }
 0x2bd   : > { %3867 = vst [vmem:[%s5337_s15 + $0xd0] sm:$0xff] %v3835_v4  ;;  %v3565_v12 = vpop.f32.mrf.mxu0 }
 0x2be   : > { %v3704_v2 = vmul.f32 %v5316_v5, %v3604_v43 }
 0x2bf   : > { %v2881_v3 = vpop.f32.mrf.mxu2 }
 0x2c0   : > { %v3740_v8 = vadd.f32 %v5323_v40, %v3704_v2  ;;  %v2921_v30 = vadd.f32 %v2881_v3, %v2578_v19  ;;  %v2541_v1 = vpop.f32.mrf.mxu1  ;;  %v3223_v36 = vpop.f32.mrf.mxu3 }
 0x2c1   : > { %v2579_v50 = vadd.f32 %v2541_v1, %v5285_v0  ;;  %v4365_v0 = vld [vmem:[%s5549_s4] ss:$0 sm:$0xff] }
 0x2c2   : > { %vm3772_vm14 = vcmp.gt.f32.partialorder %v3740_v8, 0.0  ;;  %v3804_v56 = vmul.f32 0.01, %v3740_v8  ;;  %v3263_v58 = vadd.f32 %v3223_v36, %v2921_v30 }
 0x2c4   : > { %v3836_v39 = vsel %vm3772_vm14, %v3740_v8, %v3804_v56  ;;  %v3605_v45 = vadd.f32 %v3565_v12, %v3263_v58 }
 0x2c5   : > { %3868 = vst [vmem:[%s5337_s15 + $0xd8] sm:$0xff] %v3836_v39  ;;  %v3568_v61 = vpop.f32.mrf.mxu0 }
 0x2c6   : > { %v3705_v17 = vmul.f32 %v5316_v5, %v3605_v45 }
 0x2c7   : > { %v2884_v21 = vpop.f32.mrf.mxu2 }
 0x2c8   : > { %v3741_v27 = vadd.f32 %v5323_v40, %v3705_v17  ;;  %v2922_v13 = vadd.f32 %v2884_v21, %v2579_v50  ;;  %v3226_v62 = vpop.f32.mrf.mxu3  ;;  %v2544_v16 = vpop.f32.mrf.mxu1  ;;  %v4366_v40 = vld [vmem:[%s5550_s5] ss:$0 sm:$0xff] }
 0x2c9   : > { %v2580_v57 = vadd.f32 %v2544_v16, %v5295_v59 }
 0x2ca   : > { %vm3773_vm15 = vcmp.gt.f32.partialorder %v3741_v27, 0.0  ;;  %v3805_v55 = vmul.f32 0.01, %v3741_v27  ;;  %v3264_v42 = vadd.f32 %v3226_v62, %v2922_v13 }
 0x2cc   : > { %v3837_v28 = vsel %vm3773_vm15, %v3741_v27, %v3805_v55  ;;  %v3606_v44 = vadd.f32 %v3568_v61, %v3264_v42 }
 0x2cd   : > { %3869 = vst [vmem:[%s5337_s15 + $0xe0] sm:$0xff] %v3837_v28  ;;  %v3571_v29 = vpop.f32.mrf.mxu0 }
 0x2ce   : > { %v3706_v5 = vmul.f32 %v4365_v0, %v3606_v44 }
 0x2cf   : > { %v2887_v26 = vpop.f32.mrf.mxu2 }
 0x2d0   : > { %v3742_v53 = vadd.f32 %v4366_v40, %v3706_v5  ;;  %v2923_v37 = vadd.f32 %v2887_v26, %v2580_v57  ;;  %v3229_v46 = vpop.f32.mrf.mxu3  ;;  %v2547_v35 = vpop.f32.mrf.mxu1 }
 0x2d1   : > { %v2581_v7 = vadd.f32 %v2547_v35, %v5305_v34 }
 0x2d2   : > { %vm3774_vm0 = vcmp.gt.f32.partialorder %v3742_v53, 0.0  ;;  %v3806_v47 = vmul.f32 0.01, %v3742_v53  ;;  %v3265_v14 = vadd.f32 %v3229_v46, %v2923_v37 }
 0x2d4   : > { %v3838_v59 = vsel %vm3774_vm0, %v3742_v53, %v3806_v47  ;;  %v3607_v25 = vadd.f32 %v3571_v29, %v3265_v14 }
 0x2d5   : > { %3870 = vst [vmem:[%s5337_s15 + $0xe8] sm:$0xff] %v3838_v59  ;;  %v3574_v63 = vpop.f32.mrf.mxu0 }
 0x2d6   : > { %v3707_v22 = vmul.f32 %v4365_v0, %v3607_v25 }
 0x2d7   : > { %v2890_v51 = vpop.f32.mrf.mxu2 }
 0x2d8   : > { %v3743_v9 = vadd.f32 %v4366_v40, %v3707_v22  ;;  %v2924_v6 = vadd.f32 %v2890_v51, %v2581_v7  ;;  %v3232_v31 = vpop.f32.mrf.mxu3 }
 0x2da   : > { %vm3775_vm2 = vcmp.gt.f32.partialorder %v3743_v9, 0.0  ;;  %v3807_v11 = vmul.f32 0.01, %v3743_v9  ;;  %v3266_v54 = vadd.f32 %v3232_v31, %v2924_v6 }
 0x2dc   : > { %v3839_v41 = vsel %vm3775_vm2, %v3743_v9, %v3807_v11  ;;  %v3608_v49 = vadd.f32 %v3574_v63, %v3266_v54 }
 0x2dd   : > { %3871 = vst [vmem:[%s5337_s15 + $0xf0] sm:$0xff] %v3839_v41 }
 0x2de   : > { %v3708_v38 = vmul.f32 %v4365_v0, %v3608_v49 }
 0x2e0   : > { %v3744_v52 = vadd.f32 %v4366_v40, %v3708_v38 }
 0x2e2   : > { %vm3776_vm3 = vcmp.gt.f32.partialorder %v3744_v52, 0.0  ;;  %v3808_v48 = vmul.f32 0.01, %v3744_v52 }
 0x2e4   : > { %v3840_v15 = vsel %vm3776_vm3, %v3744_v52, %v3808_v48 }
 0x2e5   : > { %3872 = vst [vmem:[%s5337_s15 + $0xf8] sm:$0xff] %v3840_v15 }
 0x2e6 PF: > { %s16_s23 = sadd.s32 1, %s4389_s23   ;;  %s5642_s21 = smov %s4385_s22 }
 0x2e7   : > { %p13_p5 = scmp.ge.s32.totalorder %s16_s23, 4   ;;  %s5643_s22 = smov %s5645_s24 }
 0x2e9   :  { %15 = sbr.rel (!%p13_p5) target bundleno = 2 (0x2), region = 92 }

</bundles_post_ra>
